<compile_context>
chip_gen: v6e
topology: v6e:2x2x1
jax: 0.10.0
libtpu: 0.0.40
codegen_flags: <defaults>
</compile_context>

<pallas_src>
import functools

import jax
import jax.numpy as jnp
from jax.experimental import pallas as pl
from jax.experimental.pallas import tpu as pltpu

_HALF_PAD = 64                       # each real/imag half padded to a multiple of this
_VMEM_LIMIT = 48 * 1024 * 1024       # raised scoped-VMEM cap (safe on v5e/v6e/v7x)


def _round_up(x, m):
    return ((x + m - 1) // m) * m


# =============================================================================
# One-time weight packing (hoisted out of the jitted forward)
# =============================================================================
def _cplx_block(wr, wi, k_half, n_half):
    """(K,N) real/imag weights -> (2*k_half, 2*n_half) bf16 block [[wr, wi], [-wi, wr]]
    so that [xr | xi] @ block = [yr | yi] in a single MXU matmul."""
    K, N = wr.shape
    wr_p = jnp.pad(wr, ((0, k_half - K), (0, n_half - N)))
    wi_p = jnp.pad(wi, ((0, k_half - K), (0, n_half - N)))
    top = jnp.concatenate([wr_p, wi_p], axis=1)
    bot = jnp.concatenate([-wi_p, wr_p], axis=1)
    return jnp.concatenate([top, bot], axis=0).astype(jnp.bfloat16)


def init_params(key, in_channel, out_channel, reduction=16):
    """Deterministic synthetic weights in matmul layout (K, N); conv2 weights are
    tap-major (kh*kw, Cin, Cout) - a permutation of PyTorch's (Cout,Cin,kh,kw)."""
    cmid = in_channel // 4
    cred = out_channel // reduction + 1
    keys = jax.random.split(key, 10)

    def w(k, shape):
        return 0.1 * jax.random.normal(k, shape, dtype=jnp.float32)

    return {
        'w1r': w(keys[0], (in_channel, cmid)),     # conv1 1x1, bias=False
        'w1i': w(keys[1], (in_channel, cmid)),
        'w2r': w(keys[2], (9, cmid, cmid)),        # conv2 3x3, pad=1, bias=False
        'w2i': w(keys[3], (9, cmid, cmid)),
        'w3r': w(keys[4], (cmid, out_channel)),    # conv3 1x1, bias=False
        'w3i': w(keys[5], (cmid, out_channel)),
        'fc1r': w(keys[6], (out_channel, cred)),   # SE fc1, bias=False
        'fc1i': w(keys[7], (out_channel, cred)),
        'fc2r': w(keys[8], (cred, out_channel)),   # SE fc2, bias=False
        'fc2i': w(keys[9], (cred, out_channel)),
    }


def prepare_params(params):
    """One-time packing/padding of complex weights into lane-dense bf16 blocks."""
    Cin, Cmid = params['w1r'].shape
    Cout = params['w3r'].shape[1]
    Cred = params['fc1r'].shape[1]
    ch_in = _round_up(Cin, _HALF_PAD)
    ch_mid = _round_up(Cmid, _HALF_PAD)
    ch_out = _round_up(Cout, _HALF_PAD)
    ch_red = _round_up(Cred, _HALF_PAD)
    w2 = jnp.stack([_cplx_block(params['w2r'][t], params['w2i'][t], ch_mid, ch_mid)
                    for t in range(9)])
    return {
        'w1': _cplx_block(params['w1r'], params['w1i'], ch_in, ch_mid),
        'w2': w2,
        'w3': _cplx_block(params['w3r'], params['w3i'], ch_mid, ch_out),
        'wf1': _cplx_block(params['fc1r'], params['fc1i'], ch_out, ch_red),
        'wf2': _cplx_block(params['fc2r'], params['fc2i'], ch_red, ch_out),
    }


# =============================================================================
# Pallas kernels
# =============================================================================
def _conv12_kernel(x_hbm, w1_ref, w2_ref, y_ref, xbuf, sem,
                   *, H, W, BH, WC, rows_per_image):
    """Fused conv1(1x1)+ReLU -> conv2(3x3,pad=1)+ReLU on one row band (+1-row halo).

    x_hbm : (N*(Hb+2), WIN, Cin2) bf16 spatially zero-padded input, HBM (pl.ANY)
    y_ref : (1, BH, WC, Cmid2) bf16 band output block
    xbuf  : (2, BH+2, WIN, Cin2) bf16 double-buffered halo band
    """
    n = pl.program_id(0)
    b = pl.program_id(1)
    nb = pl.num_programs(1)
    slot = b % 2
    base = n * rows_per_image
    Hb = rows_per_image - 2

    def start(band, s):
        src = x_hbm.at[pl.ds(base + band * BH, BH + 2)]
        pltpu.make_async_copy(src, xbuf.at[s], sem.at[s]).start()

    # Prime per image (safe under megacore sharding of the batch axis).
    @pl.when(b == 0)
    def _():
        start(b, slot)

    # Prefetch the next band of the same image.
    @pl.when(b + 1 < nb)
    def _():
        start(b + 1, 1 - slot)

    pltpu.make_async_copy(x_hbm.at[pl.ds(base + b * BH, BH + 2)],
                          xbuf.at[slot], sem.at[slot]).wait()

    WIN = xbuf.shape[2]
    Cin2 = xbuf.shape[3]
    Cmid2 = w1_ref.shape[1]

    xw = xbuf[slot]                                            # (BH+2, WIN, Cin2) bf16

    # conv1 (1x1, no bias) + ComplexReLU on the haloed band (padding stays zero).
    h = jnp.dot(xw.reshape((BH + 2) * WIN, Cin2), w1_ref[...],
                preferred_element_type=jnp.float32)
    h = jnp.maximum(h, 0.0).astype(jnp.bfloat16)
    h = h.reshape(BH + 2, WIN, Cmid2)

    # conv2 (3x3, pad=1, no bias): 9-tap accumulation in f32, single output write.
    acc = None
    for dh in range(3):
        for dw in range(3):
            win = h[dh:dh + BH, dw:dw + WC, :].reshape(BH * WC, Cmid2)
            part = jnp.dot(win, w2_ref[dh * 3 + dw],
                           preferred_element_type=jnp.float32)
            acc = part if acc is None else acc + part
    acc = jnp.maximum(acc, 0.0)                                # ComplexReLU
    acc = acc.reshape(BH, WC, Cmid2)

    # Zero band/width padding so the fused global-average pool downstream is exact.
    if Hb > H:
        row = jax.lax.broadcasted_iota(jnp.int32, (BH, WC, 1), 0) + b * BH
        acc = jnp.where(row < H, acc, 0.0)
    if WC > W:
        col = jax.lax.broadcasted_iota(jnp.int32, (BH, WC, 1), 1)
        acc = jnp.where(col < W, acc, 0.0)

    y_ref[0] = acc.astype(jnp.bfloat16)


def _conv3_pool_kernel(x_ref, w_ref, y_ref, pool_ref, *, inv_hw):
    """conv3 (1x1, no bias) on one band with a fused partial global-average pool."""
    _, BH, WC, Cm2 = x_ref.shape
    x = x_ref[0].reshape(BH * WC, Cm2)                         # bf16
    y = jnp.dot(x, w_ref[...], preferred_element_type=jnp.float32)
    y_ref[0] = y.reshape(BH, WC, -1).astype(jnp.bfloat16)
    pool_ref[0, 0] = jnp.sum(y, axis=0, keepdims=True) * inv_hw


def _se_gate_kernel(pool_ref, wf1_ref, wf2_ref, g1_ref, g2_ref, *, half):
    """SE gate: reduce partial pools, fc1 -> ComplexReLU -> fc2 -> Sigmoid, then
    emit g1=[gr|gr], g2=[-gi|gi] so the scale kernel is a pure streaming FMA."""
    p = jnp.sum(pool_ref[...], axis=(1, 2))                    # (N, 2*half) f32
    h = jnp.dot(p.astype(jnp.bfloat16), wf1_ref[...],
                preferred_element_type=jnp.float32)
    h = jnp.maximum(h, 0.0)                                    # ComplexReLU
    g = jnp.dot(h.astype(jnp.bfloat16), wf2_ref[...],
                preferred_element_type=jnp.float32)
    # TODO(synk): leibniz `Sigmoid()` on complex activations assumed to act on
    # real and imag parts independently (same as the previous version).
    g = jax.nn.sigmoid(g)                                      # (N, 2*half)
    g_sw = pltpu.roll(g, shift=half, axis=1)                   # [gi | gr]
    lane = jax.lax.broadcasted_iota(jnp.int32, g.shape, 1)
    is_real = lane < half
    n = g.shape[0]
    g1_ref[...] = jnp.where(is_real, g, g_sw).reshape(n, 1, 2 * half)    # [gr | gr]
    g2_ref[...] = jnp.where(is_real, -g_sw, g).reshape(n, 1, 2 * half)   # [-gi | gi]


def _se_scale_kernel(y_ref, g1_ref, g2_ref, o_ref, *, half):
    """Complex SE scale: out = x*g1 + roll(x, half)*g2 (lane roll -> XLU slot)."""
    x = y_ref[0].astype(jnp.float32)                           # (BH, WC, 2*half)
    x_sw = pltpu.roll(x, shift=half, axis=2)                   # [xi | xr]
    o_ref[0] = x * g1_ref[...] + x_sw * g2_ref[...]


# =============================================================================
# pallas_call wrappers
# =============================================================================
def _conv12(x_flat, w1, w2, *, N, H, W, BH, nb, Hb, WC, WIN):
    Cin2 = x_flat.shape[-1]
    Cmid2 = w1.shape[-1]
    kernel = functools.partial(_conv12_kernel, H=H, W=W, BH=BH, WC=WC,
                               rows_per_image=Hb + 2)
    return pl.pallas_call(
        kernel,
        out_shape=jax.ShapeDtypeStruct((N, Hb, WC, Cmid2), jnp.bfloat16),
        grid=(N, nb),
        in_specs=[pl.BlockSpec(memory_space=pl.ANY),
                  pl.BlockSpec((Cin2, Cmid2), lambda n, b: (0, 0)),
                  pl.BlockSpec((9, Cmid2, Cmid2), lambda n, b: (0, 0, 0))],
        out_specs=pl.BlockSpec((1, BH, WC, Cmid2), lambda n, b: (n, b, 0, 0)),
        scratch_shapes=[pltpu.VMEM((2, BH + 2, WIN, Cin2), jnp.bfloat16),
                        pltpu.SemaphoreType.DMA((2,))],
        compiler_params=pltpu.CompilerParams(
            dimension_semantics=("parallel", "arbitrary"),
            vmem_limit_bytes=_VMEM_LIMIT),
    )(x_flat, w1, w2)


def _conv3_pool(y2, w3, *, inv_hw, BH, nb):
    N, Hb, WC, Cmid2 = y2.shape
    Cout2 = w3.shape[-1]
    kernel = functools.partial(_conv3_pool_kernel, inv_hw=inv_hw)
    return pl.pallas_call(
        kernel,
        out_shape=(jax.ShapeDtypeStruct((N, Hb, WC, Cout2), jnp.bfloat16),
                   jax.ShapeDtypeStruct((N, nb, 1, Cout2), jnp.float32)),
        grid=(N, nb),
        in_specs=[pl.BlockSpec((1, BH, WC, Cmid2), lambda n, b: (n, b, 0, 0)),
                  pl.BlockSpec((Cmid2, Cout2), lambda n, b: (0, 0))],
        out_specs=(pl.BlockSpec((1, BH, WC, Cout2), lambda n, b: (n, b, 0, 0)),
                   pl.BlockSpec((1, 1, 1, Cout2), lambda n, b: (n, b, 0, 0))),
        compiler_params=pltpu.CompilerParams(
            dimension_semantics=("parallel", "parallel"),
            vmem_limit_bytes=_VMEM_LIMIT),
    )(y2, w3)


def _se_gate(pool, wf1, wf2, *, half):
    N, nb, _, Cout2 = pool.shape
    Cred2 = wf1.shape[-1]
    kernel = functools.partial(_se_gate_kernel, half=half)
    return pl.pallas_call(
        kernel,
        out_shape=(jax.ShapeDtypeStruct((N, 1, Cout2), jnp.float32),
                   jax.ShapeDtypeStruct((N, 1, Cout2), jnp.float32)),
        grid=(1,),
        in_specs=[pl.BlockSpec((N, nb, 1, Cout2), lambda i: (0, 0, 0, 0)),
                  pl.BlockSpec((Cout2, Cred2), lambda i: (0, 0)),
                  pl.BlockSpec((Cred2, Cout2), lambda i: (0, 0))],
        out_specs=(pl.BlockSpec((N, 1, Cout2), lambda i: (0, 0, 0)),
                   pl.BlockSpec((N, 1, Cout2), lambda i: (0, 0, 0))),
    )(pool, wf1, wf2)


def _se_scale(y3, g1, g2, *, half, BH, nb):
    N, Hb, WC, Cout2 = y3.shape
    kernel = functools.partial(_se_scale_kernel, half=half)
    return pl.pallas_call(
        kernel,
        out_shape=jax.ShapeDtypeStruct((N, Hb, WC, Cout2), jnp.float32),
        grid=(N, nb),
        in_specs=[pl.BlockSpec((1, BH, WC, Cout2), lambda n, b: (n, b, 0, 0)),
                  pl.BlockSpec((1, 1, Cout2), lambda n, b: (n, 0, 0)),
                  pl.BlockSpec((1, 1, Cout2), lambda n, b: (n, 0, 0))],
        out_specs=pl.BlockSpec((1, BH, WC, Cout2), lambda n, b: (n, b, 0, 0)),
        compiler_params=pltpu.CompilerParams(
            dimension_semantics=("parallel", "parallel"),
            vmem_limit_bytes=_VMEM_LIMIT),
    )(y3, g1, g2)


# =============================================================================
# Forward orchestration
# =============================================================================
def _pack_input(xr, xi, *, c_half, Hb, WIN):
    """NHWC real/imag -> flattened ((N*(Hb+2)), WIN, 2*c_half) bf16 with the
    conv padding, band padding and lane padding all applied as zeros once."""
    N, H, W, C = xr.shape
    cpad = c_half - C
    x = jnp.concatenate(
        [jnp.pad(xr, ((0, 0), (0, 0), (0, 0), (0, cpad))),
         jnp.pad(xi, ((0, 0), (0, 0), (0, 0), (0, cpad)))], axis=-1)
    x = jnp.pad(x, ((0, 0), (1, Hb - H + 1), (1, WIN - W - 1), (0, 0)))
    return x.astype(jnp.bfloat16).reshape(N * (Hb + 2), WIN, 2 * c_half)


def bottleneck_forward(xr, xi, packed, *, cout, band_rows=32):
    # NHWC activations, complex carried as (real, imag) float32 pair.
    N, H, W, Cin = xr.shape
    Cin2, Cmid2 = packed['w1'].shape
    Cout2 = packed['w3'].shape[1]
    half_in = Cin2 // 2
    half_out = Cout2 // 2

    nb = -(-H // band_rows)        # number of row bands
    BH = -(-H // nb)               # balanced band height
    Hb = nb * BH                   # band-padded height
    WC = _round_up(W, 8)           # working (lane-fold-friendly) width
    WIN = WC + 8                   # padded input width (1-col halo + zeros)

    # Pack/pad/cast the input once (smallest tensor in the pipeline).
    x_flat = _pack_input(xr, xi, c_half=half_in, Hb=Hb, WIN=WIN)

    # conv1 (1x1) + ReLU fused into conv2 (3x3, pad=1) + ReLU, row-band tiled.
    y2 = _conv12(x_flat, packed['w1'], packed['w2'],
                 N=N, H=H, W=W, BH=BH, nb=nb, Hb=Hb, WC=WC, WIN=WIN)

    # conv3 (1x1) with fused per-band partial global-average pools.
    y3, pool = _conv3_pool(y2, packed['w3'], inv_hw=1.0 / (H * W), BH=BH, nb=nb)

    # SE gate (fc1 -> ReLU -> fc2 -> Sigmoid), one tiny fused kernel per call.
    g1, g2 = _se_gate(pool, packed['wf1'], packed['wf2'], half=half_out)

    # SE scale: complex multiply broadcast over space.
    out = _se_scale(y3, g1, g2, half=half_out, BH=BH, nb=nb)

    out = out[:, :H, :W, :]
    return out[..., :cout], out[..., half_out:half_out + cout]


if __name__ == "__main__":
    key = jax.random.PRNGKey(0)
    k_xr, k_xi, k_p = jax.random.split(key, 3)

    N, Cin, H, W = 2, 8, 16, 16
    Cout = 8

    # PyTorch-style NCHW complex input, split into real/imag parts.
    x_r_nchw = jax.random.normal(k_xr, (N, Cin, H, W), dtype=jnp.float32)
    x_i_nchw = jax.random.normal(k_xi, (N, Cin, H, W), dtype=jnp.float32)
    xr = jnp.transpose(x_r_nchw, (0, 2, 3, 1))   # NCHW -> NHWC
    xi = jnp.transpose(x_i_nchw, (0, 2, 3, 1))

    params = init_params(k_p, Cin, Cout)
    packed = prepare_params(params)              # one-time weight packing

    fwd = jax.jit(functools.partial(bottleneck_forward, cout=Cout))
    yr, yi = fwd(xr, xi, packed)
    jax.block_until_ready((yr, yi))

    assert yr.shape == (N, H, W, Cout) and yi.shape == (N, H, W, Cout)
    assert bool(jnp.all(jnp.isfinite(yr))) and bool(jnp.all(jnp.isfinite(yi)))
    print("KERNEL_OK")
</pallas_src>

<mosaic_0001>
module attributes {stable_mosaic.version = 11 : i64} {
  func.func @_se_gate_kernel(%arg0: i32, %arg1: memref<2x1x1x128xf32, #tpu.memory_space<vmem>>, %arg2: memref<128x128xbf16, #tpu.memory_space<vmem>>, %arg3: memref<128x128xbf16, #tpu.memory_space<vmem>>, %arg4: memref<2x1x128xf32, #tpu.memory_space<vmem>>, %arg5: memref<2x1x128xf32, #tpu.memory_space<vmem>>) attributes {dimension_semantics = [#tpu.dimension_semantics<arbitrary>], iteration_bounds = array<i64: 1>, scalar_prefetch = 0 : i64, scratch_operands = 0 : i64, tpu.core_type = #tpu.core_type<tc>, window_params = [{pipeline_mode = #tpu.pipeline_mode<synchronous>, transform_indices = @transform_0, window_bounds = array<i64: 2, 1, 1, 128>}, {pipeline_mode = #tpu.pipeline_mode<synchronous>, transform_indices = @transform_1, window_bounds = array<i64: 128, 128>}, {pipeline_mode = #tpu.pipeline_mode<synchronous>, transform_indices = @transform_2, window_bounds = array<i64: 128, 128>}, {pipeline_mode = #tpu.pipeline_mode<synchronous>, transform_indices = @transform_3, window_bounds = array<i64: 2, 1, 128>}, {pipeline_mode = #tpu.pipeline_mode<synchronous>, transform_indices = @transform_4, window_bounds = array<i64: 2, 1, 128>}]} {
    %c0 = arith.constant 0 : index
    %c0_0 = arith.constant 0 : index
    %c0_1 = arith.constant 0 : index
    %c0_2 = arith.constant 0 : index
    %0 = vector.load %arg1[%c0, %c0_0, %c0_1, %c0_2] : memref<2x1x1x128xf32, #tpu.memory_space<vmem>>, vector<2x1x1x128xf32>
    %cst = arith.constant dense<0.000000e+00> : vector<2x128xf32>
    %1 = vector.multi_reduction <add>, %0, %cst [1, 2] : vector<2x1x1x128xf32> to vector<2x128xf32>
    %2 = arith.truncf %1 : vector<2x128xf32> to vector<2x128xbf16>
    %c0_3 = arith.constant 0 : index
    %c0_4 = arith.constant 0 : index
    %3 = vector.load %arg2[%c0_3, %c0_4] : memref<128x128xbf16, #tpu.memory_space<vmem>>, vector<128x128xbf16>
    %cst_5 = arith.constant dense<0.000000e+00> : vector<2x128xf32>
    %4 = tpu.matmul %2, %3, %cst_5 {dimension_numbers = #tpu.dot_dimension_numbers<[1], [0], [0], [1], [0, 0, 1, 1], [], []>} : vector<2x128xbf16>, vector<128x128xbf16>, vector<2x128xf32> -> vector<2x128xf32>
    %cst_6 = arith.constant 0.000000e+00 : f32
    %5 = vector.broadcast %cst_6 : f32 to vector<2x128xf32>
    %6 = arith.maximumf %4, %5 : vector<2x128xf32>
    %7 = arith.truncf %6 : vector<2x128xf32> to vector<2x128xbf16>
    %c0_7 = arith.constant 0 : index
    %c0_8 = arith.constant 0 : index
    %8 = vector.load %arg3[%c0_7, %c0_8] : memref<128x128xbf16, #tpu.memory_space<vmem>>, vector<128x128xbf16>
    %cst_9 = arith.constant dense<0.000000e+00> : vector<2x128xf32>
    %9 = tpu.matmul %7, %8, %cst_9 {dimension_numbers = #tpu.dot_dimension_numbers<[1], [0], [0], [1], [0, 0, 1, 1], [], []>} : vector<2x128xbf16>, vector<128x128xbf16>, vector<2x128xf32> -> vector<2x128xf32>
    %10 = arith.negf %9 : vector<2x128xf32>
    %11 = math.exp %10 : vector<2x128xf32>
    %cst_10 = arith.constant 1.000000e+00 : f32
    %12 = vector.broadcast %cst_10 : f32 to vector<2x128xf32>
    %13 = arith.addf %12, %11 : vector<2x128xf32>
    %14 = arith.divf %12, %13 : vector<2x128xf32>
    %c64_i32 = arith.constant 64 : i32
    %15 = tpu.dynamic_rotate %14 by %c64_i32 dim 1 : vector<2x128xf32>, i32 -> vector<2x128xf32>
    %16 = tpu.iota {dimensions = array<i32: 1>} : vector<2x128xi32>
    %c64_i32_11 = arith.constant 64 : i32
    %17 = vector.broadcast %c64_i32_11 : i32 to vector<2x128xi32>
    %18 = arith.cmpi slt, %16, %17 : vector<2x128xi32>
    %19 = arith.select %18, %14, %15 : vector<2x128xi1>, vector<2x128xf32>
    %20 = vector.shape_cast %19 : vector<2x128xf32> to vector<2x1x128xf32>
    %c0_12 = arith.constant 0 : index
    %c0_13 = arith.constant 0 : index
    %c0_14 = arith.constant 0 : index
    %21 = vector.load %arg4[%c0_12, %c0_13, %c0_14] : memref<2x1x128xf32, #tpu.memory_space<vmem>>, vector<2x1x128xf32>
    tpu.vector_store %arg4[%c0_12, %c0_13, %c0_14], %20 {strides = array<i32>} : memref<2x1x128xf32, #tpu.memory_space<vmem>>, vector<2x1x128xf32>,
    %cst_15 = arith.constant 0.000000e+00 : f32
    %22 = vector.broadcast %cst_15 : f32 to vector<2x128xf32>
    %23 = arith.subf %22, %15 : vector<2x128xf32>
    %24 = arith.select %18, %23, %14 : vector<2x128xi1>, vector<2x128xf32>
    %25 = vector.shape_cast %24 : vector<2x128xf32> to vector<2x1x128xf32>
    %c0_16 = arith.constant 0 : index
    %c0_17 = arith.constant 0 : index
    %c0_18 = arith.constant 0 : index
    %26 = vector.load %arg5[%c0_16, %c0_17, %c0_18] : memref<2x1x128xf32, #tpu.memory_space<vmem>>, vector<2x1x128xf32>
    tpu.vector_store %arg5[%c0_16, %c0_17, %c0_18], %25 {strides = array<i32>} : memref<2x1x128xf32, #tpu.memory_space<vmem>>, vector<2x1x128xf32>,
    return
  }
  func.func @transform_0(%arg0: i32) -> (i32, i32, i32, i32) {
    %c0_i32 = arith.constant 0 : i32
    %c0_i32_0 = arith.constant 0 : i32
    %c0_i32_1 = arith.constant 0 : i32
    %c0_i32_2 = arith.constant 0 : i32
    %c0_i32_3 = arith.constant 0 : i32
    return %c0_i32, %c0_i32_0, %c0_i32_1, %c0_i32_2 : i32, i32, i32, i32
  }
  func.func @transform_1(%arg0: i32) -> (i32, i32) {
    %c0_i32 = arith.constant 0 : i32
    %c0_i32_0 = arith.constant 0 : i32
    %c0_i32_1 = arith.constant 0 : i32
    return %c0_i32, %c0_i32_0 : i32, i32
  }
  func.func @transform_2(%arg0: i32) -> (i32, i32) {
    %c0_i32 = arith.constant 0 : i32
    %c0_i32_0 = arith.constant 0 : i32
    %c0_i32_1 = arith.constant 0 : i32
    return %c0_i32, %c0_i32_0 : i32, i32
  }
  func.func @transform_3(%arg0: i32) -> (i32, i32, i32) {
    %c0_i32 = arith.constant 0 : i32
    %c0_i32_0 = arith.constant 0 : i32
    %c0_i32_1 = arith.constant 0 : i32
    %c0_i32_2 = arith.constant 0 : i32
    return %c0_i32, %c0_i32_0, %c0_i32_1 : i32, i32, i32
  }
  func.func @transform_4(%arg0: i32) -> (i32, i32, i32) {
    %c0_i32 = arith.constant 0 : i32
    %c0_i32_0 = arith.constant 0 : i32
    %c0_i32_1 = arith.constant 0 : i32
    %c0_i32_2 = arith.constant 0 : i32
    return %c0_i32, %c0_i32_0, %c0_i32_1 : i32, i32, i32
  }
}

module attributes {stable_mosaic.version = 11 : i64} {
  func.func @_conv12_kernel(%arg0: i32, %arg1: i32, %arg2: memref<36x24x128xbf16, #tpu.memory_space<any>>, %arg3: memref<128x128xbf16, #tpu.memory_space<vmem>>, %arg4: memref<9x128x128xbf16, #tpu.memory_space<vmem>>, %arg5: memref<1x16x16x128xbf16, #tpu.memory_space<vmem>>, %arg6: memref<2x18x24x128xbf16, #tpu.memory_space<vmem>>, %arg7: memref<2x!tpu.dma_semaphore, #tpu.memory_space<semaphore_mem>>) attributes {dimension_semantics = [#tpu.dimension_semantics<parallel>, #tpu.dimension_semantics<arbitrary>], iteration_bounds = array<i64: 2, 1>, scalar_prefetch = 0 : i64, scratch_operands = 2 : i64, tpu.core_type = #tpu.core_type<tc>, window_params = [{}, {pipeline_mode = #tpu.pipeline_mode<synchronous>, transform_indices = @transform_1, window_bounds = array<i64: 128, 128>}, {pipeline_mode = #tpu.pipeline_mode<synchronous>, transform_indices = @transform_2, window_bounds = array<i64: 9, 128, 128>}, {transform_indices = @transform_3, window_bounds = array<i64: 1, 16, 16, 128>}]} {
    %c2_i32 = arith.constant 2 : i32
    %c0_i32 = arith.constant 0 : i32
    %0 = arith.cmpi eq, %c2_i32, %c0_i32 : i32
    %c1_i32 = arith.constant 1 : i32
    %1 = arith.select %0, %c1_i32, %c2_i32 : i32
    %2 = arith.remsi %arg1, %1 : i32
    %c0_i32_0 = arith.constant 0 : i32
    %3 = arith.cmpi ne, %2, %c0_i32_0 : i32
    %c0_i32_1 = arith.constant 0 : i32
    %4 = arith.cmpi slt, %2, %c0_i32_1 : i32
    %c0_i32_2 = arith.constant 0 : i32
    %5 = arith.cmpi slt, %1, %c0_i32_2 : i32
    %6 = arith.xori %4, %5 : i1
    %7 = arith.andi %6, %3 : i1
    %8 = arith.addi %2, %1 : i32
    %9 = arith.select %7, %8, %2 : i32
    %c18_i32 = arith.constant 18 : i32
    %10 = arith.muli %arg0, %c18_i32 : i32
    %c0_i32_3 = arith.constant 0 : i32
    %11 = arith.cmpi eq, %arg1, %c0_i32_3 : i32
    %12 = arith.extui %11 : i1 to i32
    %c0_i32_4 = arith.constant 0 : i32
    %13 = arith.cmpi ne, %12, %c0_i32_4 : i32
    scf.if %13 {
      %c16_i32_51 = arith.constant 16 : i32
      %95 = arith.muli %arg1, %c16_i32_51 : i32
      %96 = arith.addi %10, %95 : i32
      %c0_i32_52 = arith.constant 0 : i32
      %c0_i32_53 = arith.constant 0 : i32
      %97 = tpu.memref_slice %arg2[%96, %c0_i32_52, %c0_i32_53] : memref<36x24x128xbf16, #tpu.memory_space<any>> -> memref<18x24x128xbf16, #tpu.memory_space<any>>
      %c0_i32_54 = arith.constant 0 : i32
      %c0_i32_55 = arith.constant 0 : i32
      %c0_i32_56 = arith.constant 0 : i32
      %98 = tpu.memref_slice %arg6[%9, %c0_i32_54, %c0_i32_55, %c0_i32_56] : memref<2x18x24x128xbf16, #tpu.memory_space<vmem>> -> memref<1x18x24x128xbf16, #tpu.memory_space<vmem>>
      %99 = tpu.memref_squeeze %98 : memref<1x18x24x128xbf16, #tpu.memory_space<vmem>> -> memref<18x24x128xbf16, #tpu.memory_space<vmem>>
      %100 = tpu.memref_slice %arg7[%9] : memref<2x!tpu.dma_semaphore, #tpu.memory_space<semaphore_mem>> -> memref<1x!tpu.dma_semaphore, #tpu.memory_space<semaphore_mem>>
      %101 = tpu.memref_squeeze %100 : memref<1x!tpu.dma_semaphore, #tpu.memory_space<semaphore_mem>> -> memref<!tpu.dma_semaphore, #tpu.memory_space<semaphore_mem>>
      tpu.enqueue_dma source(%97 : memref<18x24x128xbf16, #tpu.memory_space<any>>) target(%99 : memref<18x24x128xbf16, #tpu.memory_space<vmem>>) target_semaphore(%101 : memref<!tpu.dma_semaphore, #tpu.memory_space<semaphore_mem>>)
    } else {
    }
    %c1_i32_5 = arith.constant 1 : i32
    %14 = arith.addi %arg1, %c1_i32_5 : i32
    %c1_i32_6 = arith.constant 1 : i32
    %15 = arith.cmpi slt, %14, %c1_i32_6 : i32
    %16 = arith.extui %15 : i1 to i32
    %c0_i32_7 = arith.constant 0 : i32
    %17 = arith.cmpi ne, %16, %c0_i32_7 : i32
    scf.if %17 {
      %c1_i32_51 = arith.constant 1 : i32
      %95 = arith.addi %arg1, %c1_i32_51 : i32
      %c1_i32_52 = arith.constant 1 : i32
      %96 = arith.subi %c1_i32_52, %9 : i32
      %c16_i32_53 = arith.constant 16 : i32
      %97 = arith.muli %95, %c16_i32_53 : i32
      %98 = arith.addi %10, %97 : i32
      %c0_i32_54 = arith.constant 0 : i32
      %c0_i32_55 = arith.constant 0 : i32
      %99 = tpu.memref_slice %arg2[%98, %c0_i32_54, %c0_i32_55] : memref<36x24x128xbf16, #tpu.memory_space<any>> -> memref<18x24x128xbf16, #tpu.memory_space<any>>
      %c0_i32_56 = arith.constant 0 : i32
      %c0_i32_57 = arith.constant 0 : i32
      %c0_i32_58 = arith.constant 0 : i32
      %100 = tpu.memref_slice %arg6[%96, %c0_i32_56, %c0_i32_57, %c0_i32_58] : memref<2x18x24x128xbf16, #tpu.memory_space<vmem>> -> memref<1x18x24x128xbf16, #tpu.memory_space<vmem>>
      %101 = tpu.memref_squeeze %100 : memref<1x18x24x128xbf16, #tpu.memory_space<vmem>> -> memref<18x24x128xbf16, #tpu.memory_space<vmem>>
      %102 = tpu.memref_slice %arg7[%96] : memref<2x!tpu.dma_semaphore, #tpu.memory_space<semaphore_mem>> -> memref<1x!tpu.dma_semaphore, #tpu.memory_space<semaphore_mem>>
      %103 = tpu.memref_squeeze %102 : memref<1x!tpu.dma_semaphore, #tpu.memory_space<semaphore_mem>> -> memref<!tpu.dma_semaphore, #tpu.memory_space<semaphore_mem>>
      tpu.enqueue_dma source(%99 : memref<18x24x128xbf16, #tpu.memory_space<any>>) target(%101 : memref<18x24x128xbf16, #tpu.memory_space<vmem>>) target_semaphore(%103 : memref<!tpu.dma_semaphore, #tpu.memory_space<semaphore_mem>>)
    } else {
    }
    %c16_i32 = arith.constant 16 : i32
    %18 = arith.muli %arg1, %c16_i32 : i32
    %19 = arith.addi %10, %18 : i32
    %c0_i32_8 = arith.constant 0 : i32
    %c0_i32_9 = arith.constant 0 : i32
    %20 = tpu.memref_slice %arg2[%19, %c0_i32_8, %c0_i32_9] : memref<36x24x128xbf16, #tpu.memory_space<any>> -> memref<18x24x128xbf16, #tpu.memory_space<any>>
    %c0_i32_10 = arith.constant 0 : i32
    %c0_i32_11 = arith.constant 0 : i32
    %c0_i32_12 = arith.constant 0 : i32
    %21 = tpu.memref_slice %arg6[%9, %c0_i32_10, %c0_i32_11, %c0_i32_12] : memref<2x18x24x128xbf16, #tpu.memory_space<vmem>> -> memref<1x18x24x128xbf16, #tpu.memory_space<vmem>>
    %22 = tpu.memref_squeeze %21 : memref<1x18x24x128xbf16, #tpu.memory_space<vmem>> -> memref<18x24x128xbf16, #tpu.memory_space<vmem>>
    %23 = tpu.memref_slice %arg7[%9] : memref<2x!tpu.dma_semaphore, #tpu.memory_space<semaphore_mem>> -> memref<1x!tpu.dma_semaphore, #tpu.memory_space<semaphore_mem>>
    %24 = tpu.memref_squeeze %23 : memref<1x!tpu.dma_semaphore, #tpu.memory_space<semaphore_mem>> -> memref<!tpu.dma_semaphore, #tpu.memory_space<semaphore_mem>>
    tpu.wait_dma2 semaphore(%24 : memref<!tpu.dma_semaphore, #tpu.memory_space<semaphore_mem>>) src(%20 : memref<18x24x128xbf16, #tpu.memory_space<any>>) dst(%22 : memref<18x24x128xbf16, #tpu.memory_space<vmem>>)
    %25 = arith.index_cast %9 : i32 to index
    %c0 = arith.constant 0 : index
    %c0_13 = arith.constant 0 : index
    %c0_14 = arith.constant 0 : index
    %26 = vector.load %arg6[%25, %c0, %c0_13, %c0_14] : memref<2x18x24x128xbf16, #tpu.memory_space<vmem>>, vector<1x18x24x128xbf16>
    %27 = vector.shape_cast %26 : vector<1x18x24x128xbf16> to vector<18x24x128xbf16>
    %28 = vector.shape_cast %27 : vector<18x24x128xbf16> to vector<432x128xbf16>
    %c0_15 = arith.constant 0 : index
    %c0_16 = arith.constant 0 : index
    %29 = vector.load %arg3[%c0_15, %c0_16] : memref<128x128xbf16, #tpu.memory_space<vmem>>, vector<128x128xbf16>
    %cst = arith.constant dense<0.000000e+00> : vector<432x128xf32>
    %30 = tpu.matmul %28, %29, %cst {dimension_numbers = #tpu.dot_dimension_numbers<[1], [0], [0], [1], [0, 0, 1, 1], [], []>} : vector<432x128xbf16>, vector<128x128xbf16>, vector<432x128xf32> -> vector<432x128xf32>
    %cst_17 = arith.constant 0.000000e+00 : f32
    %31 = vector.broadcast %cst_17 : f32 to vector<432x128xf32>
    %32 = arith.maximumf %30, %31 : vector<432x128xf32>
    %33 = arith.truncf %32 : vector<432x128xf32> to vector<432x128xbf16>
    %34 = vector.shape_cast %33 : vector<432x128xbf16> to vector<18x24x128xbf16>
    %35 = vector.extract_strided_slice %34 {offsets = [0, 0, 0], sizes = [16, 16, 128], strides = [1, 1, 1]} : vector<18x24x128xbf16> to vector<16x16x128xbf16>
    %36 = vector.shape_cast %35 : vector<16x16x128xbf16> to vector<256x128xbf16>
    %c0_18 = arith.constant 0 : index
    %c0_19 = arith.constant 0 : index
    %c0_20 = arith.constant 0 : index
    %37 = vector.load %arg4[%c0_18, %c0_19, %c0_20] : memref<9x128x128xbf16, #tpu.memory_space<vmem>>, vector<1x128x128xbf16>
    %38 = vector.shape_cast %37 : vector<1x128x128xbf16> to vector<128x128xbf16>
    %cst_21 = arith.constant dense<0.000000e+00> : vector<256x128xf32>
    %39 = tpu.matmul %36, %38, %cst_21 {dimension_numbers = #tpu.dot_dimension_numbers<[1], [0], [0], [1], [0, 0, 1, 1], [], []>} : vector<256x128xbf16>, vector<128x128xbf16>, vector<256x128xf32> -> vector<256x128xf32>
    %40 = vector.extract_strided_slice %34 {offsets = [0, 1, 0], sizes = [16, 16, 128], strides = [1, 1, 1]} : vector<18x24x128xbf16> to vector<16x16x128xbf16>
    %41 = vector.shape_cast %40 : vector<16x16x128xbf16> to vector<256x128xbf16>
    %c1 = arith.constant 1 : index
    %c0_22 = arith.constant 0 : index
    %c0_23 = arith.constant 0 : index
    %42 = vector.load %arg4[%c1, %c0_22, %c0_23] : memref<9x128x128xbf16, #tpu.memory_space<vmem>>, vector<1x128x128xbf16>
    %43 = vector.shape_cast %42 : vector<1x128x128xbf16> to vector<128x128xbf16>
    %cst_24 = arith.constant dense<0.000000e+00> : vector<256x128xf32>
    %44 = tpu.matmul %41, %43, %cst_24 {dimension_numbers = #tpu.dot_dimension_numbers<[1], [0], [0], [1], [0, 0, 1, 1], [], []>} : vector<256x128xbf16>, vector<128x128xbf16>, vector<256x128xf32> -> vector<256x128xf32>
    %45 = arith.addf %39, %44 : vector<256x128xf32>
    %46 = vector.extract_strided_slice %34 {offsets = [0, 2, 0], sizes = [16, 16, 128], strides = [1, 1, 1]} : vector<18x24x128xbf16> to vector<16x16x128xbf16>
    %47 = vector.shape_cast %46 : vector<16x16x128xbf16> to vector<256x128xbf16>
    %c2 = arith.constant 2 : index
    %c0_25 = arith.constant 0 : index
    %c0_26 = arith.constant 0 : index
    %48 = vector.load %arg4[%c2, %c0_25, %c0_26] : memref<9x128x128xbf16, #tpu.memory_space<vmem>>, vector<1x128x128xbf16>
    %49 = vector.shape_cast %48 : vector<1x128x128xbf16> to vector<128x128xbf16>
    %cst_27 = arith.constant dense<0.000000e+00> : vector<256x128xf32>
    %50 = tpu.matmul %47, %49, %cst_27 {dimension_numbers = #tpu.dot_dimension_numbers<[1], [0], [0], [1], [0, 0, 1, 1], [], []>} : vector<256x128xbf16>, vector<128x128xbf16>, vector<256x128xf32> -> vector<256x128xf32>
    %51 = arith.addf %45, %50 : vector<256x128xf32>
    %52 = vector.extract_strided_slice %34 {offsets = [1, 0, 0], sizes = [16, 16, 128], strides = [1, 1, 1]} : vector<18x24x128xbf16> to vector<16x16x128xbf16>
    %53 = vector.shape_cast %52 : vector<16x16x128xbf16> to vector<256x128xbf16>
    %c3 = arith.constant 3 : index
    %c0_28 = arith.constant 0 : index
    %c0_29 = arith.constant 0 : index
    %54 = vector.load %arg4[%c3, %c0_28, %c0_29] : memref<9x128x128xbf16, #tpu.memory_space<vmem>>, vector<1x128x128xbf16>
    %55 = vector.shape_cast %54 : vector<1x128x128xbf16> to vector<128x128xbf16>
    %cst_30 = arith.constant dense<0.000000e+00> : vector<256x128xf32>
    %56 = tpu.matmul %53, %55, %cst_30 {dimension_numbers = #tpu.dot_dimension_numbers<[1], [0], [0], [1], [0, 0, 1, 1], [], []>} : vector<256x128xbf16>, vector<128x128xbf16>, vector<256x128xf32> -> vector<256x128xf32>
    %57 = arith.addf %51, %56 : vector<256x128xf32>
    %58 = vector.extract_strided_slice %34 {offsets = [1, 1, 0], sizes = [16, 16, 128], strides = [1, 1, 1]} : vector<18x24x128xbf16> to vector<16x16x128xbf16>
    %59 = vector.shape_cast %58 : vector<16x16x128xbf16> to vector<256x128xbf16>
    %c4 = arith.constant 4 : index
    %c0_31 = arith.constant 0 : index
    %c0_32 = arith.constant 0 : index
    %60 = vector.load %arg4[%c4, %c0_31, %c0_32] : memref<9x128x128xbf16, #tpu.memory_space<vmem>>, vector<1x128x128xbf16>
    %61 = vector.shape_cast %60 : vector<1x128x128xbf16> to vector<128x128xbf16>
    %cst_33 = arith.constant dense<0.000000e+00> : vector<256x128xf32>
    %62 = tpu.matmul %59, %61, %cst_33 {dimension_numbers = #tpu.dot_dimension_numbers<[1], [0], [0], [1], [0, 0, 1, 1], [], []>} : vector<256x128xbf16>, vector<128x128xbf16>, vector<256x128xf32> -> vector<256x128xf32>
    %63 = arith.addf %57, %62 : vector<256x128xf32>
    %64 = vector.extract_strided_slice %34 {offsets = [1, 2, 0], sizes = [16, 16, 128], strides = [1, 1, 1]} : vector<18x24x128xbf16> to vector<16x16x128xbf16>
    %65 = vector.shape_cast %64 : vector<16x16x128xbf16> to vector<256x128xbf16>
    %c5 = arith.constant 5 : index
    %c0_34 = arith.constant 0 : index
    %c0_35 = arith.constant 0 : index
    %66 = vector.load %arg4[%c5, %c0_34, %c0_35] : memref<9x128x128xbf16, #tpu.memory_space<vmem>>, vector<1x128x128xbf16>
    %67 = vector.shape_cast %66 : vector<1x128x128xbf16> to vector<128x128xbf16>
    %cst_36 = arith.constant dense<0.000000e+00> : vector<256x128xf32>
    %68 = tpu.matmul %65, %67, %cst_36 {dimension_numbers = #tpu.dot_dimension_numbers<[1], [0], [0], [1], [0, 0, 1, 1], [], []>} : vector<256x128xbf16>, vector<128x128xbf16>, vector<256x128xf32> -> vector<256x128xf32>
    %69 = arith.addf %63, %68 : vector<256x128xf32>
    %70 = vector.extract_strided_slice %34 {offsets = [2, 0, 0], sizes = [16, 16, 128], strides = [1, 1, 1]} : vector<18x24x128xbf16> to vector<16x16x128xbf16>
    %71 = vector.shape_cast %70 : vector<16x16x128xbf16> to vector<256x128xbf16>
    %c6 = arith.constant 6 : index
    %c0_37 = arith.constant 0 : index
    %c0_38 = arith.constant 0 : index
    %72 = vector.load %arg4[%c6, %c0_37, %c0_38] : memref<9x128x128xbf16, #tpu.memory_space<vmem>>, vector<1x128x128xbf16>
    %73 = vector.shape_cast %72 : vector<1x128x128xbf16> to vector<128x128xbf16>
    %cst_39 = arith.constant dense<0.000000e+00> : vector<256x128xf32>
    %74 = tpu.matmul %71, %73, %cst_39 {dimension_numbers = #tpu.dot_dimension_numbers<[1], [0], [0], [1], [0, 0, 1, 1], [], []>} : vector<256x128xbf16>, vector<128x128xbf16>, vector<256x128xf32> -> vector<256x128xf32>
    %75 = arith.addf %69, %74 : vector<256x128xf32>
    %76 = vector.extract_strided_slice %34 {offsets = [2, 1, 0], sizes = [16, 16, 128], strides = [1, 1, 1]} : vector<18x24x128xbf16> to vector<16x16x128xbf16>
    %77 = vector.shape_cast %76 : vector<16x16x128xbf16> to vector<256x128xbf16>
    %c7 = arith.constant 7 : index
    %c0_40 = arith.constant 0 : index
    %c0_41 = arith.constant 0 : index
    %78 = vector.load %arg4[%c7, %c0_40, %c0_41] : memref<9x128x128xbf16, #tpu.memory_space<vmem>>, vector<1x128x128xbf16>
    %79 = vector.shape_cast %78 : vector<1x128x128xbf16> to vector<128x128xbf16>
    %cst_42 = arith.constant dense<0.000000e+00> : vector<256x128xf32>
    %80 = tpu.matmul %77, %79, %cst_42 {dimension_numbers = #tpu.dot_dimension_numbers<[1], [0], [0], [1], [0, 0, 1, 1], [], []>} : vector<256x128xbf16>, vector<128x128xbf16>, vector<256x128xf32> -> vector<256x128xf32>
    %81 = arith.addf %75, %80 : vector<256x128xf32>
    %82 = vector.extract_strided_slice %34 {offsets = [2, 2, 0], sizes = [16, 16, 128], strides = [1, 1, 1]} : vector<18x24x128xbf16> to vector<16x16x128xbf16>
    %83 = vector.shape_cast %82 : vector<16x16x128xbf16> to vector<256x128xbf16>
    %c8 = arith.constant 8 : index
    %c0_43 = arith.constant 0 : index
    %c0_44 = arith.constant 0 : index
    %84 = vector.load %arg4[%c8, %c0_43, %c0_44] : memref<9x128x128xbf16, #tpu.memory_space<vmem>>, vector<1x128x128xbf16>
    %85 = vector.shape_cast %84 : vector<1x128x128xbf16> to vector<128x128xbf16>
    %cst_45 = arith.constant dense<0.000000e+00> : vector<256x128xf32>
    %86 = tpu.matmul %83, %85, %cst_45 {dimension_numbers = #tpu.dot_dimension_numbers<[1], [0], [0], [1], [0, 0, 1, 1], [], []>} : vector<256x128xbf16>, vector<128x128xbf16>, vector<256x128xf32> -> vector<256x128xf32>
    %87 = arith.addf %81, %86 : vector<256x128xf32>
    %cst_46 = arith.constant 0.000000e+00 : f32
    %88 = vector.broadcast %cst_46 : f32 to vector<256x128xf32>
    %89 = arith.maximumf %87, %88 : vector<256x128xf32>
    %90 = vector.shape_cast %89 : vector<256x128xf32> to vector<16x16x128xf32>
    %91 = arith.truncf %90 : vector<16x16x128xf32> to vector<16x16x128xbf16>
    %c0_47 = arith.constant 0 : index
    %c0_48 = arith.constant 0 : index
    %c0_49 = arith.constant 0 : index
    %c0_50 = arith.constant 0 : index
    %92 = vector.load %arg5[%c0_47, %c0_48, %c0_49, %c0_50] : memref<1x16x16x128xbf16, #tpu.memory_space<vmem>>, vector<1x16x16x128xbf16>
    %93 = vector.shape_cast %92 : vector<1x16x16x128xbf16> to vector<16x16x128xbf16>
    %94 = vector.shape_cast %91 : vector<16x16x128xbf16> to vector<1x16x16x128xbf16>
    tpu.vector_store %arg5[%c0_47, %c0_48, %c0_49, %c0_50], %94 {strides = array<i32>} : memref<1x16x16x128xbf16, #tpu.memory_space<vmem>>, vector<1x16x16x128xbf16>,
    return
  }
  func.func @transform_1(%arg0: i32, %arg1: i32) -> (i32, i32) {
    %c0_i32 = arith.constant 0 : i32
    %c0_i32_0 = arith.constant 0 : i32
    %c0_i32_1 = arith.constant 0 : i32
    return %c0_i32, %c0_i32_0 : i32, i32
  }
  func.func @transform_2(%arg0: i32, %arg1: i32) -> (i32, i32, i32) {
    %c0_i32 = arith.constant 0 : i32
    %c0_i32_0 = arith.constant 0 : i32
    %c0_i32_1 = arith.constant 0 : i32
    %c0_i32_2 = arith.constant 0 : i32
    return %c0_i32, %c0_i32_0, %c0_i32_1 : i32, i32, i32
  }
  func.func @transform_3(%arg0: i32, %arg1: i32) -> (i32, i32, i32, i32) {
    %c0_i32 = arith.constant 0 : i32
    %c0_i32_0 = arith.constant 0 : i32
    %c0_i32_1 = arith.constant 0 : i32
    return %arg0, %arg1, %c0_i32, %c0_i32_0 : i32, i32, i32, i32
  }
}

module attributes {stable_mosaic.version = 11 : i64} {
  func.func @_conv3_pool_kernel(%arg0: i32, %arg1: i32, %arg2: memref<1x16x16x128xbf16, #tpu.memory_space<vmem>>, %arg3: memref<128x128xbf16, #tpu.memory_space<vmem>>, %arg4: memref<1x16x16x128xbf16, #tpu.memory_space<vmem>>, %arg5: memref<1x1x1x128xf32, #tpu.memory_space<vmem>>) attributes {dimension_semantics = [#tpu.dimension_semantics<parallel>, #tpu.dimension_semantics<parallel>], iteration_bounds = array<i64: 2, 1>, scalar_prefetch = 0 : i64, scratch_operands = 0 : i64, tpu.core_type = #tpu.core_type<tc>, window_params = [{transform_indices = @transform_0, window_bounds = array<i64: 1, 16, 16, 128>}, {pipeline_mode = #tpu.pipeline_mode<synchronous>, transform_indices = @transform_1, window_bounds = array<i64: 128, 128>}, {transform_indices = @transform_2, window_bounds = array<i64: 1, 16, 16, 128>}, {transform_indices = @transform_3, window_bounds = array<i64: 1, 1, 1, 128>}]} {
    %c0 = arith.constant 0 : index
    %c0_0 = arith.constant 0 : index
    %c0_1 = arith.constant 0 : index
    %c0_2 = arith.constant 0 : index
    %0 = vector.load %arg2[%c0, %c0_0, %c0_1, %c0_2] : memref<1x16x16x128xbf16, #tpu.memory_space<vmem>>, vector<1x16x16x128xbf16>
    %1 = vector.shape_cast %0 : vector<1x16x16x128xbf16> to vector<16x16x128xbf16>
    %2 = vector.shape_cast %1 : vector<16x16x128xbf16> to vector<256x128xbf16>
    %c0_3 = arith.constant 0 : index
    %c0_4 = arith.constant 0 : index
    %3 = vector.load %arg3[%c0_3, %c0_4] : memref<128x128xbf16, #tpu.memory_space<vmem>>, vector<128x128xbf16>
    %cst = arith.constant dense<0.000000e+00> : vector<256x128xf32>
    %4 = tpu.matmul %2, %3, %cst {dimension_numbers = #tpu.dot_dimension_numbers<[1], [0], [0], [1], [0, 0, 1, 1], [], []>} : vector<256x128xbf16>, vector<128x128xbf16>, vector<256x128xf32> -> vector<256x128xf32>
    %5 = vector.shape_cast %4 : vector<256x128xf32> to vector<16x16x128xf32>
    %6 = arith.truncf %5 : vector<16x16x128xf32> to vector<16x16x128xbf16>
    %c0_5 = arith.constant 0 : index
    %c0_6 = arith.constant 0 : index
    %c0_7 = arith.constant 0 : index
    %c0_8 = arith.constant 0 : index
    %7 = vector.load %arg4[%c0_5, %c0_6, %c0_7, %c0_8] : memref<1x16x16x128xbf16, #tpu.memory_space<vmem>>, vector<1x16x16x128xbf16>
    %8 = vector.shape_cast %7 : vector<1x16x16x128xbf16> to vector<16x16x128xbf16>
    %9 = vector.shape_cast %6 : vector<16x16x128xbf16> to vector<1x16x16x128xbf16>
    tpu.vector_store %arg4[%c0_5, %c0_6, %c0_7, %c0_8], %9 {strides = array<i32>} : memref<1x16x16x128xbf16, #tpu.memory_space<vmem>>, vector<1x16x16x128xbf16>,
    %cst_9 = arith.constant dense<0.000000e+00> : vector<128xf32>
    %10 = vector.multi_reduction <add>, %4, %cst_9 [0] : vector<256x128xf32> to vector<128xf32>
    %11 = vector.shape_cast %10 : vector<128xf32> to vector<1x128xf32>
    %cst_10 = arith.constant 3.906250e-03 : f32
    %12 = vector.broadcast %cst_10 : f32 to vector<1x128xf32>
    %13 = arith.mulf %11, %12 : vector<1x128xf32>
    %c0_11 = arith.constant 0 : index
    %c0_12 = arith.constant 0 : index
    %c0_13 = arith.constant 0 : index
    %c0_14 = arith.constant 0 : index
    %14 = vector.load %arg5[%c0_11, %c0_12, %c0_13, %c0_14] : memref<1x1x1x128xf32, #tpu.memory_space<vmem>>, vector<1x1x1x128xf32>
    %15 = vector.shape_cast %14 : vector<1x1x1x128xf32> to vector<1x128xf32>
    %16 = vector.shape_cast %13 : vector<1x128xf32> to vector<1x1x1x128xf32>
    tpu.vector_store %arg5[%c0_11, %c0_12, %c0_13, %c0_14], %16 {strides = array<i32>} : memref<1x1x1x128xf32, #tpu.memory_space<vmem>>, vector<1x1x1x128xf32>,
    return
  }
  func.func @transform_0(%arg0: i32, %arg1: i32) -> (i32, i32, i32, i32) {
    %c0_i32 = arith.constant 0 : i32
    %c0_i32_0 = arith.constant 0 : i32
    %c0_i32_1 = arith.constant 0 : i32
    return %arg0, %arg1, %c0_i32, %c0_i32_0 : i32, i32, i32, i32
  }
  func.func @transform_1(%arg0: i32, %arg1: i32) -> (i32, i32) {
    %c0_i32 = arith.constant 0 : i32
    %c0_i32_0 = arith.constant 0 : i32
    %c0_i32_1 = arith.constant 0 : i32
    return %c0_i32, %c0_i32_0 : i32, i32
  }
  func.func @transform_2(%arg0: i32, %arg1: i32) -> (i32, i32, i32, i32) {
    %c0_i32 = arith.constant 0 : i32
    %c0_i32_0 = arith.constant 0 : i32
    %c0_i32_1 = arith.constant 0 : i32
    return %arg0, %arg1, %c0_i32, %c0_i32_0 : i32, i32, i32, i32
  }
  func.func @transform_3(%arg0: i32, %arg1: i32) -> (i32, i32, i32, i32) {
    %c0_i32 = arith.constant 0 : i32
    %c0_i32_0 = arith.constant 0 : i32
    %c0_i32_1 = arith.constant 0 : i32
    return %arg0, %arg1, %c0_i32, %c0_i32_0 : i32, i32, i32, i32
  }
}

module attributes {stable_mosaic.version = 11 : i64} {
  func.func @_se_scale_kernel(%arg0: i32, %arg1: i32, %arg2: memref<1x16x16x128xbf16, #tpu.memory_space<vmem>>, %arg3: memref<1x1x128xf32, #tpu.memory_space<vmem>>, %arg4: memref<1x1x128xf32, #tpu.memory_space<vmem>>, %arg5: memref<1x16x16x128xf32, #tpu.memory_space<vmem>>) attributes {dimension_semantics = [#tpu.dimension_semantics<parallel>, #tpu.dimension_semantics<parallel>], iteration_bounds = array<i64: 2, 1>, scalar_prefetch = 0 : i64, scratch_operands = 0 : i64, tpu.core_type = #tpu.core_type<tc>, window_params = [{transform_indices = @transform_0, window_bounds = array<i64: 1, 16, 16, 128>}, {transform_indices = @transform_1, window_bounds = array<i64: 1, 1, 128>}, {transform_indices = @transform_2, window_bounds = array<i64: 1, 1, 128>}, {transform_indices = @transform_3, window_bounds = array<i64: 1, 16, 16, 128>}]} {
    %c0 = arith.constant 0 : index
    %c0_0 = arith.constant 0 : index
    %c0_1 = arith.constant 0 : index
    %c0_2 = arith.constant 0 : index
    %0 = vector.load %arg2[%c0, %c0_0, %c0_1, %c0_2] : memref<1x16x16x128xbf16, #tpu.memory_space<vmem>>, vector<1x16x16x128xbf16>
    %1 = vector.shape_cast %0 : vector<1x16x16x128xbf16> to vector<16x16x128xbf16>
    %2 = arith.extf %1 : vector<16x16x128xbf16> to vector<16x16x128xf32>
    %c64_i32 = arith.constant 64 : i32
    %3 = tpu.dynamic_rotate %2 by %c64_i32 dim 2 : vector<16x16x128xf32>, i32 -> vector<16x16x128xf32>
    %c0_3 = arith.constant 0 : index
    %c0_4 = arith.constant 0 : index
    %c0_5 = arith.constant 0 : index
    %4 = vector.load %arg3[%c0_3, %c0_4, %c0_5] : memref<1x1x128xf32, #tpu.memory_space<vmem>>, vector<1x1x128xf32>
    %5 = vector.broadcast %4 : vector<1x1x128xf32> to vector<16x16x128xf32>
    %6 = arith.mulf %2, %5 : vector<16x16x128xf32>
    %c0_6 = arith.constant 0 : index
    %c0_7 = arith.constant 0 : index
    %c0_8 = arith.constant 0 : index
    %7 = vector.load %arg4[%c0_6, %c0_7, %c0_8] : memref<1x1x128xf32, #tpu.memory_space<vmem>>, vector<1x1x128xf32>
    %8 = vector.broadcast %7 : vector<1x1x128xf32> to vector<16x16x128xf32>
    %9 = arith.mulf %3, %8 : vector<16x16x128xf32>
    %10 = arith.addf %6, %9 : vector<16x16x128xf32>
    %c0_9 = arith.constant 0 : index
    %c0_10 = arith.constant 0 : index
    %c0_11 = arith.constant 0 : index
    %c0_12 = arith.constant 0 : index
    %11 = vector.load %arg5[%c0_9, %c0_10, %c0_11, %c0_12] : memref<1x16x16x128xf32, #tpu.memory_space<vmem>>, vector<1x16x16x128xf32>
    %12 = vector.shape_cast %11 : vector<1x16x16x128xf32> to vector<16x16x128xf32>
    %13 = vector.shape_cast %10 : vector<16x16x128xf32> to vector<1x16x16x128xf32>
    tpu.vector_store %arg5[%c0_9, %c0_10, %c0_11, %c0_12], %13 {strides = array<i32>} : memref<1x16x16x128xf32, #tpu.memory_space<vmem>>, vector<1x16x16x128xf32>,
    return
  }
  func.func @transform_0(%arg0: i32, %arg1: i32) -> (i32, i32, i32, i32) {
    %c0_i32 = arith.constant 0 : i32
    %c0_i32_0 = arith.constant 0 : i32
    %c0_i32_1 = arith.constant 0 : i32
    return %arg0, %arg1, %c0_i32, %c0_i32_0 : i32, i32, i32, i32
  }
  func.func @transform_1(%arg0: i32, %arg1: i32) -> (i32, i32, i32) {
    %c0_i32 = arith.constant 0 : i32
    %c0_i32_0 = arith.constant 0 : i32
    %c0_i32_1 = arith.constant 0 : i32
    return %arg0, %c0_i32, %c0_i32_0 : i32, i32, i32
  }
  func.func @transform_2(%arg0: i32, %arg1: i32) -> (i32, i32, i32) {
    %c0_i32 = arith.constant 0 : i32
    %c0_i32_0 = arith.constant 0 : i32
    %c0_i32_1 = arith.constant 0 : i32
    return %arg0, %c0_i32, %c0_i32_0 : i32, i32, i32
  }
  func.func @transform_3(%arg0: i32, %arg1: i32) -> (i32, i32, i32, i32) {
    %c0_i32 = arith.constant 0 : i32
    %c0_i32_0 = arith.constant 0 : i32
    %c0_i32_1 = arith.constant 0 : i32
    return %arg0, %arg1, %c0_i32, %c0_i32_0 : i32, i32, i32, i32
  }
}

</mosaic_0001>

<bundles_post_ra>
// kernel: bottleneck_forward.6
= control target key start
LH: loop header
LB: loop body
LE: loop exit
PB: predicated region body
PF: predicated region fallthrough
CT: control target
= control target key end

     0   :  { %v421_v0 = vmov 0.0   ;;  %vm422_vm0 = vmmov 0   ;;  %vm44_vm1 = vcmask 1041409   ;;  %s423_s23 = smov 64   ;;  %v250_v40 = vlaneseq  ;;  %s516_s1 = inlined_call_operand.vmem [shape: bf16[128,128], index: 1, kind: input, shape index: {}]   ;;  %s517_s2 = inlined_call_operand.vmem [shape: bf16[128,128], index: 2, kind: input, shape index: {}]   ;;  %s518_s0 = inlined_call_operand.vmem [shape: f32[2,1,1,128], index: 0, kind: input, shape index: {}]   ;;  %s519_s3 = inlined_call_operand.vmem [shape: f32[2,1,128], index: 3, kind: output, shape index: {0}]   ;;  %s520_s4 = inlined_call_operand.vmem [shape: f32[2,1,128], index: 4, kind: output, shape index: {1}]  }
   0x1   :  { %357 = vmatprep.subr.bf16.mxu0 %v421_v0  ;;  %v401_v1 = vld [vmem:[%s516_s1 + $0x38] sm:$0xff]   ;;  %373 = vmatprep.mubr.msk.bf16.mxu0 %vm422_vm0, %v421_v0  ;;  %v402_v2 = vld [vmem:[%s516_s1 + $0x30] sm:$0xff]   ;;  %v403_v3 = vld [vmem:[%s516_s1 + $0x28] sm:$0xff]   ;;  %v424_v41 = vmov 1966171168  }
   0x2   :  { %377 = vmatprep.subr.bf16.mxu1 %v421_v0  ;;  %393 = vmatprep.mubr.msk.bf16.mxu1 %vm422_vm0, %v421_v0  ;;  %v404_v4 = vld [vmem:[%s516_s1 + $0x20] sm:$0xff]   ;;  %v409_v5 = vld [vmem:[%s517_s2 + $0x38] sm:$0xff]   ;;  %v410_v7 = vld [vmem:[%s517_s2 + $0x30] sm:$0xff]   ;;  %v256_v42 = vunpack.c.l.s4 %v424_v41  ;;  %v251_v43 = vand.u32 127, %v250_v40  ;;  %v259_v45 = vshrl.u32 %v250_v40, 7 }
   0x3   :  { %358 = vmatpush3.bf16.msra.mxu0 %v401_v1  ;;  %v18_v6 = vld [vmem:[%s518_s0 + $0x1] sm:$0x1]  ;;  %378 = vmatpush3.bf16.msra.mxu1 %v409_v5  ;;  %v405_v8 = vld [vmem:[%s516_s1 + $0x18] sm:$0xff]   ;;  %v17_v9 = vld [vmem:[%s518_s0] sm:$0x1] }
   0x4   :  { %359 = vmatprep.subr.bf16.mxu0 %v421_v0  ;;  %379 = vmatprep.subr.bf16.mxu1 %v421_v0  ;;  %v22_v10 = vpack.c.bf16 %v18_v6, %v18_v6  ;;  %v411_v11 = vld [vmem:[%s517_s2 + $0x28] sm:$0xff]   ;;  %v406_v12 = vld [vmem:[%s516_s1 + $0x10] sm:$0xff]   ;;  %v21_v13 = vpack.c.bf16 %v17_v9, %v17_v9  ;;  %v412_v15 = vld [vmem:[%s517_s2 + $0x20] sm:$0xff]   ;;  %v257_v44 = vunpack.c.0.s8 %v256_v42  ;;  %vm252_vm2 = vcmp.lt.s32.totalorder %v251_v43, 64 }
   0x5   :  { %v407_v16 = vld [vmem:[%s516_s1 + $0x8] sm:$0xff]   ;;  %v413_v19 = vld [vmem:[%s517_s2 + $0x18] sm:$0xff]   ;;  %v408_v20 = vld [vmem:[%s516_s1] sm:$0xff]  }
   0x6   :  { %v42_v14 = vunpack.c.l.b16 %v22_v10  ;;  %v41_v17 = vunpack.c.l.b16 %v21_v13  ;;  %v414_v22 = vld [vmem:[%s517_s2 + $0x10] sm:$0xff]   ;;  %v415_v24 = vld [vmem:[%s517_s2 + $0x8] sm:$0xff]   ;;  %v416_v25 = vld [vmem:[%s517_s2] sm:$0xff]   ;;  %v260_v46 = vsub.s32 %v257_v44, %v259_v45 }
   0x7   :  { %360 = vmatpush3.bf16.msra.mxu0 %v402_v2  ;;  %380 = vmatpush3.bf16.msra.mxu1 %v410_v7 }
   0x8   :  { %361 = vmatprep.subr.bf16.mxu0 %v421_v0  ;;  %381 = vmatprep.subr.bf16.mxu1 %v421_v0  ;;  %v43_v18 = vrot.slane %v42_v14, 7 }
   0xa   :  { %v45_v21 = vsel %vm44_vm1, %v43_v18, %v41_v17 }
   0xb   :  { %362 = vmatpush3.bf16.msra.mxu0 %v403_v3  ;;  %382 = vmatpush3.bf16.msra.mxu1 %v411_v11  ;;  %v46_v23 = vpack.c.b16 %v45_v21, %v45_v21 }
   0xc   :  { %363 = vmatprep.subr.bf16.mxu0 %v421_v0  ;;  %383 = vmatprep.subr.bf16.mxu1 %v421_v0 }
   0xf   :  { %364 = vmatpush3.bf16.msra.mxu0 %v404_v4  ;;  %384 = vmatpush3.bf16.msra.mxu1 %v412_v15 }
  0x10   :  { %365 = vmatprep.subr.bf16.mxu0 %v421_v0  ;;  %385 = vmatprep.subr.bf16.mxu1 %v421_v0 }
  0x13   :  { %366 = vmatpush3.bf16.msra.mxu0 %v405_v8  ;;  %386 = vmatpush3.bf16.msra.mxu1 %v413_v19 }
  0x14   :  { %367 = vmatprep.subr.bf16.mxu0 %v421_v0  ;;  %387 = vmatprep.subr.bf16.mxu1 %v421_v0 }
  0x17   :  { %368 = vmatpush3.bf16.msra.mxu0 %v406_v12  ;;  %388 = vmatpush3.bf16.msra.mxu1 %v414_v22 }
  0x18   :  { %369 = vmatprep.subr.bf16.mxu0 %v421_v0  ;;  %389 = vmatprep.subr.bf16.mxu1 %v421_v0 }
  0x1b   :  { %370 = vmatpush3.bf16.msra.mxu0 %v407_v16  ;;  %390 = vmatpush3.bf16.msra.mxu1 %v415_v24 }
  0x1c   :  { %371 = vmatprep.subr.bf16.mxu0 %v421_v0  ;;  %391 = vmatprep.subr.bf16.mxu1 %v421_v0 }
  0x1f   :  { %372 = vmatpush3.bf16.msra.mxu0 %v408_v20  ;;  %392 = vmatpush3.bf16.msra.mxu1 %v416_v25 }
  0x22   :  { %374 = vmatmul.mubr.bf16.vlgmr.msra.gmra.mxu0 %v46_v23 }
  0xe2   :  { %v130_v26 = vpop.f32.mrf.mxu0 }
  0xe3   :  { %v136_v27 = vmax.f32 %v130_v26, 0.0 }
  0xe4   :  { %v375_v28 = vpop.f32.mrf.mxu0 }
  0xe5   :  { %v137_v29 = vpack.c.bf16 %v136_v27, %v136_v27 }
  0xe6   :  { %v133_v30 = vpop.f32.mrf.mxu0 }
  0xe7   :  { %394 = vmatmul.mubr.bf16.vlgmr.msra.gmra.mxu1 %v137_v29 }
  0xe8   :  { %v376_v31 = vpop.f32.mrf.mxu0 }
 0x1a7   :  { %v236_v32 = vpop.f32.mrf.mxu1 }
 0x1a8   :  { %v334_v33 = vmul.f32 -1.442695, %v236_v32 }
 0x1a9   :  { %v395_v34 = vpop.f32.mrf.mxu1 }
 0x1aa   :  { %417 = vpow2.f32 %v334_v33 }
 0x1ab   :  { %v239_v35 = vpop.f32.mrf.mxu1 }
 0x1ad   :  { %v396_v36 = vpop.f32.mrf.mxu1 }
 0x1b7   :  { %v418_v37 = vpop.eup %417 }
 0x1b8   :  { %v245_v38 = vadd.f32 1.0, %v418_v37 }
 0x1ba   :  { %419 = vrcp.f32 %v245_v38 }
 0x1c7   :  { %v420_v39 = vpop.eup %419 }
 0x1c8   :  { %248 = vrot.lane.b32.xlu0 %v420_v39, %s423_s23 }
 0x23a   :  { %v249_v47 = vpop.permute.xlu0 %248 }
 0x23b   :  { %v253_v48 = vsel %vm252_vm2, %v420_v39, %v249_v47  ;;  %v281_v49 = vsub.f32 0.0, %v249_v47 }
 0x23c   :  { %v261_v50 = vrot.slane %v253_v48, %v260_v46 }
 0x23d   :  { %v282_v51 = vsel %vm252_vm2, %v281_v49, %v420_v39 }
 0x23e   :  { %v262_v52 = vcombine.high %v261_v50, %v261_v50  ;;  %335 = vst.sshfl [vmem:[%s519_s3] sm:$0x1 pattern:$0x73625140] %v261_v50  ;;  %v290_v53 = vrot.slane %v282_v51, %v260_v46 }
 0x240   :  { %336 = vst.sshfl [vmem:[%s519_s3 + $0x1] sm:$0x1 pattern:$0x73625140] %v262_v52  ;;  %v291_v54 = vcombine.high %v290_v53, %v290_v53 }
 0x241   :  { %337 = vst.sshfl [vmem:[%s520_s4] sm:$0x1 pattern:$0x73625140] %v290_v53 }
 0x242   :  { %338 = vst.sshfl [vmem:[%s520_s4 + $0x1] sm:$0x1 pattern:$0x73625140] %v291_v54 }

// kernel: bottleneck_forward.5
= control target key start
LH: loop header
LB: loop body
LE: loop exit
PB: predicated region body
PF: predicated region fallthrough
CT: control target
= control target key end

     0   :  { %s1292_s12 = smov 0   ;;  %s1294_s13 = smov 0   ;;  %s1416_s0 = inlined_call_operand.vmem [shape: bf16[2,16,16,128], index: 0, kind: input, shape index: {}]   ;;  %s1417_s1 = inlined_call_operand.vmem [shape: bf16[128,128], index: 1, kind: input, shape index: {}]   ;;  %s1418_s2 = inlined_call_operand.vmem [shape: bf16[2,16,16,128], index: 2, kind: output, shape index: {0}]   ;;  %s1419_s3 = inlined_call_operand.vmem [shape: f32[2,1,1,128], index: 3, kind: output, shape index: {1}]  }
   0x1   :  { %s1296_s14 = smov 0  }
   0x2 LB: > { %s26_s15 = sadd.s32 1, %s1266_s13  ;;  %p920_p0 = scmp.ge.s32.totalorder %s1270_s14, 1  ;;  %s1270_s14 = sphi %s1296_s14, %s14_s14   ;;  %s1266_s13 = sphi %s1294_s13, %s1421_s13   ;;  %s1262_s12 = sphi %s1292_s12, %s1420_s12  }
   0x3   : > { %p28_p1 = scmp.ge.s32.totalorder %s26_s15, 2  ;;  %p164_p2 = scmp.lt.s32.totalorder %s1270_s14, 3 }
   0x5   : > { %s1423_s15 = smov (%p28_p1, %s26_s15), 0  ;;  %p165_p3 = pnand %p920_p0, %p164_p2 }
   0x6   : > { %p205_p4 = scmp.lt.s32.totalorder (!%p165_p3), %s1262_s12, 1 }
   0x7   : > { %168 = sbr.rel (%p165_p3) target bundleno = 321 (0x141), region = 28 }
   0xc   : > { %v1224_v0 = vld [vmem:[%s1417_s1 + $0x38] sm:$0xff]   ;;  %v1225_v1 = vld [vmem:[%s1417_s1 + $0x30] sm:$0xff]   ;;  %s1425_s12 = smov (!%p205_p4, %s1262_s12), 1  ;;  %v1226_v2 = vld [vmem:[%s1417_s1 + $0x28] sm:$0xff]  }
   0xd   : > { %1136 = vmatprep.subr.bf16.mxu0 %v1224_v0  ;;  %1184 = vmatprep.subr.bf16.mxu1 %v1224_v0  ;;  %s983_s22 = sshll.u32 %s1425_s12, 7  ;;  %v1227_v3 = vld [vmem:[%s1417_s1 + $0x20] sm:$0xff]   ;;  %v1228_v5 = vld [vmem:[%s1417_s1 + $0x18] sm:$0xff]   ;;  %v1229_v6 = vld [vmem:[%s1417_s1 + $0x10] sm:$0xff]   ;;  %s231_s18 = scalar_lea.vmem %s1419_s3, %s1425_s12 }
   0xe   : > { %1137 = vmatpush3.bf16.msra.mxu0 %v1224_v0  ;;  %1192 = vmatpush3.bf16.msra.mxu1 %v1224_v0  ;;  %s1327_s25 = scalar_lea.vmem %s1416_s0, %s983_s22  ;;  %v1230_v8 = vld [vmem:[%s1417_s1 + $0x8] sm:$0xff]   ;;  %v1231_v9 = vld [vmem:[%s1417_s1] sm:$0xff]   ;;  %s1369_s11 = scalar_lea.vmem %s1418_s2, %s983_s22 }
   0xf   : > { %1138 = vmatprep.subr.bf16.mxu0 %v1225_v1  ;;  %1185 = vmatprep.subr.bf16.mxu1 %v1225_v1  ;;  %v1232_v4 = vld [vmem:[%s1327_s25] sm:$0xff]   ;;  %v1233_v10 = vld [vmem:[%s1327_s25 + $0x8] sm:$0xff]   ;;  %v1234_v12 = vld [vmem:[%s1327_s25 + $0x10] sm:$0xff]  }
  0x10   : > { %1152 = vmatprep.mubr.bf16.mxu0 %v1232_v4  ;;  %v1240_v7 = vld [vmem:[%s1327_s25 + $0x40] sm:$0xff]   ;;  %v1241_v11 = vld [vmem:[%s1327_s25 + $0x48] sm:$0xff]   ;;  %v1242_v13 = vld [vmem:[%s1327_s25 + $0x50] sm:$0xff]  }
  0x11   : > { %1168 = vmatprep.mubr.bf16.mxu1 %v1240_v7  ;;  %v1235_v14 = vld [vmem:[%s1327_s25 + $0x18] sm:$0xff]   ;;  %v1236_v16 = vld [vmem:[%s1327_s25 + $0x20] sm:$0xff]   ;;  %v1237_v18 = vld [vmem:[%s1327_s25 + $0x28] sm:$0xff]  }
  0x12   : > { %1139 = vmatpush3.bf16.msra.mxu0 %v1225_v1  ;;  %1193 = vmatpush3.bf16.msra.mxu1 %v1225_v1  ;;  %v1243_v15 = vld [vmem:[%s1327_s25 + $0x58] sm:$0xff]   ;;  %v1244_v17 = vld [vmem:[%s1327_s25 + $0x60] sm:$0xff]   ;;  %v1245_v19 = vld [vmem:[%s1327_s25 + $0x68] sm:$0xff]  }
  0x13   : > { %1140 = vmatprep.subr.bf16.mxu0 %v1226_v2  ;;  %1186 = vmatprep.subr.bf16.mxu1 %v1226_v2  ;;  %v1238_v20 = vld [vmem:[%s1327_s25 + $0x30] sm:$0xff]   ;;  %v1239_v22 = vld [vmem:[%s1327_s25 + $0x38] sm:$0xff]  }
  0x14   : > { %v1246_v21 = vld [vmem:[%s1327_s25 + $0x70] sm:$0xff]   ;;  %v1247_v23 = vld [vmem:[%s1327_s25 + $0x78] sm:$0xff]  }
  0x16   : > { %1141 = vmatpush3.bf16.msra.mxu0 %v1226_v2  ;;  %1194 = vmatpush3.bf16.msra.mxu1 %v1226_v2 }
  0x17   : > { %1142 = vmatprep.subr.bf16.mxu0 %v1227_v3  ;;  %1187 = vmatprep.subr.bf16.mxu1 %v1227_v3 }
  0x1a   : > { %1143 = vmatpush3.bf16.msra.mxu0 %v1227_v3  ;;  %1195 = vmatpush3.bf16.msra.mxu1 %v1227_v3 }
  0x1b   : > { %1144 = vmatprep.subr.bf16.mxu0 %v1228_v5  ;;  %1188 = vmatprep.subr.bf16.mxu1 %v1228_v5 }
  0x1e   : > { %1145 = vmatpush3.bf16.msra.mxu0 %v1228_v5  ;;  %1196 = vmatpush3.bf16.msra.mxu1 %v1228_v5 }
  0x1f   : > { %1146 = vmatprep.subr.bf16.mxu0 %v1229_v6  ;;  %1189 = vmatprep.subr.bf16.mxu1 %v1229_v6 }
  0x22   : > { %1147 = vmatpush3.bf16.msra.mxu0 %v1229_v6  ;;  %1197 = vmatpush3.bf16.msra.mxu1 %v1229_v6 }
  0x23   : > { %1148 = vmatprep.subr.bf16.mxu0 %v1230_v8  ;;  %1190 = vmatprep.subr.bf16.mxu1 %v1230_v8 }
  0x26   : > { %1149 = vmatpush3.bf16.msra.mxu0 %v1230_v8  ;;  %1198 = vmatpush3.bf16.msra.mxu1 %v1230_v8 }
  0x27   : > { %1150 = vmatprep.subr.bf16.mxu0 %v1231_v9  ;;  %1191 = vmatprep.subr.bf16.mxu1 %v1231_v9 }
  0x2a   : > { %1151 = vmatpush3.bf16.msra.mxu0 %v1231_v9  ;;  %1199 = vmatpush3.bf16.msra.mxu1 %v1231_v9 }
  0x2d   : > { %1153 = vmatmul.mubr.bf16.vlgmr.msra.gmra.mxu0 %v1233_v10  ;;  %1169 = vmatmul.mubr.bf16.vlgmr.msra.gmra.mxu1 %v1241_v11 }
  0x2e   : > { %1156 = vmatprep.mubr.bf16.mxu0 %v1234_v12  ;;  %1172 = vmatprep.mubr.bf16.mxu1 %v1242_v13 }
  0x35   : > { %1157 = vmatmul.mubr.bf16.gmra.mxu0 %v1235_v14  ;;  %1173 = vmatmul.mubr.bf16.gmra.mxu1 %v1243_v15 }
  0x36   : > { %1160 = vmatprep.mubr.bf16.mxu0 %v1236_v16  ;;  %1176 = vmatprep.mubr.bf16.mxu1 %v1244_v17 }
  0x3d   : > { %1161 = vmatmul.mubr.bf16.gmra.mxu0 %v1237_v18  ;;  %1177 = vmatmul.mubr.bf16.gmra.mxu1 %v1245_v19 }
  0x3e   : > { %1164 = vmatprep.mubr.bf16.mxu0 %v1238_v20  ;;  %1180 = vmatprep.mubr.bf16.mxu1 %v1246_v21 }
  0x45   : > { %1165 = vmatmul.mubr.bf16.gmra.mxu0 %v1239_v22  ;;  %1181 = vmatmul.mubr.bf16.gmra.mxu1 %v1247_v23 }
  0xed   : > { %v1154_v24 = vpop.f32.mrf.mxu0  ;;  %v1360_v25 = vpop.f32.mrf.mxu1 }
  0xef   : > { %v459_v26 = vpop.f32.mrf.mxu0  ;;  %v1362_v27 = vpop.f32.mrf.mxu1 }
  0xf1   : > { %v1155_v28 = vpop.f32.mrf.mxu0  ;;  %v1371_v29 = vpop.f32.mrf.mxu1 }
  0xf2   : > { %v1025_v30 = vpack.c.bf16 %v1155_v28, %v1154_v24  ;;  %v1065_v31 = vpack.c.bf16 %v1371_v29, %v1360_v25 }
  0xf3   : > { %v462_v32 = vpop.f32.mrf.mxu0  ;;  %v1375_v33 = vpop.f32.mrf.mxu1 }
  0xf4   : > { %1097 = vst [vmem:[%s1369_s11 + $0x8] sm:$0xff] %v1025_v30   ;;  %v1020_v34 = vpack.c.bf16 %v462_v32, %v459_v26  ;;  %v746_v35 = vadd.f32 %v462_v32, %v459_v26  ;;  %1105 = vst [vmem:[%s1369_s11 + $0x48] sm:$0xff] %v1065_v31   ;;  %v1060_v36 = vpack.c.bf16 %v1375_v33, %v1362_v27 }
  0xf5   : > { %v1158_v37 = vpop.f32.mrf.mxu0  ;;  %v1381_v38 = vpop.f32.mrf.mxu1 }
  0xf6   : > { %1021 = vst [vmem:[%s1369_s11] sm:$0xff] %v1020_v34   ;;  %v747_v39 = vadd.f32 %v1154_v24, %v746_v35  ;;  %1104 = vst [vmem:[%s1369_s11 + $0x40] sm:$0xff] %v1060_v36  }
  0xf7   : > { %v475_v40 = vpop.f32.mrf.mxu0  ;;  %v539_v41 = vpop.f32.mrf.mxu1 }
  0xf8   : > { %v748_v42 = vadd.f32 %v1155_v28, %v747_v39 }
  0xf9   : > { %v1159_v43 = vpop.f32.mrf.mxu0  ;;  %v1175_v44 = vpop.f32.mrf.mxu1 }
  0xfa   : > { %v749_v45 = vadd.f32 %v748_v42, %v475_v40  ;;  %v1035_v46 = vpack.c.bf16 %v1159_v43, %v1158_v37  ;;  %v1075_v47 = vpack.c.bf16 %v1175_v44, %v1381_v38 }
  0xfb   : > { %v478_v48 = vpop.f32.mrf.mxu0  ;;  %v542_v49 = vpop.f32.mrf.mxu1 }
  0xfc   : > { %1099 = vst [vmem:[%s1369_s11 + $0x18] sm:$0xff] %v1035_v46   ;;  %v1030_v50 = vpack.c.bf16 %v478_v48, %v475_v40  ;;  %v750_v51 = vadd.f32 %v749_v45, %v478_v48  ;;  %1107 = vst [vmem:[%s1369_s11 + $0x58] sm:$0xff] %v1075_v47   ;;  %v1070_v52 = vpack.c.bf16 %v542_v49, %v539_v41 }
  0xfd   : > { %v1162_v53 = vpop.f32.mrf.mxu0  ;;  %v1178_v54 = vpop.f32.mrf.mxu1 }
  0xfe   : > { %1098 = vst [vmem:[%s1369_s11 + $0x10] sm:$0xff] %v1030_v50   ;;  %v751_v55 = vadd.f32 %v1158_v37, %v750_v51  ;;  %1106 = vst [vmem:[%s1369_s11 + $0x50] sm:$0xff] %v1070_v52  }
  0xff   : > { %v491_v56 = vpop.f32.mrf.mxu0  ;;  %v555_v57 = vpop.f32.mrf.mxu1 }
 0x100   : > { %v752_v58 = vadd.f32 %v1159_v43, %v751_v55 }
 0x101   : > { %v1163_v59 = vpop.f32.mrf.mxu0  ;;  %v1179_v60 = vpop.f32.mrf.mxu1 }
 0x102   : > { %v753_v61 = vadd.f32 %v752_v58, %v491_v56  ;;  %v1045_v62 = vpack.c.bf16 %v1163_v59, %v1162_v53  ;;  %v1085_v63 = vpack.c.bf16 %v1179_v60, %v1178_v54 }
 0x103   : > { %v494_v0 = vpop.f32.mrf.mxu0  ;;  %v558_v1 = vpop.f32.mrf.mxu1 }
 0x104   : > { %1101 = vst [vmem:[%s1369_s11 + $0x28] sm:$0xff] %v1045_v62   ;;  %v1040_v2 = vpack.c.bf16 %v494_v0, %v491_v56  ;;  %v754_v3 = vadd.f32 %v753_v61, %v494_v0  ;;  %1109 = vst [vmem:[%s1369_s11 + $0x68] sm:$0xff] %v1085_v63   ;;  %v1080_v4 = vpack.c.bf16 %v558_v1, %v555_v57 }
 0x105   : > { %v1166_v5 = vpop.f32.mrf.mxu0  ;;  %v1182_v6 = vpop.f32.mrf.mxu1 }
 0x106   : > { %1100 = vst [vmem:[%s1369_s11 + $0x20] sm:$0xff] %v1040_v2   ;;  %v755_v7 = vadd.f32 %v1162_v53, %v754_v3  ;;  %1108 = vst [vmem:[%s1369_s11 + $0x60] sm:$0xff] %v1080_v4  }
 0x107   : > { %v507_v8 = vpop.f32.mrf.mxu0  ;;  %v571_v9 = vpop.f32.mrf.mxu1 }
 0x108   : > { %v756_v10 = vadd.f32 %v1163_v59, %v755_v7 }
 0x109   : > { %v1167_v11 = vpop.f32.mrf.mxu0  ;;  %v1183_v12 = vpop.f32.mrf.mxu1 }
 0x10a   : > { %v757_v13 = vadd.f32 %v756_v10, %v507_v8  ;;  %v1055_v14 = vpack.c.bf16 %v1167_v11, %v1166_v5  ;;  %v1095_v15 = vpack.c.bf16 %v1183_v12, %v1182_v6 }
 0x10b   : > { %v510_v16 = vpop.f32.mrf.mxu0  ;;  %v574_v17 = vpop.f32.mrf.mxu1 }
 0x10c   : > { %1103 = vst [vmem:[%s1369_s11 + $0x38] sm:$0xff] %v1055_v14   ;;  %v1050_v18 = vpack.c.bf16 %v510_v16, %v507_v8  ;;  %v758_v19 = vadd.f32 %v757_v13, %v510_v16  ;;  %1111 = vst [vmem:[%s1369_s11 + $0x78] sm:$0xff] %v1095_v15   ;;  %v1090_v20 = vpack.c.bf16 %v574_v17, %v571_v9 }
 0x10e   : > { %1102 = vst [vmem:[%s1369_s11 + $0x30] sm:$0xff] %v1050_v18   ;;  %v759_v21 = vadd.f32 %v1166_v5, %v758_v19  ;;  %1110 = vst [vmem:[%s1369_s11 + $0x70] sm:$0xff] %v1090_v20  }
 0x110   : > { %v760_v22 = vadd.f32 %v1167_v11, %v759_v21 }
 0x112   : > { %v761_v23 = vadd.f32 %v760_v22, %v1362_v27 }
 0x114   : > { %v762_v24 = vadd.f32 %v761_v23, %v1375_v33 }
 0x116   : > { %v763_v26 = vadd.f32 %v1360_v25, %v762_v24 }
 0x118   : > { %v764_v28 = vadd.f32 %v1371_v29, %v763_v26 }
 0x11a   : > { %v765_v30 = vadd.f32 %v764_v28, %v539_v41 }
 0x11c   : > { %v766_v31 = vadd.f32 %v765_v30, %v542_v49 }
 0x11e   : > { %v767_v32 = vadd.f32 %v1381_v38, %v766_v31 }
 0x120   : > { %v768_v34 = vadd.f32 %v1175_v44, %v767_v32 }
 0x122   : > { %v769_v35 = vadd.f32 %v768_v34, %v555_v57 }
 0x124   : > { %v770_v36 = vadd.f32 %v769_v35, %v558_v1 }
 0x126   : > { %v771_v37 = vadd.f32 %v1178_v54, %v770_v36 }
 0x128   : > { %v772_v39 = vadd.f32 %v1179_v60, %v771_v37 }
 0x12a   : > { %v773_v40 = vadd.f32 %v772_v39, %v571_v9 }
 0x12c   : > { %v774_v42 = vadd.f32 %v773_v40, %v574_v17 }
 0x12e   : > { %v775_v43 = vadd.f32 %v1182_v6, %v774_v42 }
 0x130   : > { %v776_v27 = vadd.f32 %v1183_v12, %v775_v43 }
 0x132   : > { %v777_v45 = vrot.slane %v776_v27, 4 }
 0x134   : > { %v778_v33 = vadd.f32 %v777_v45, %v776_v27 }
 0x136   : > { %v779_v46 = vrot.slane %v778_v33, 2 }
 0x138   : > { %v780_v25 = vadd.f32 %v779_v46, %v778_v33 }
 0x13a   : > { %v781_v47 = vrot.slane %v780_v25, 1 }
 0x13c   : > { %v782_v29 = vadd.f32 %v781_v47, %v780_v25 }
 0x13e   : > { %v783_v38 = vmul.f32 0.00390625, %v782_v29 }
 0x140   : > { %784 = vst [vmem:[%s231_s18] sm:$0x1] %v783_v38 }
 0x141 PF: > { %s14_s14 = sadd.s32 1, %s1270_s14   ;;  %s1420_s12 = smov %s1266_s13 }
 0x142   : > { %p11_p5 = scmp.ge.s32.totalorder %s14_s14, 4   ;;  %s1421_s13 = smov %s1423_s15 }
 0x144   :  { %13 = sbr.rel (!%p11_p5) target bundleno = 2 (0x2), region = 70 }

// kernel: bottleneck_forward.7
= control target key start
LH: loop header
LB: loop body
LE: loop exit
PB: predicated region body
PF: predicated region fallthrough
CT: control target
= control target key end

     0   :  { %s871_s12 = smov 0   ;;  %s873_s13 = smov 0   ;;  %s1148_s0 = inlined_call_operand.vmem [shape: bf16[2,16,16,128], index: 0, kind: input, shape index: {}]   ;;  %s1149_s1 = inlined_call_operand.vmem [shape: f32[2,1,128], index: 1, kind: input, shape index: {}]   ;;  %s1150_s2 = inlined_call_operand.vmem [shape: f32[2,1,128], index: 2, kind: input, shape index: {}]   ;;  %s1151_s3 = inlined_call_operand.vmem [shape: f32[2,16,16,128], index: 3, kind: output, shape index: {}]  }
   0x1   :  { %s875_s14 = smov 0  }
   0x2 LB: > { %s25_s15 = sadd.s32 1, %s844_s13  ;;  %p631_p0 = scmp.ge.s32.totalorder %s848_s14, 1  ;;  %s848_s14 = sphi %s875_s14, %s13_s14   ;;  %s844_s13 = sphi %s873_s13, %s1153_s13   ;;  %s840_s12 = sphi %s871_s12, %s1152_s12  }
   0x3   : > { %p27_p1 = scmp.ge.s32.totalorder %s25_s15, 2  ;;  %p175_p2 = scmp.lt.s32.totalorder %s848_s14, 3 }
   0x5   : > { %s1155_s15 = smov (%p27_p1, %s25_s15), 0  ;;  %p176_p3 = pnand %p631_p0, %p175_p2 }
   0x6   : > { %p216_p4 = scmp.lt.s32.totalorder (!%p176_p3), %s840_s12, 1  ;;  %s850_s23 = smov (!%p176_p3), 64  }
   0x7   : > { %179 = sbr.rel (%p176_p3) target bundleno = 171 (0xab), region = 32 }
   0xc   : > { %s1157_s12 = smov (!%p216_p4, %s840_s12), 1 }
   0xd   : > { %s640_s16 = sshll.u32 %s1157_s12, 7  ;;  %s228_s19 = scalar_lea.vmem %s1149_s1, %s1157_s12 }
   0xe   : > { %s899_s22 = scalar_lea.vmem %s1148_s0, %s640_s16  ;;  %v902_v1 = vld [vmem:[%s228_s19] ss:$0 sm:$0xff]  ;;  %s231_s26 = scalar_lea.vmem %s1150_s2, %s1157_s12 }
   0xf   : > { %v707_v0 = vld [vmem:[%s899_s22 + $0x10] sm:$0xff]   ;;  %v643_v2 = vld [vmem:[%s899_s22] sm:$0xff]   ;;  %v708_v7 = vld [vmem:[%s899_s22 + $0x18] sm:$0xff]   ;;  %s641_s27 = sshll.u32 %s1157_s12, 8 }
  0x10   : > { %v652_v3 = vunpack.c.l.bf16 %v707_v0  ;;  %v653_v4 = vunpack.c.h.bf16 %v707_v0  ;;  %v644_v5 = vunpack.c.l.bf16 %v643_v2  ;;  %v645_v6 = vunpack.c.h.bf16 %v643_v2  ;;  %v706_v8 = vld [vmem:[%s899_s22 + $0x8] sm:$0xff]   ;;  %v709_v18 = vld [vmem:[%s899_s22 + $0x20] sm:$0xff]   ;;  %v712_v19 = vld [vmem:[%s899_s22 + $0x38] sm:$0xff]   ;;  %s1043_s30 = scalar_lea.vmem %s1151_s3, %s641_s27 }
  0x11   : > { %v656_v9 = vunpack.c.l.bf16 %v708_v7  ;;  %v657_v10 = vunpack.c.h.bf16 %v708_v7  ;;  %v648_v11 = vunpack.c.l.bf16 %v706_v8  ;;  %v649_v12 = vunpack.c.h.bf16 %v706_v8  ;;  %v710_v13 = vld [vmem:[%s899_s22 + $0x28] sm:$0xff]   ;;  %v711_v22 = vld [vmem:[%s899_s22 + $0x30] sm:$0xff]   ;;  %v713_v28 = vld [vmem:[%s899_s22 + $0x40] sm:$0xff]  }
  0x12   : > { %v909_v14 = vmul.f32 %v653_v4, %v902_v1  ;;  %v756_v15 = vpack.i.bf16 %v653_v4, %v652_v3  ;;  %v912_v16 = vmul.f32 %v652_v3, %v902_v1  ;;  %v915_v17 = vmul.f32 %v645_v6, %v902_v1  ;;  %v714_v23 = vld [vmem:[%s899_s22 + $0x48] sm:$0xff]   ;;  %v716_v39 = vld [vmem:[%s899_s22 + $0x58] sm:$0xff]   ;;  %v715_v41 = vld [vmem:[%s899_s22 + $0x50] sm:$0xff]  }
  0x13   : > { %v746_v20 = vpack.i.bf16 %v645_v6, %v644_v5  ;;  %v920_v21 = vmul.f32 %v644_v5, %v902_v1  ;;  %v761_v24 = vpack.i.bf16 %v657_v10, %v656_v9  ;;  %v751_v25 = vpack.i.bf16 %v649_v12, %v648_v11  ;;  %v718_v43 = vld [vmem:[%s899_s22 + $0x68] sm:$0xff]   ;;  %v717_v48 = vld [vmem:[%s899_s22 + $0x60] sm:$0xff]  }
  0x14   : > { %757 = vrot.lane.b32.xlu1 %v756_v15, %s850_s23  ;;  %v664_v26 = vunpack.c.l.bf16 %v710_v13  ;;  %v665_v27 = vunpack.c.h.bf16 %v710_v13  ;;  %v660_v29 = vunpack.c.l.bf16 %v709_v18  ;;  %v661_v30 = vunpack.c.h.bf16 %v709_v18 }
  0x15   : > { %747 = vrot.lane.b32.xlu0 %v746_v20, %s850_s23  ;;  %v672_v31 = vunpack.c.l.bf16 %v712_v19  ;;  %v673_v32 = vunpack.c.h.bf16 %v712_v19  ;;  %v668_v33 = vunpack.c.l.bf16 %v711_v22  ;;  %v669_v34 = vunpack.c.h.bf16 %v711_v22 }
  0x16   : > { %v680_v35 = vunpack.c.l.bf16 %v714_v23  ;;  %v681_v36 = vunpack.c.h.bf16 %v714_v23  ;;  %v676_v37 = vunpack.c.l.bf16 %v713_v28  ;;  %v677_v38 = vunpack.c.h.bf16 %v713_v28 }
  0x17   : > { %v771_v40 = vpack.i.bf16 %v665_v27, %v664_v26  ;;  %v766_v42 = vpack.i.bf16 %v661_v30, %v660_v29  ;;  %v781_v44 = vpack.i.bf16 %v673_v32, %v672_v31  ;;  %v776_v45 = vpack.i.bf16 %v669_v34, %v668_v33 }
  0x18   : > { %762 = vrot.lane.b32.xlu1 %v761_v24, %s850_s23  ;;  %v791_v46 = vpack.i.bf16 %v681_v36, %v680_v35  ;;  %v688_v47 = vunpack.c.l.bf16 %v716_v39  ;;  %v786_v49 = vpack.i.bf16 %v677_v38, %v676_v37  ;;  %v689_v50 = vunpack.c.h.bf16 %v716_v39 }
  0x19   : > { %752 = vrot.lane.b32.xlu0 %v751_v25, %s850_s23  ;;  %v684_v51 = vunpack.c.l.bf16 %v715_v41  ;;  %v685_v52 = vunpack.c.h.bf16 %v715_v41  ;;  %v696_v53 = vunpack.c.l.bf16 %v718_v43  ;;  %v697_v54 = vunpack.c.h.bf16 %v718_v43 }
  0x1a   : > { %v935_v55 = vmul.f32 %v656_v9, %v902_v1  ;;  %v938_v56 = vmul.f32 %v657_v10, %v902_v1  ;;  %v692_v57 = vunpack.c.l.bf16 %v717_v48  ;;  %v942_v58 = vmul.f32 %v648_v11, %v902_v1  ;;  %v720_v10 = vld [vmem:[%s899_s22 + $0x78] sm:$0xff]   ;;  %v719_v11 = vld [vmem:[%s899_s22 + $0x70] sm:$0xff]  }
  0x1b   : > { %v945_v59 = vmul.f32 %v649_v12, %v902_v1  ;;  %v948_v60 = vmul.f32 %v664_v26, %v902_v1  ;;  %v693_v61 = vunpack.c.h.bf16 %v717_v48  ;;  %v951_v62 = vmul.f32 %v665_v27, %v902_v1 }
  0x1c   : > { %772 = vrot.lane.b32.xlu1 %v771_v40, %s850_s23  ;;  %v954_v63 = vmul.f32 %v660_v29, %v902_v1  ;;  %v957_v0 = vmul.f32 %v661_v30, %v902_v1  ;;  %v960_v2 = vmul.f32 %v672_v31, %v902_v1  ;;  %v963_v3 = vmul.f32 %v673_v32, %v902_v1 }
  0x1d   : > { %767 = vrot.lane.b32.xlu0 %v766_v42, %s850_s23  ;;  %v966_v4 = vmul.f32 %v668_v33, %v902_v1  ;;  %v969_v5 = vmul.f32 %v669_v34, %v902_v1  ;;  %v973_v6 = vmul.f32 %v680_v35, %v902_v1  ;;  %v976_v7 = vmul.f32 %v681_v36, %v902_v1 }
  0x1e   : > { %v979_v8 = vmul.f32 %v676_v37, %v902_v1  ;;  %v982_v9 = vmul.f32 %v677_v38, %v902_v1  ;;  %v988_v12 = vmul.f32 %v688_v47, %v902_v1  ;;  %v991_v13 = vmul.f32 %v689_v50, %v902_v1 }
  0x1f   : > { %v994_v15 = vmul.f32 %v684_v51, %v902_v1  ;;  %v997_v18 = vmul.f32 %v685_v52, %v902_v1  ;;  %v1000_v19 = vmul.f32 %v696_v53, %v902_v1  ;;  %v1003_v20 = vmul.f32 %v697_v54, %v902_v1 }
  0x20   : > { %782 = vrot.lane.b32.xlu1 %v781_v44, %s850_s23  ;;  %v1006_v22 = vmul.f32 %v692_v57, %v902_v1  ;;  %v1009_v23 = vmul.f32 %v693_v61, %v902_v1  ;;  %v801_v24 = vpack.i.bf16 %v689_v50, %v688_v47  ;;  %v704_v25 = vunpack.c.l.bf16 %v720_v10 }
  0x21   : > { %777 = vrot.lane.b32.xlu0 %v776_v45, %s850_s23  ;;  %v705_v26 = vunpack.c.h.bf16 %v720_v10  ;;  %v700_v27 = vunpack.c.l.bf16 %v719_v11  ;;  %v701_v28 = vunpack.c.h.bf16 %v719_v11  ;;  %v796_v29 = vpack.i.bf16 %v685_v52, %v684_v51 }
  0x22   : > { %v1014_v30 = vmul.f32 %v704_v25, %v902_v1  ;;  %v811_v34 = vpack.i.bf16 %v697_v54, %v696_v53  ;;  %v806_v35 = vpack.i.bf16 %v693_v61, %v692_v57 }
  0x23   : > { %v1017_v31 = vmul.f32 %v705_v26, %v902_v1  ;;  %v1020_v32 = vmul.f32 %v700_v27, %v902_v1  ;;  %v1023_v33 = vmul.f32 %v701_v28, %v902_v1  ;;  %v821_v36 = vpack.i.bf16 %v705_v26, %v704_v25  ;;  %v1035_v1 = vld [vmem:[%s231_s26] ss:$0 sm:$0xff] }
  0x24   : > { %792 = vrot.lane.b32.xlu1 %v791_v46, %s850_s23  ;;  %v816_v37 = vpack.i.bf16 %v701_v28, %v700_v27 }
  0x25   : > { %787 = vrot.lane.b32.xlu0 %v786_v49, %s850_s23 }
  0x28   : > { %802 = vrot.lane.b32.xlu1 %v801_v24, %s850_s23 }
  0x29   : > { %797 = vrot.lane.b32.xlu0 %v796_v29, %s850_s23 }
  0x2c   : > { %812 = vrot.lane.b32.xlu1 %v811_v34, %s850_s23 }
  0x2d   : > { %807 = vrot.lane.b32.xlu0 %v806_v35, %s850_s23 }
  0x30   : > { %822 = vrot.lane.b32.xlu1 %v821_v36, %s850_s23 }
  0x31   : > { %817 = vrot.lane.b32.xlu0 %v816_v37, %s850_s23 }
  0x86   : > { %v758_v38 = vpop.permute.xlu1 %757 }
  0x87   : > { %v760_v39 = vunpack.i.h.bf16 %v758_v38  ;;  %v759_v40 = vunpack.i.l.bf16 %v758_v38  ;;  %v748_v41 = vpop.permute.xlu0 %747 }
  0x88   : > { %v750_v42 = vunpack.i.h.bf16 %v748_v41  ;;  %v749_v43 = vunpack.i.l.bf16 %v748_v41 }
  0x89   : > { %v422_v44 = vmul.f32 %v760_v39, %v1035_v1  ;;  %v421_v45 = vmul.f32 %v759_v40, %v1035_v1 }
  0x8a   : > { %v418_v46 = vmul.f32 %v750_v42, %v1035_v1  ;;  %v417_v47 = vmul.f32 %v749_v43, %v1035_v1  ;;  %v763_v48 = vpop.permute.xlu1 %762 }
  0x8b   : > { %v454_v49 = vadd.f32 %v422_v44, %v909_v14  ;;  %v453_v50 = vadd.f32 %v421_v45, %v912_v16  ;;  %v765_v51 = vunpack.i.h.bf16 %v763_v48  ;;  %v764_v52 = vunpack.i.l.bf16 %v763_v48  ;;  %v753_v53 = vpop.permute.xlu0 %752 }
  0x8c   : > { %v450_v54 = vadd.f32 %v418_v46, %v915_v17  ;;  %v449_v57 = vadd.f32 %v417_v47, %v920_v21  ;;  %v755_v61 = vunpack.i.h.bf16 %v753_v53  ;;  %v754_v10 = vunpack.i.l.bf16 %v753_v53 }
  0x8d   : > { %486 = vst [vmem:[%s1043_s30 + $0x28] sm:$0xff] %v454_v49  ;;  %485 = vst [vmem:[%s1043_s30 + $0x20] sm:$0xff] %v453_v50  ;;  %v424_v11 = vmul.f32 %v765_v51, %v1035_v1  ;;  %v423_v24 = vmul.f32 %v764_v52, %v1035_v1 }
  0x8e   : > { %482 = vst [vmem:[%s1043_s30 + $0x8] sm:$0xff] %v450_v54  ;;  %481 = vst [vmem:[%s1043_s30] sm:$0xff] %v449_v57  ;;  %v420_v14 = vmul.f32 %v755_v61, %v1035_v1  ;;  %v419_v16 = vmul.f32 %v754_v10, %v1035_v1  ;;  %v773_v17 = vpop.permute.xlu1 %772 }
  0x8f   : > { %v456_v21 = vadd.f32 %v424_v11, %v938_v56  ;;  %v455_v25 = vadd.f32 %v423_v24, %v935_v55  ;;  %v775_v26 = vunpack.i.h.bf16 %v773_v17  ;;  %v774_v27 = vunpack.i.l.bf16 %v773_v17  ;;  %v768_v28 = vpop.permute.xlu0 %767 }
  0x90   : > { %v452_v29 = vadd.f32 %v420_v14, %v945_v59  ;;  %v451_v34 = vadd.f32 %v419_v16, %v942_v58  ;;  %v770_v35 = vunpack.i.h.bf16 %v768_v28  ;;  %v769_v36 = vunpack.i.l.bf16 %v768_v28 }
  0x91   : > { %488 = vst [vmem:[%s1043_s30 + $0x38] sm:$0xff] %v456_v21  ;;  %487 = vst [vmem:[%s1043_s30 + $0x30] sm:$0xff] %v455_v25  ;;  %v428_v37 = vmul.f32 %v775_v26, %v1035_v1  ;;  %v427_v38 = vmul.f32 %v774_v27, %v1035_v1 }
  0x92   : > { %484 = vst [vmem:[%s1043_s30 + $0x18] sm:$0xff] %v452_v29  ;;  %483 = vst [vmem:[%s1043_s30 + $0x10] sm:$0xff] %v451_v34  ;;  %v426_v55 = vmul.f32 %v770_v35, %v1035_v1  ;;  %v425_v56 = vmul.f32 %v769_v36, %v1035_v1  ;;  %v783_v59 = vpop.permute.xlu1 %782 }
  0x93   : > { %v460_v58 = vadd.f32 %v428_v37, %v951_v62  ;;  %v459_v39 = vadd.f32 %v427_v38, %v948_v60  ;;  %v785_v40 = vunpack.i.h.bf16 %v783_v59  ;;  %v784_v41 = vunpack.i.l.bf16 %v783_v59  ;;  %v778_v42 = vpop.permute.xlu0 %777 }
  0x94   : > { %v458_v43 = vadd.f32 %v426_v55, %v957_v0  ;;  %v457_v44 = vadd.f32 %v425_v56, %v954_v63  ;;  %v780_v45 = vunpack.i.h.bf16 %v778_v42  ;;  %v779_v46 = vunpack.i.l.bf16 %v778_v42 }
  0x95   : > { %492 = vst [vmem:[%s1043_s30 + $0x58] sm:$0xff] %v460_v58  ;;  %491 = vst [vmem:[%s1043_s30 + $0x50] sm:$0xff] %v459_v39  ;;  %v432_v47 = vmul.f32 %v785_v40, %v1035_v1  ;;  %v431_v48 = vmul.f32 %v784_v41, %v1035_v1 }
  0x96   : > { %490 = vst [vmem:[%s1043_s30 + $0x48] sm:$0xff] %v458_v43  ;;  %489 = vst [vmem:[%s1043_s30 + $0x40] sm:$0xff] %v457_v44  ;;  %v430_v60 = vmul.f32 %v780_v45, %v1035_v1  ;;  %v429_v62 = vmul.f32 %v779_v46, %v1035_v1  ;;  %v793_v0 = vpop.permute.xlu1 %792 }
  0x97   : > { %v464_v63 = vadd.f32 %v432_v47, %v963_v3  ;;  %v463_v49 = vadd.f32 %v431_v48, %v960_v2  ;;  %v795_v50 = vunpack.i.h.bf16 %v793_v0  ;;  %v794_v51 = vunpack.i.l.bf16 %v793_v0  ;;  %v788_v52 = vpop.permute.xlu0 %787 }
  0x98   : > { %v462_v53 = vadd.f32 %v430_v60, %v969_v5  ;;  %v461_v54 = vadd.f32 %v429_v62, %v966_v4  ;;  %v790_v57 = vunpack.i.h.bf16 %v788_v52  ;;  %v789_v61 = vunpack.i.l.bf16 %v788_v52 }
  0x99   : > { %496 = vst [vmem:[%s1043_s30 + $0x78] sm:$0xff] %v464_v63  ;;  %495 = vst [vmem:[%s1043_s30 + $0x70] sm:$0xff] %v463_v49  ;;  %v436_v10 = vmul.f32 %v795_v50, %v1035_v1  ;;  %v435_v11 = vmul.f32 %v794_v51, %v1035_v1 }
  0x9a   : > { %494 = vst [vmem:[%s1043_s30 + $0x68] sm:$0xff] %v462_v53  ;;  %493 = vst [vmem:[%s1043_s30 + $0x60] sm:$0xff] %v461_v54  ;;  %v434_v2 = vmul.f32 %v790_v57, %v1035_v1  ;;  %v433_v3 = vmul.f32 %v789_v61, %v1035_v1  ;;  %v803_v5 = vpop.permute.xlu1 %802 }
  0x9b   : > { %v468_v4 = vadd.f32 %v436_v10, %v976_v7  ;;  %v467_v24 = vadd.f32 %v435_v11, %v973_v6  ;;  %v805_v14 = vunpack.i.h.bf16 %v803_v5  ;;  %v804_v16 = vunpack.i.l.bf16 %v803_v5  ;;  %v798_v17 = vpop.permute.xlu0 %797 }
  0x9c   : > { %v466_v21 = vadd.f32 %v434_v2, %v982_v9  ;;  %v465_v25 = vadd.f32 %v433_v3, %v979_v8  ;;  %v800_v26 = vunpack.i.h.bf16 %v798_v17  ;;  %v799_v27 = vunpack.i.l.bf16 %v798_v17 }
  0x9d   : > { %500 = vst [vmem:[%s1043_s30 + $0x98] sm:$0xff] %v468_v4  ;;  %499 = vst [vmem:[%s1043_s30 + $0x90] sm:$0xff] %v467_v24  ;;  %v440_v28 = vmul.f32 %v805_v14, %v1035_v1  ;;  %v439_v29 = vmul.f32 %v804_v16, %v1035_v1 }
  0x9e   : > { %498 = vst [vmem:[%s1043_s30 + $0x88] sm:$0xff] %v466_v21  ;;  %497 = vst [vmem:[%s1043_s30 + $0x80] sm:$0xff] %v465_v25  ;;  %v438_v6 = vmul.f32 %v800_v26, %v1035_v1  ;;  %v437_v7 = vmul.f32 %v799_v27, %v1035_v1  ;;  %v813_v9 = vpop.permute.xlu1 %812 }
  0x9f   : > { %v472_v8 = vadd.f32 %v440_v28, %v991_v13  ;;  %v471_v34 = vadd.f32 %v439_v29, %v988_v12  ;;  %v815_v35 = vunpack.i.h.bf16 %v813_v9  ;;  %v814_v36 = vunpack.i.l.bf16 %v813_v9  ;;  %v808_v37 = vpop.permute.xlu0 %807 }
  0xa0   : > { %v470_v38 = vadd.f32 %v438_v6, %v997_v18  ;;  %v469_v55 = vadd.f32 %v437_v7, %v994_v15  ;;  %v810_v56 = vunpack.i.h.bf16 %v808_v37  ;;  %v809_v59 = vunpack.i.l.bf16 %v808_v37 }
  0xa1   : > { %504 = vst [vmem:[%s1043_s30 + $0xb8] sm:$0xff] %v472_v8  ;;  %503 = vst [vmem:[%s1043_s30 + $0xb0] sm:$0xff] %v471_v34  ;;  %v444_v58 = vmul.f32 %v815_v35, %v1035_v1  ;;  %v443_v39 = vmul.f32 %v814_v36, %v1035_v1 }
  0xa2   : > { %502 = vst [vmem:[%s1043_s30 + $0xa8] sm:$0xff] %v470_v38  ;;  %501 = vst [vmem:[%s1043_s30 + $0xa0] sm:$0xff] %v469_v55  ;;  %v442_v12 = vmul.f32 %v810_v56, %v1035_v1  ;;  %v441_v13 = vmul.f32 %v809_v59, %v1035_v1  ;;  %v823_v18 = vpop.permute.xlu1 %822 }
  0xa3   : > { %v476_v15 = vadd.f32 %v444_v58, %v1003_v20  ;;  %v475_v40 = vadd.f32 %v443_v39, %v1000_v19  ;;  %v825_v41 = vunpack.i.h.bf16 %v823_v18  ;;  %v824_v42 = vunpack.i.l.bf16 %v823_v18  ;;  %v818_v43 = vpop.permute.xlu0 %817 }
  0xa4   : > { %v474_v44 = vadd.f32 %v442_v12, %v1009_v23  ;;  %v473_v45 = vadd.f32 %v441_v13, %v1006_v22  ;;  %v820_v46 = vunpack.i.h.bf16 %v818_v43  ;;  %v819_v47 = vunpack.i.l.bf16 %v818_v43 }
  0xa5   : > { %508 = vst [vmem:[%s1043_s30 + $0xd8] sm:$0xff] %v476_v15  ;;  %507 = vst [vmem:[%s1043_s30 + $0xd0] sm:$0xff] %v475_v40  ;;  %v448_v48 = vmul.f32 %v825_v41, %v1035_v1  ;;  %v447_v20 = vmul.f32 %v824_v42, %v1035_v1 }
  0xa6   : > { %506 = vst [vmem:[%s1043_s30 + $0xc8] sm:$0xff] %v474_v44  ;;  %505 = vst [vmem:[%s1043_s30 + $0xc0] sm:$0xff] %v473_v45  ;;  %v446_v19 = vmul.f32 %v820_v46, %v1035_v1  ;;  %v445_v23 = vmul.f32 %v819_v47, %v1035_v1 }
  0xa7   : > { %v480_v60 = vadd.f32 %v448_v48, %v1017_v31  ;;  %v479_v22 = vadd.f32 %v447_v20, %v1014_v30 }
  0xa8   : > { %v478_v62 = vadd.f32 %v446_v19, %v1023_v33  ;;  %v477_v0 = vadd.f32 %v445_v23, %v1020_v32 }
  0xa9   : > { %512 = vst [vmem:[%s1043_s30 + $0xf8] sm:$0xff] %v480_v60  ;;  %511 = vst [vmem:[%s1043_s30 + $0xf0] sm:$0xff] %v479_v22 }
  0xaa   : > { %510 = vst [vmem:[%s1043_s30 + $0xe8] sm:$0xff] %v478_v62  ;;  %509 = vst [vmem:[%s1043_s30 + $0xe0] sm:$0xff] %v477_v0 }
  0xab PF: > { %s13_s14 = sadd.s32 1, %s848_s14   ;;  %s1152_s12 = smov %s844_s13 }
  0xac   : > { %p10_p5 = scmp.ge.s32.totalorder %s13_s14, 4   ;;  %s1153_s13 = smov %s1155_s15 }
  0xae   :  { %12 = sbr.rel (!%p10_p5) target bundleno = 2 (0x2), region = 68 }

// kernel: bottleneck_forward.4
= control target key start
LH: loop header
LB: loop body
LE: loop exit
PB: predicated region body
PF: predicated region fallthrough
CT: control target
= control target key end

     0   :  { %s6085_s12 = smov 0   ;;  %s6087_s13 = smov 0   ;;  %s7717_s0 = inlined_call_operand.vmem [shape: bf16[36,24,128], index: 0, kind: input, shape index: {}]   ;;  %s7718_s1 = inlined_call_operand.vmem [shape: bf16[128,128], index: 1, kind: input, shape index: {}]   ;;  %s7719_s2 = inlined_call_operand.vmem [shape: bf16[9,128,128], index: 2, kind: input, shape index: {}]   ;;  %s7720_s3 = inlined_call_operand.vmem [shape: bf16[2,16,16,128], index: 3, kind: output, shape index: {}]  }
   0x1   :  { %s6089_s14 = smov 0  }
   0x2 LB: > { %s25_s15 = sadd.s32 1, %s6057_s13  ;;  %p4456_p0 = scmp.ge.s32.totalorder %s6061_s14, 1  ;;  %s6061_s14 = sphi %s6089_s14, %s13_s14   ;;  %s6057_s13 = sphi %s6087_s13, %s7920_s13   ;;  %s6053_s12 = sphi %s6085_s12, %s7919_s12  }
   0x3   : > { %p27_p1 = scmp.ge.s32.totalorder %s25_s15, 2  ;;  %p117_p2 = scmp.lt.s32.totalorder %s6061_s14, 3 }
   0x5   : > { %s7922_s15 = smov (%p27_p1, %s25_s15), 0  ;;  %p118_p3 = pnand %p4456_p0, %p117_p2 }
   0x7   : > { %121 = sbr.rel (%p118_p3) target bundleno = 993 (0x3e1), region = 28 }
   0xc   : > { %p140_p4 = scmp.lt.s32.totalorder %s6053_s12, 1  ;;  %s4898_s16 = smul.u32 216, %s6053_s12 }
   0xe   : > { %s7924_s12 = smov (!%p140_p4, %s6053_s12), 1  ;;  %s6106_s19 = scalar_lea.vmem %s7717_s0, %s4898_s16 }
   0xf   : > { %s4897_s20 = sshll.u32 %s7924_s12, 7  ;;  %v210_v0 = vld [vmem:[%s6106_s19] sm:$0xff]  ;;  %v212_v1 = vld [vmem:[%s6106_s19 + $0x8] sm:$0xff]  ;;  %v214_v2 = vld [vmem:[%s6106_s19 + $0x10] sm:$0xff] }
  0x10   : > { %s6114_s23 = scalar_lea.vmem %s7720_s3, %s4897_s20  ;;  %211 = vst [vmem:[#allocation2] sm:$0xff] %v210_v0  ;;  %213 = vst [vmem:[#allocation2 + $0x8] sm:$0xff] %v212_v1  ;;  %v216_v3 = vld [vmem:[%s6106_s19 + $0x18] sm:$0xff]  ;;  %v218_v4 = vld [vmem:[%s6106_s19 + $0x20] sm:$0xff] }
  0x11   : > { %215 = vst [vmem:[#allocation2 + $0x10] sm:$0xff] %v214_v2  ;;  %v220_v5 = vld [vmem:[%s6106_s19 + $0x28] sm:$0xff]  ;;  %217 = vst [vmem:[#allocation2 + $0x18] sm:$0xff] %v216_v3  ;;  %v222_v6 = vld [vmem:[%s6106_s19 + $0x30] sm:$0xff] }
  0x12   : > { %219 = vst [vmem:[#allocation2 + $0x20] sm:$0xff] %v218_v4  ;;  %221 = vst [vmem:[#allocation2 + $0x28] sm:$0xff] %v220_v5  ;;  %v224_v7 = vld [vmem:[%s6106_s19 + $0x38] sm:$0xff]  ;;  %v226_v8 = vld [vmem:[%s6106_s19 + $0x40] sm:$0xff] }
  0x13   : > { %223 = vst [vmem:[#allocation2 + $0x30] sm:$0xff] %v222_v6  ;;  %225 = vst [vmem:[#allocation2 + $0x38] sm:$0xff] %v224_v7  ;;  %v228_v9 = vld [vmem:[%s6106_s19 + $0x48] sm:$0xff]  ;;  %v230_v10 = vld [vmem:[%s6106_s19 + $0x50] sm:$0xff] }
  0x14   : > { %227 = vst [vmem:[#allocation2 + $0x40] sm:$0xff] %v226_v8  ;;  %v232_v11 = vld [vmem:[%s6106_s19 + $0x58] sm:$0xff]  ;;  %229 = vst [vmem:[#allocation2 + $0x48] sm:$0xff] %v228_v9  ;;  %v234_v12 = vld [vmem:[%s6106_s19 + $0x60] sm:$0xff] }
  0x15   : > { %231 = vst [vmem:[#allocation2 + $0x50] sm:$0xff] %v230_v10  ;;  %233 = vst [vmem:[#allocation2 + $0x58] sm:$0xff] %v232_v11  ;;  %v236_v13 = vld [vmem:[%s6106_s19 + $0x68] sm:$0xff]  ;;  %v238_v14 = vld [vmem:[%s6106_s19 + $0x70] sm:$0xff] }
  0x16   : > { %235 = vst [vmem:[#allocation2 + $0x60] sm:$0xff] %v234_v12  ;;  %237 = vst [vmem:[#allocation2 + $0x68] sm:$0xff] %v236_v13  ;;  %v240_v15 = vld [vmem:[%s6106_s19 + $0x78] sm:$0xff]  ;;  %v242_v16 = vld [vmem:[%s6106_s19 + $0x80] sm:$0xff] }
  0x17   : > { %239 = vst [vmem:[#allocation2 + $0x70] sm:$0xff] %v238_v14  ;;  %v244_v17 = vld [vmem:[%s6106_s19 + $0x88] sm:$0xff]  ;;  %241 = vst [vmem:[#allocation2 + $0x78] sm:$0xff] %v240_v15  ;;  %v246_v18 = vld [vmem:[%s6106_s19 + $0x90] sm:$0xff] }
  0x18   : > { %243 = vst [vmem:[#allocation2 + $0x80] sm:$0xff] %v242_v16  ;;  %245 = vst [vmem:[#allocation2 + $0x88] sm:$0xff] %v244_v17  ;;  %v248_v19 = vld [vmem:[%s6106_s19 + $0x98] sm:$0xff]  ;;  %v250_v20 = vld [vmem:[%s6106_s19 + $0xa0] sm:$0xff] }
  0x19   : > { %247 = vst [vmem:[#allocation2 + $0x90] sm:$0xff] %v246_v18  ;;  %249 = vst [vmem:[#allocation2 + $0x98] sm:$0xff] %v248_v19  ;;  %v252_v21 = vld [vmem:[%s6106_s19 + $0xa8] sm:$0xff]  ;;  %v254_v22 = vld [vmem:[%s6106_s19 + $0xb0] sm:$0xff] }
  0x1a   : > { %251 = vst [vmem:[#allocation2 + $0xa0] sm:$0xff] %v250_v20  ;;  %v256_v23 = vld [vmem:[%s6106_s19 + $0xb8] sm:$0xff]  ;;  %253 = vst [vmem:[#allocation2 + $0xa8] sm:$0xff] %v252_v21  ;;  %v258_v24 = vld [vmem:[%s6106_s19 + $0xc0] sm:$0xff] }
  0x1b   : > { %255 = vst [vmem:[#allocation2 + $0xb0] sm:$0xff] %v254_v22  ;;  %257 = vst [vmem:[#allocation2 + $0xb8] sm:$0xff] %v256_v23  ;;  %v260_v25 = vld [vmem:[%s6106_s19 + $0xc8] sm:$0xff]  ;;  %v262_v26 = vld [vmem:[%s6106_s19 + $0xd0] sm:$0xff] }
  0x1c   : > { %259 = vst [vmem:[#allocation2 + $0xc0] sm:$0xff] %v258_v24  ;;  %261 = vst [vmem:[#allocation2 + $0xc8] sm:$0xff] %v260_v25 }
  0x1d   : > { %263 = vst [vmem:[#allocation2 + $0xd0] sm:$0xff] %v262_v26 }
  0x1e   : > { %271 = vsyncadd [#allocation3], 3456 }
  0x1f   : > { %6049 = dma.done.wait [#allocation3], 3456 }
  0x20   : > { %6050 = vsyncadd [#allocation3], 4294963840  ;;  %v6063_v27 = vmov 0.0   ;;  %vm6064_vm0 = vmmov 0   ;;  %v5929_v28 = vld [vmem:[%s7718_s1 + $0x38] sm:$0xff]   ;;  %v5930_v29 = vld [vmem:[%s7718_s1 + $0x30] sm:$0xff]  }
  0x21   : > { %5331 = vmatprep.subr.bf16.mxu0 %v6063_v27  ;;  %5347 = vmatprep.mubr.msk.bf16.mxu0 %vm6064_vm0, %v6063_v27  ;;  %v5931_v30 = vld [vmem:[%s7718_s1 + $0x28] sm:$0xff]   ;;  %v5932_v31 = vld [vmem:[%s7718_s1 + $0x20] sm:$0xff]   ;;  %v5933_v32 = vld [vmem:[%s7718_s1 + $0x18] sm:$0xff]   ;;  %vm2070_vm1 = vcmask 1042432   ;;  %vm2071_vm2 = vcmask 1046532  }
  0x22   : > { %5332 = vmatpush3.bf16.msra.mxu0 %v5929_v28  ;;  %v5934_v33 = vld [vmem:[%s7718_s1 + $0x10] sm:$0xff]   ;;  %v5935_v34 = vld [vmem:[%s7718_s1 + $0x8] sm:$0xff]   ;;  %v5936_v35 = vld [vmem:[%s7718_s1] sm:$0xff]   ;;  %vm1152_vm4 = vsmask.f32 3328 }
  0x23   : > { %5333 = vmatprep.subr.bf16.mxu0 %v6063_v27  ;;  %v5937_v36 = vld [vmem:[#allocation2] sm:$0xff]   ;;  %v5938_v37 = vld [vmem:[#allocation2 + $0x8] sm:$0xff]   ;;  %v5939_v38 = vld [vmem:[#allocation2 + $0x10] sm:$0xff]   ;;  %vm1153_vm5 = vsmask.f32 7440 }
  0x24   : > { %v5940_v39 = vld [vmem:[#allocation2 + $0x18] sm:$0xff]   ;;  %v5941_v40 = vld [vmem:[#allocation2 + $0x20] sm:$0xff]   ;;  %v5942_v41 = vld [vmem:[#allocation2 + $0x28] sm:$0xff]  }
  0x25   : > { %v5943_v42 = vld [vmem:[#allocation2 + $0x30] sm:$0xff]   ;;  %v5944_v43 = vld [vmem:[#allocation2 + $0x38] sm:$0xff]   ;;  %v5945_v44 = vld [vmem:[#allocation2 + $0x40] sm:$0xff]  }
  0x26   : > { %5334 = vmatpush3.bf16.msra.mxu0 %v5930_v29  ;;  %v5962_v45 = vld [vmem:[%s7719_s2 + $0x78] sm:$0xff]   ;;  %v5963_v46 = vld [vmem:[%s7719_s2 + $0x70] sm:$0xff]   ;;  %v5946_v47 = vld [vmem:[#allocation2 + $0x48] sm:$0xff]  }
  0x27   : > { %5335 = vmatprep.subr.bf16.mxu0 %v6063_v27  ;;  %5455 = vmatprep.subr.bf16.mxu1 %v5962_v45  ;;  %v5965_v48 = vld [vmem:[%s7719_s2 + $0x68] sm:$0xff]   ;;  %v5966_v49 = vld [vmem:[%s7719_s2 + $0x60] sm:$0xff]   ;;  %v5967_v50 = vld [vmem:[%s7719_s2 + $0x138] sm:$0xff]  }
  0x28   : > { %5456 = vmatpush3.bf16.msra.mxu1 %v5962_v45  ;;  %v5947_v51 = vld [vmem:[#allocation2 + $0x50] sm:$0xff]   ;;  %v5968_v52 = vld [vmem:[%s7719_s2 + $0x58] sm:$0xff]   ;;  %v5971_v55 = vld [vmem:[%s7719_s2 + $0x128] sm:$0xff]  }
  0x29   : > { %5457 = vmatprep.subr.bf16.mxu1 %v5963_v46  ;;  %v5969_v53 = vld [vmem:[%s7719_s2 + $0x130] sm:$0xff]   ;;  %v5948_v56 = vld [vmem:[#allocation2 + $0x58] sm:$0xff]   ;;  %v5972_v57 = vld [vmem:[%s7719_s2 + $0x48] sm:$0xff]  }
  0x2a   : > { %5336 = vmatpush3.bf16.msra.mxu0 %v5931_v30  ;;  %v5970_v54 = vld [vmem:[%s7719_s2 + $0x50] sm:$0xff]   ;;  %v5973_v58 = vld [vmem:[%s7719_s2 + $0x120] sm:$0xff]   ;;  %v5975_v60 = vld [vmem:[%s7719_s2 + $0x118] sm:$0xff]  }
  0x2b   : > { %5337 = vmatprep.subr.bf16.mxu0 %v6063_v27  ;;  %v5974_v59 = vld [vmem:[%s7719_s2 + $0x40] sm:$0xff]   ;;  %v5977_v62 = vld [vmem:[%s7719_s2 + $0x110] sm:$0xff]   ;;  %v5950_v63 = vld [vmem:[#allocation2 + $0x68] sm:$0xff]  }
  0x2c   : > { %5458 = vmatpush3.bf16.msra.mxu1 %v5963_v46  ;;  %v5949_v61 = vld [vmem:[#allocation2 + $0x60] sm:$0xff]   ;;  %v5978_v0 = vld [vmem:[%s7719_s2 + $0x108] sm:$0xff]   ;;  %v5951_v2 = vld [vmem:[#allocation2 + $0x70] sm:$0xff]  }
  0x2d   : > { %5459 = vmatprep.subr.bf16.mxu1 %v5965_v48  ;;  %v5979_v1 = vld [vmem:[%s7719_s2 + $0x100] sm:$0xff]   ;;  %v5952_v3 = vld [vmem:[#allocation2 + $0x78] sm:$0xff]   ;;  %v5954_v5 = vld [vmem:[#allocation2 + $0x88] sm:$0xff]  }
  0x2e   : > { %5338 = vmatpush3.bf16.msra.mxu0 %v5932_v31  ;;  %v5953_v4 = vld [vmem:[#allocation2 + $0x80] sm:$0xff]   ;;  %v5955_v6 = vld [vmem:[#allocation2 + $0x90] sm:$0xff]   ;;  %v5956_v7 = vld [vmem:[#allocation2 + $0x98] sm:$0xff]  }
  0x2f   : > { %5339 = vmatprep.subr.bf16.mxu0 %v6063_v27  ;;  %v5957_v8 = vld [vmem:[#allocation2 + $0xa0] sm:$0xff]   ;;  %v5958_v9 = vld [vmem:[#allocation2 + $0xa8] sm:$0xff]   ;;  %v5959_v10 = vld [vmem:[#allocation2 + $0xb0] sm:$0xff]  }
  0x30   : > { %5460 = vmatpush3.bf16.msra.mxu1 %v5965_v48  ;;  %v5960_v11 = vld [vmem:[#allocation2 + $0xb8] sm:$0xff]   ;;  %v5961_v12 = vld [vmem:[#allocation2 + $0xc0] sm:$0xff]   ;;  %v5964_v18 = vld [vmem:[#allocation2 + $0xc8] sm:$0xff]  }
  0x31   : > { %5461 = vmatprep.subr.bf16.mxu1 %v5966_v49  ;;  %vm6282_vm3 = vmor %vm2070_vm1, %vm2071_vm2 }
  0x32   : > { %5340 = vmatpush3.bf16.msra.mxu0 %v5933_v32  ;;  %vm6293_vm6 = vmor %vm1152_vm4, %vm1153_vm5 }
  0x33   : > { %5341 = vmatprep.subr.bf16.mxu0 %v6063_v27 }
  0x34   : > { %5462 = vmatpush3.bf16.msra.mxu1 %v5966_v49 }
  0x35   : > { %5463 = vmatprep.subr.bf16.mxu1 %v5968_v52 }
  0x36   : > { %5342 = vmatpush3.bf16.msra.mxu0 %v5934_v33 }
  0x37   : > { %5343 = vmatprep.subr.bf16.mxu0 %v6063_v27 }
  0x38   : > { %5464 = vmatpush3.bf16.msra.mxu1 %v5968_v52  ;;  %v6018_v52 = vld [vmem:[%s7719_s2 + $0xc8] sm:$0xff]  }
  0x39   : > { %5465 = vmatprep.subr.bf16.mxu1 %v5970_v54 }
  0x3a   : > { %5344 = vmatpush3.bf16.msra.mxu0 %v5935_v34 }
  0x3b   : > { %5345 = vmatprep.subr.bf16.mxu0 %v6063_v27 }
  0x3c   : > { %5466 = vmatpush3.bf16.msra.mxu1 %v5970_v54 }
  0x3d   : > { %5467 = vmatprep.subr.bf16.mxu1 %v5972_v57 }
  0x3e   : > { %5346 = vmatpush3.bf16.msra.mxu0 %v5936_v35 }
  0x3f   : > { %5647 = vmatprep.subr.bf16.mxu0 %v5967_v50 }
  0x40   : > { %5468 = vmatpush3.bf16.msra.mxu1 %v5972_v57 }
  0x41   : > { %5348 = vmatmul.mubr.bf16.vlgmr.msra.gmra.mxu0 %v5937_v36  ;;  %5469 = vmatprep.subr.bf16.mxu1 %v5974_v59 }
  0x42   : > { %5351 = vmatprep.mubr.msk.bf16.mxu0 %vm6064_vm0, %v6063_v27  ;;  %5648 = vmatpush3.bf16.msra.mxu0 %v5967_v50 }
  0x43   : > { %5649 = vmatprep.subr.bf16.mxu0 %v5969_v53 }
  0x44   : > { %5470 = vmatpush3.bf16.msra.mxu1 %v5974_v59 }
  0x46   : > { %5650 = vmatpush3.bf16.msra.mxu0 %v5969_v53 }
  0x47   : > { %5651 = vmatprep.subr.bf16.mxu0 %v5971_v55 }
  0x49   : > { %5352 = vmatmul.mubr.bf16.gmra.mxu0 %v5938_v37 }
  0x4a   : > { %5355 = vmatprep.mubr.msk.bf16.mxu0 %vm6064_vm0, %v6063_v27  ;;  %5652 = vmatpush3.bf16.msra.mxu0 %v5971_v55 }
  0x4b   : > { %5653 = vmatprep.subr.bf16.mxu0 %v5973_v58 }
  0x4e   : > { %5654 = vmatpush3.bf16.msra.mxu0 %v5973_v58 }
  0x4f   : > { %5655 = vmatprep.subr.bf16.mxu0 %v5975_v60 }
  0x51   : > { %5356 = vmatmul.mubr.bf16.gmra.mxu0 %v5939_v38 }
  0x52   : > { %5359 = vmatprep.mubr.msk.bf16.mxu0 %vm6064_vm0, %v6063_v27  ;;  %5656 = vmatpush3.bf16.msra.mxu0 %v5975_v60 }
  0x53   : > { %5657 = vmatprep.subr.bf16.mxu0 %v5977_v62 }
  0x56   : > { %5658 = vmatpush3.bf16.msra.mxu0 %v5977_v62 }
  0x57   : > { %5659 = vmatprep.subr.bf16.mxu0 %v5978_v0 }
  0x59   : > { %5360 = vmatmul.mubr.bf16.gmra.mxu0 %v5940_v39 }
  0x5a   : > { %5363 = vmatprep.mubr.msk.bf16.mxu0 %vm6064_vm0, %v6063_v27  ;;  %5660 = vmatpush3.bf16.msra.mxu0 %v5978_v0 }
  0x5b   : > { %5661 = vmatprep.subr.bf16.mxu0 %v5979_v1 }
  0x5e   : > { %5662 = vmatpush3.bf16.msra.mxu0 %v5979_v1 }
  0x61   : > { %5364 = vmatmul.mubr.bf16.gmra.mxu0 %v5941_v40 }
  0x62   : > { %5367 = vmatprep.mubr.msk.bf16.mxu0 %vm6064_vm0, %v6063_v27 }
  0x69   : > { %5368 = vmatmul.mubr.bf16.gmra.mxu0 %v5942_v41  ;;  %v5976_v41 = vld [vmem:[#allocation2 + $0xd0] sm:$0xff]  }
  0x6a   : > { %5371 = vmatprep.mubr.msk.bf16.mxu0 %vm6064_vm0, %v6063_v27 }
  0x71   : > { %5372 = vmatmul.mubr.bf16.gmra.mxu0 %v5943_v42 }
  0x72   : > { %5375 = vmatprep.mubr.msk.bf16.mxu0 %vm6064_vm0, %v6063_v27 }
  0x79   : > { %5376 = vmatmul.mubr.bf16.gmra.mxu0 %v5944_v43 }
  0x7a   : > { %5379 = vmatprep.mubr.msk.bf16.mxu0 %vm6064_vm0, %v6063_v27 }
  0x81   : > { %5380 = vmatmul.mubr.bf16.gmra.mxu0 %v5945_v44 }
  0x82   : > { %5383 = vmatprep.mubr.msk.bf16.mxu0 %vm6064_vm0, %v6063_v27 }
  0x89   : > { %5384 = vmatmul.mubr.bf16.gmra.mxu0 %v5946_v47 }
  0x8a   : > { %5387 = vmatprep.mubr.msk.bf16.mxu0 %vm6064_vm0, %v6063_v27 }
  0x91   : > { %5388 = vmatmul.mubr.bf16.gmra.mxu0 %v5947_v51 }
  0x92   : > { %5391 = vmatprep.mubr.msk.bf16.mxu0 %vm6064_vm0, %v6063_v27 }
  0x99   : > { %5392 = vmatmul.mubr.bf16.gmra.mxu0 %v5948_v56 }
  0x9a   : > { %5395 = vmatprep.mubr.msk.bf16.mxu0 %vm6064_vm0, %v6063_v27 }
  0xa1   : > { %5396 = vmatmul.mubr.bf16.gmra.mxu0 %v5949_v61 }
  0xa2   : > { %5399 = vmatprep.mubr.msk.bf16.mxu0 %vm6064_vm0, %v6063_v27 }
  0xa9   : > { %5400 = vmatmul.mubr.bf16.gmra.mxu0 %v5950_v63 }
  0xaa   : > { %5403 = vmatprep.mubr.msk.bf16.mxu0 %vm6064_vm0, %v6063_v27 }
  0xb1   : > { %5404 = vmatmul.mubr.bf16.gmra.mxu0 %v5951_v2  ;;  %v5980_v2 = vld [vmem:[%s7719_s2 + $0x38] sm:$0xff]  }
  0xb2   : > { %5407 = vmatprep.mubr.msk.bf16.mxu0 %vm6064_vm0, %v6063_v27  ;;  %5503 = vmatprep.subr.bf16.mxu1 %v5980_v2 }
  0xb9   : > { %5408 = vmatmul.mubr.bf16.gmra.mxu0 %v5952_v3 }
  0xba   : > { %5411 = vmatprep.mubr.msk.bf16.mxu0 %vm6064_vm0, %v6063_v27 }
  0xc1   : > { %5412 = vmatmul.mubr.bf16.gmra.mxu0 %v5953_v4 }
  0xc2   : > { %5415 = vmatprep.mubr.msk.bf16.mxu0 %vm6064_vm0, %v6063_v27 }
  0xc9   : > { %5416 = vmatmul.mubr.bf16.gmra.mxu0 %v5954_v5 }
  0xca   : > { %5419 = vmatprep.mubr.msk.bf16.mxu0 %vm6064_vm0, %v6063_v27 }
  0xd1   : > { %5420 = vmatmul.mubr.bf16.gmra.mxu0 %v5955_v6 }
  0xd2   : > { %5423 = vmatprep.mubr.msk.bf16.mxu0 %vm6064_vm0, %v6063_v27 }
  0xd9   : > { %5424 = vmatmul.mubr.bf16.gmra.mxu0 %v5956_v7 }
  0xda   : > { %5427 = vmatprep.mubr.msk.bf16.mxu0 %vm6064_vm0, %v6063_v27 }
  0xe1   : > { %5428 = vmatmul.mubr.bf16.gmra.mxu0 %v5957_v8 }
  0xe2   : > { %5431 = vmatprep.mubr.msk.bf16.mxu0 %vm6064_vm0, %v6063_v27 }
  0xe9   : > { %5432 = vmatmul.mubr.bf16.gmra.mxu0 %v5958_v9 }
  0xea   : > { %5435 = vmatprep.mubr.msk.bf16.mxu0 %vm6064_vm0, %v6063_v27 }
  0xf1   : > { %5436 = vmatmul.mubr.bf16.gmra.mxu0 %v5959_v10 }
  0xf2   : > { %5439 = vmatprep.mubr.msk.bf16.mxu0 %vm6064_vm0, %v6063_v27 }
  0xf9   : > { %5440 = vmatmul.mubr.bf16.gmra.mxu0 %v5960_v11 }
  0xfa   : > { %5443 = vmatprep.mubr.msk.bf16.mxu0 %vm6064_vm0, %v6063_v27 }
 0x101   : > { %v705_v13 = vpop.f32.mrf.mxu0  ;;  %5444 = vmatmul.mubr.bf16.gmra.mxu0 %v5961_v12 }
 0x102   : > { %v6270_v14 = vmax.f32 %v705_v13, 0.0  ;;  %5447 = vmatprep.mubr.msk.bf16.mxu0 %vm6064_vm0, %v6063_v27 }
 0x103   : > { %v5349_v15 = vpop.f32.mrf.mxu0 }
 0x104   : > { %v4899_v16 = vpack.c.bf16 %v6270_v14, %v6270_v14 }
 0x105   : > { %v708_v17 = vpop.f32.mrf.mxu0 }
 0x106   : > { %v1156_v19 = vshrl.u32 %v4899_v16, 16  ;;  %v1159_v20 = vshll.u32 %v4899_v16, 16  ;;  %v6276_v21 = vmax.f32 %v708_v17, 0.0  ;;  %v4655_v33 = vrot.slane %v4899_v16, 9 }
 0x107   : > { %v5350_v22 = vpop.f32.mrf.mxu0 }
 0x108   : > { %v1158_v23 = vrot.slane %v1156_v19, 4  ;;  %v1161_v24 = vrot.slane %v1159_v20, 5  ;;  %v4900_v26 = vpack.c.bf16 %v6276_v21, %v6276_v21 }
 0x109   : > { %v713_v28 = vpop.f32.mrf.mxu0  ;;  %5448 = vmatmul.mubr.bf16.gmra.mxu0 %v5964_v18 }
 0x10a   : > { %v1169_v29 = vshrl.u32 %v4900_v26, 16  ;;  %v2075_v30 = vrot.slane %v4900_v26, 5  ;;  %v922_v31 = vmax.f32 %v713_v28, 0.0  ;;  %5451 = vmatprep.mubr.msk.bf16.mxu0 %vm6064_vm0, %v6063_v27  ;;  %v1162_v35 = vor.u32 %v1161_v24, %v1158_v23 }
 0x10b   : > { %v5353_v34 = vpop.f32.mrf.mxu0  ;;  %v1165_v36 = vshll.u32 %v4900_v26, 16 }
 0x10c   : > { %v1171_v37 = vrot.slane %v1169_v29, 4  ;;  %v4901_v38 = vpack.c.bf16 %v922_v31, %v922_v31  ;;  %v6290_v42 = vsel %vm6282_vm3, %v4655_v33, %v2075_v30  ;;  %v2077_v43 = vrot.slane %v2075_v30, 4 }
 0x10d   : > { %v716_v39 = vpop.f32.mrf.mxu0  ;;  %v1167_v40 = vrot.slane %v1165_v36, 5  ;;  %v1163_v47 = vrot.slane %v1162_v35, 4 }
 0x10e   : > { %v1175_v44 = vshll.u32 %v4901_v38, 16  ;;  %v2078_v45 = vrot.slane %v4901_v38, 5  ;;  %v923_v46 = vmax.f32 %v716_v39, 0.0 }
 0x10f   : > { %v5354_v27 = vpop.f32.mrf.mxu0  ;;  %v1172_v48 = vor.u32 %v1171_v37, %v1167_v40  ;;  %v1168_v61 = vsel %vm6293_vm6, %v1163_v47, %v1167_v40 }
 0x110   : > { %v1177_v49 = vrot.slane %v1175_v44, 5  ;;  %v975_v50 = vpack.c.bf16 %v923_v46, %v922_v31  ;;  %v4902_v51 = vpack.c.bf16 %v923_v46, %v923_v46  ;;  %v6299_v53 = vsel %vm6282_vm3, %v2077_v43, %v2078_v45 }
 0x111   : > { %v721_v54 = vpop.f32.mrf.mxu0  ;;  %v1173_v55 = vrot.slane %v1172_v48, 4  ;;  %5452 = vmatmul.mubr.bf16.gmra.mxu0 %v5976_v41 }
 0x112   : > { %v1180_v57 = vshrl.u32 %v4902_v51, 16  ;;  %v1183_v58 = vshll.u32 %v4902_v51, 16  ;;  %v924_v59 = vmax.f32 %v721_v54, 0.0  ;;  %v4656_v5 = vrot.slane %v4902_v51, 9  ;;  %v5981_v51 = vld [vmem:[%s7719_s2 + $0x30] sm:$0xff]  }
 0x113   : > { %v5357_v60 = vpop.f32.mrf.mxu0  ;;  %v1178_v62 = vsel %vm6293_vm6, %v1173_v55, %v1177_v49  ;;  %v1031_v12 = vunpack.c.h.b16 %v975_v50 }
 0x114   : > { %v1182_v63 = vrot.slane %v1180_v57, 4  ;;  %v1185_v0 = vrot.slane %v1183_v58, 5  ;;  %v4623_v1 = vcombine.low %v1168_v61, %v1178_v62  ;;  %v4903_v3 = vpack.c.bf16 %v924_v59, %v924_v59 }
 0x115   : > { %v724_v4 = vpop.f32.mrf.mxu0 }
 0x116   : > { %v925_v6 = vmax.f32 %v724_v4, 0.0  ;;  %5471 = vmatprep.mubr.bf16.mxu1 %v4623_v1  ;;  %v1186_v7 = vor.u32 %v1185_v0, %v1182_v63  ;;  %v1189_v8 = vshll.u32 %v4903_v3, 16  ;;  %v1193_v9 = vshrl.u32 %v4903_v3, 16 }
 0x117   : > { %v2082_v10 = vrot.slane %v4903_v3, 5  ;;  %v5358_v11 = vpop.f32.mrf.mxu0 }
 0x118   : > { %v976_v13 = vpack.c.bf16 %v925_v6, %v924_v59  ;;  %v4904_v15 = vpack.c.bf16 %v925_v6, %v925_v6  ;;  %v1191_v16 = vrot.slane %v1189_v8, 5  ;;  %v1195_v17 = vrot.slane %v1193_v9, 4  ;;  %v5982_v6 = vld [vmem:[%s7719_s2 + $0x28] sm:$0xff]  }
 0x119   : > { %v2084_v18 = vrot.slane %v2082_v10, 4  ;;  %v2083_v19 = vsel %vm6282_vm3, %v4656_v5, %v2082_v10  ;;  %v729_v20 = vpop.f32.mrf.mxu0  ;;  %v1187_v30 = vrot.slane %v1186_v7, 4 }
 0x11a   : > { %v1032_v22 = vunpack.c.l.b16 %v976_v13  ;;  %v1199_v23 = vshll.u32 %v4904_v15, 16  ;;  %v2085_v24 = vrot.slane %v4904_v15, 5  ;;  %v926_v26 = vmax.f32 %v729_v20, 0.0 }
 0x11b   : > { %v1196_v28 = vor.u32 %v1195_v17, %v1191_v16  ;;  %v5361_v29 = vpop.f32.mrf.mxu0  ;;  %v1192_v44 = vsel %vm6293_vm6, %v1187_v30, %v1191_v16 }
 0x11c   : > { %v1201_v31 = vrot.slane %v1199_v23, 5  ;;  %v6312_v33 = vpack.c.b16 %v1032_v22, %v1031_v12  ;;  %v2086_v34 = vsel %vm6282_vm3, %v2084_v18, %v2085_v24  ;;  %v4905_v35 = vpack.c.bf16 %v926_v26, %v926_v26 }
 0x11d   : > { %v6316_v36 = vcombine.low %v2083_v19, %v2086_v34  ;;  %v732_v37 = vpop.f32.mrf.mxu0  ;;  %v1197_v38 = vrot.slane %v1196_v28, 4 }
 0x11e   : > { %v1204_v39 = vshrl.u32 %v4905_v35, 16  ;;  %v1207_v40 = vshll.u32 %v4905_v35, 16  ;;  %v927_v41 = vmax.f32 %v732_v37, 0.0  ;;  %v4657_v59 = vrot.slane %v4905_v35, 9 }
 0x11f   : > { %v5362_v43 = vpop.f32.mrf.mxu0  ;;  %v1202_v45 = vsel %vm6293_vm6, %v1197_v38, %v1201_v31  ;;  %v5983_v31 = vld [vmem:[%s7719_s2 + $0x20] sm:$0xff]  }
 0x120   : > { %v1206_v46 = vrot.slane %v1204_v39, 4  ;;  %v1209_v27 = vrot.slane %v1207_v40, 5  ;;  %v6322_v47 = vpack.c.bf16 %v927_v41, %v926_v26  ;;  %v4906_v48 = vpack.c.bf16 %v927_v41, %v927_v41 }
 0x121   : > { %v737_v49 = vpop.f32.mrf.mxu0  ;;  %v4624_v50 = vcombine.low %v1192_v44, %v1202_v45 }
 0x122   : > { %v1213_v54 = vshll.u32 %v4906_v48, 16  ;;  %v1217_v55 = vshrl.u32 %v4906_v48, 16  ;;  %v2089_v57 = vrot.slane %v4906_v48, 5  ;;  %v1210_v58 = vor.u32 %v1209_v27, %v1206_v46 }
 0x123   : > { %v928_v60 = vmax.f32 %v737_v49, 0.0  ;;  %5472 = vmatmul.mubr.bf16.vlgmr.msra.gmra.mxu1 %v4624_v50  ;;  %5663 = vmatprep.mubr.bf16.mxu0 %v4624_v50  ;;  %v5365_v61 = vpop.f32.mrf.mxu0 }
 0x124   : > { %v1215_v62 = vrot.slane %v1213_v54, 5  ;;  %v1219_v63 = vrot.slane %v1217_v55, 4  ;;  %5504 = vmatpush3.bf16.msra.mxu1 %v5980_v2  ;;  %v2090_v3 = vsel %vm6282_vm3, %v4657_v59, %v2089_v57  ;;  %v2091_v7 = vrot.slane %v2089_v57, 4 }
 0x125   : > { %v4907_v0 = vpack.c.bf16 %v928_v60, %v928_v60  ;;  %v740_v1 = vpop.f32.mrf.mxu0  ;;  %5505 = vmatprep.subr.bf16.mxu1 %v5981_v51  ;;  %v1211_v11 = vrot.slane %v1210_v58, 4 }
 0x126   : > { %v1220_v4 = vor.u32 %v1219_v63, %v1215_v62  ;;  %v929_v5 = vmax.f32 %v740_v1, 0.0 }
 0x127   : > { %v1223_v8 = vshll.u32 %v4907_v0, 16  ;;  %v2092_v9 = vrot.slane %v4907_v0, 5  ;;  %v5366_v10 = vpop.f32.mrf.mxu0  ;;  %v1216_v23 = vsel %vm6293_vm6, %v1211_v11, %v1215_v62 }
 0x128   : > { %v978_v12 = vpack.c.bf16 %v929_v5, %v928_v60  ;;  %v4908_v13 = vpack.c.bf16 %v929_v5, %v929_v5  ;;  %v1221_v2 = vrot.slane %v1220_v4, 4  ;;  %5506 = vmatpush3.bf16.msra.mxu1 %v5981_v51  ;;  %v5984_v10 = vld [vmem:[%s7719_s2 + $0x18] sm:$0xff]  }
 0x129   : > { %v1225_v15 = vrot.slane %v1223_v8, 5  ;;  %v745_v16 = vpop.f32.mrf.mxu0  ;;  %5507 = vmatprep.subr.bf16.mxu1 %v5982_v6  ;;  %v2093_v17 = vsel %vm6282_vm3, %v2091_v7, %v2092_v9 }
 0x12a   : > { %v1228_v18 = vshrl.u32 %v4908_v13, 16  ;;  %v1231_v19 = vshll.u32 %v4908_v13, 16  ;;  %v930_v20 = vmax.f32 %v745_v16, 0.0  ;;  %v6338_v26 = vcombine.low %v2090_v3, %v2093_v17 }
 0x12b   : > { %v5369_v22 = vpop.f32.mrf.mxu0  ;;  %v1226_v24 = vsel %vm6293_vm6, %v1221_v2, %v1225_v15  ;;  %v4658_v37 = vrot.slane %v4908_v13, 9  ;;  %v1037_v45 = vunpack.c.h.b16 %v978_v12 }
 0x12c   : > { %v1230_v28 = vrot.slane %v1228_v18, 4  ;;  %v1233_v29 = vrot.slane %v1231_v19, 5  ;;  %v6340_v30 = vcombine.low %v1216_v23, %v1226_v24  ;;  %5508 = vmatpush3.bf16.msra.mxu1 %v5982_v6  ;;  %v4909_v34 = vpack.c.bf16 %v930_v20, %v930_v20 }
 0x12d   : > { %v748_v35 = vpop.f32.mrf.mxu0  ;;  %5509 = vmatprep.subr.bf16.mxu1 %v5983_v31 }
 0x12e   : > { %v931_v38 = vmax.f32 %v748_v35, 0.0  ;;  %5475 = vmatprep.mubr.bf16.mxu1 %v6340_v30  ;;  %5664 = vmatmul.mubr.bf16.vlgmr.msra.gmra.mxu0 %v6340_v30  ;;  %v1234_v39 = vor.u32 %v1233_v29, %v1230_v28  ;;  %v1237_v40 = vshll.u32 %v4909_v34, 16  ;;  %v1241_v41 = vshrl.u32 %v4909_v34, 16 }
 0x12f   : > { %v2096_v43 = vrot.slane %v4909_v34, 5  ;;  %v5370_v44 = vpop.f32.mrf.mxu0 }
 0x130   : > { %v979_v46 = vpack.c.bf16 %v931_v38, %v930_v20  ;;  %v4910_v27 = vpack.c.bf16 %v931_v38, %v931_v38  ;;  %5510 = vmatpush3.bf16.msra.mxu1 %v5983_v31  ;;  %v1239_v48 = vrot.slane %v1237_v40, 5  ;;  %v1243_v49 = vrot.slane %v1241_v41, 4  ;;  %v5985_v44 = vld [vmem:[%s7719_s2 + $0x10] sm:$0xff]  }
 0x131   : > { %v2098_v50 = vrot.slane %v2096_v43, 4  ;;  %v753_v51 = vpop.f32.mrf.mxu0  ;;  %v2097_v54 = vsel %vm6282_vm3, %v4658_v37, %v2096_v43  ;;  %v1235_v62 = vrot.slane %v1234_v39, 4  ;;  %5511 = vmatprep.subr.bf16.mxu1 %v5984_v10  ;;  %v5986_v39 = vld [vmem:[%s7719_s2 + $0x1b8] sm:$0xff]  }
 0x132   : > { %v1038_v55 = vunpack.c.l.b16 %v979_v46  ;;  %v1247_v57 = vshll.u32 %v4910_v27, 16  ;;  %v2099_v58 = vrot.slane %v4910_v27, 5  ;;  %v932_v59 = vmax.f32 %v753_v51, 0.0  ;;  %5743 = vmatprep.subr.bf16.mxu0 %v5986_v39 }
 0x133   : > { %v1244_v60 = vor.u32 %v1243_v49, %v1239_v48  ;;  %v5373_v61 = vpop.f32.mrf.mxu0  ;;  %v1240_v12 = vsel %vm6293_vm6, %v1235_v62, %v1239_v48  ;;  %5744 = vmatpush3.bf16.msra.mxu0 %v5986_v39 }
 0x134   : > { %v1249_v63 = vrot.slane %v1247_v57, 5  ;;  %v4911_v0 = vpack.c.bf16 %v932_v59, %v932_v59  ;;  %v6349_v1 = vpack.c.b16 %v1038_v55, %v1037_v45  ;;  %v2100_v3 = vsel %vm6282_vm3, %v2098_v50, %v2099_v58  ;;  %5512 = vmatpush3.bf16.msra.mxu1 %v5984_v10  ;;  %v5988_v58 = vld [vmem:[%s7719_s2 + $0x1b0] sm:$0xff]  }
 0x135   : > { %v756_v4 = vpop.f32.mrf.mxu0  ;;  %v1245_v5 = vrot.slane %v1244_v60, 4  ;;  %v6353_v6 = vcombine.low %v2097_v54, %v2100_v3  ;;  %5513 = vmatprep.subr.bf16.mxu1 %v5985_v44  ;;  %5745 = vmatprep.subr.bf16.mxu0 %v5988_v58 }
 0x136   : > { %v1252_v7 = vshrl.u32 %v4911_v0, 16  ;;  %v1255_v8 = vshll.u32 %v4911_v0, 16  ;;  %v933_v9 = vmax.f32 %v756_v4, 0.0  ;;  %v4659_v28 = vrot.slane %v4911_v0, 9 }
 0x137   : > { %v5374_v11 = vpop.f32.mrf.mxu0  ;;  %v1250_v13 = vsel %vm6293_vm6, %v1245_v5, %v1249_v63  ;;  %5746 = vmatpush3.bf16.msra.mxu0 %v5988_v58 }
 0x138   : > { %v1254_v2 = vrot.slane %v1252_v7, 4  ;;  %v1257_v15 = vrot.slane %v1255_v8, 5  ;;  %v6362_v16 = vpack.c.bf16 %v933_v9, %v932_v59  ;;  %v4912_v17 = vpack.c.bf16 %v933_v9, %v933_v9  ;;  %5514 = vmatpush3.bf16.msra.mxu1 %v5985_v44  ;;  %v5987_v9 = vld [vmem:[%s7719_s2 + $0x8] sm:$0xff]  }
 0x139   : > { %v761_v18 = vpop.f32.mrf.mxu0  ;;  %v6364_v19 = vcombine.low %v1240_v12, %v1250_v13  ;;  %v5989_v12 = vld [vmem:[%s7719_s2 + $0x1a8] sm:$0xff]   ;;  %5515 = vmatprep.subr.bf16.mxu1 %v5987_v9 }
 0x13a   : > { %v1261_v20 = vshll.u32 %v4912_v17, 16  ;;  %v1265_v22 = vshrl.u32 %v4912_v17, 16  ;;  %v2103_v23 = vrot.slane %v4912_v17, 5  ;;  %v1258_v24 = vor.u32 %v1257_v15, %v1254_v2  ;;  %5747 = vmatprep.subr.bf16.mxu0 %v5989_v12 }
 0x13b   : > { %v934_v29 = vmax.f32 %v761_v18, 0.0  ;;  %5476 = vmatmul.mubr.bf16.gmra.mxu1 %v6364_v19  ;;  %5667 = vmatprep.mubr.bf16.mxu0 %v6364_v19  ;;  %v5377_v31 = vpop.f32.mrf.mxu0 }
 0x13c   : > { %v1263_v34 = vrot.slane %v1261_v20, 5  ;;  %v1267_v35 = vrot.slane %v1265_v22, 4  ;;  %v2104_v40 = vsel %vm6282_vm3, %v4659_v28, %v2103_v23  ;;  %v2105_v45 = vrot.slane %v2103_v23, 4  ;;  %5516 = vmatpush3.bf16.msra.mxu1 %v5987_v9  ;;  %5748 = vmatpush3.bf16.msra.mxu0 %v5989_v12  ;;  %v6425_v12 = vld [vmem:[%s7719_s2 + $0xb8] sm:$0xff]  }
 0x13d   : > { %v4913_v37 = vpack.c.bf16 %v934_v29, %v934_v29  ;;  %v764_v38 = vpop.f32.mrf.mxu0  ;;  %v1259_v49 = vrot.slane %v1258_v24, 4 }
 0x13e   : > { %v1268_v41 = vor.u32 %v1267_v35, %v1263_v34  ;;  %v935_v43 = vmax.f32 %v764_v38, 0.0 }
 0x13f   : > { %v1271_v46 = vshll.u32 %v4913_v37, 16  ;;  %v2106_v27 = vrot.slane %v4913_v37, 5  ;;  %v5378_v48 = vpop.f32.mrf.mxu0  ;;  %v1264_v0 = vsel %vm6293_vm6, %v1259_v49, %v1263_v34  ;;  %v5991_v37 = vld [vmem:[%s7719_s2 + $0x1a0] sm:$0xff]  }
 0x140   : > { %v981_v50 = vpack.c.bf16 %v935_v43, %v934_v29  ;;  %v4914_v51 = vpack.c.bf16 %v935_v43, %v935_v43  ;;  %v1269_v54 = vrot.slane %v1268_v41, 4  ;;  %5749 = vmatprep.subr.bf16.mxu0 %v5991_v37 }
 0x141   : > { %v1273_v55 = vrot.slane %v1271_v46, 5  ;;  %v769_v57 = vpop.f32.mrf.mxu0  ;;  %v2107_v59 = vsel %vm6282_vm3, %v2105_v45, %v2106_v27  ;;  %5750 = vmatpush3.bf16.msra.mxu0 %v5991_v37 }
 0x142   : > { %v1276_v60 = vshrl.u32 %v4914_v51, 16  ;;  %v1279_v61 = vshll.u32 %v4914_v51, 16  ;;  %v936_v62 = vmax.f32 %v769_v57, 0.0  ;;  %v6385_v4 = vcombine.low %v2104_v40, %v2107_v59  ;;  %v5992_v57 = vld [vmem:[%s7719_s2 + $0x198] sm:$0xff]  }
 0x143   : > { %v5381_v63 = vpop.f32.mrf.mxu0  ;;  %v1274_v3 = vsel %vm6293_vm6, %v1269_v54, %v1273_v55  ;;  %v4660_v13 = vrot.slane %v4914_v51, 9  ;;  %v1043_v23 = vunpack.c.h.b16 %v981_v50  ;;  %v5990_v55 = vld [vmem:[%s7719_s2] sm:$0xff]   ;;  %5751 = vmatprep.subr.bf16.mxu0 %v5992_v57 }
 0x144   : > { %v1278_v5 = vrot.slane %v1276_v60, 4  ;;  %v1281_v7 = vrot.slane %v1279_v61, 5  ;;  %v6387_v8 = vcombine.low %v1264_v0, %v1274_v3  ;;  %v4915_v10 = vpack.c.bf16 %v936_v62, %v936_v62  ;;  %5517 = vmatprep.subr.bf16.mxu1 %v5990_v55 }
 0x145   : > { %v772_v11 = vpop.f32.mrf.mxu0  ;;  %5518 = vmatpush3.bf16.msra.mxu1 %v5990_v55  ;;  %5752 = vmatpush3.bf16.msra.mxu0 %v5992_v57 }
 0x146   : > { %7741 = vst [vmem:[#allocation7_spill] sm:$0xff] %v6387_v8  ;;  %v937_v2 = vmax.f32 %v772_v11, 0.0  ;;  %5479 = vmatprep.mubr.bf16.mxu1 %v6387_v8  ;;  %5668 = vmatmul.mubr.bf16.gmra.mxu0 %v6387_v8  ;;  %v1282_v15 = vor.u32 %v1281_v7, %v1278_v5  ;;  %v1285_v17 = vshll.u32 %v4915_v10, 16  ;;  %v1289_v18 = vshrl.u32 %v4915_v10, 16 }
 0x147   : > { %v2110_v20 = vrot.slane %v4915_v10, 5  ;;  %v5382_v22 = vpop.f32.mrf.mxu0  ;;  %5551 = vmatprep.subr.bf16.mxu1 %v6425_v12 }
 0x148   : > { %v982_v24 = vpack.c.bf16 %v937_v2, %v936_v62  ;;  %v4916_v28 = vpack.c.bf16 %v937_v2, %v937_v2  ;;  %v1287_v29 = vrot.slane %v1285_v17, 5  ;;  %v1291_v31 = vrot.slane %v1289_v18, 4 }
 0x149   : > { %v2112_v34 = vrot.slane %v2110_v20, 4  ;;  %v777_v35 = vpop.f32.mrf.mxu0  ;;  %v2111_v38 = vsel %vm6282_vm3, %v4660_v13, %v2110_v20  ;;  %v1283_v46 = vrot.slane %v1282_v15, 4  ;;  %v5994_v13 = vld [vmem:[%s7719_s2 + $0x190] sm:$0xff]  }
 0x14a   : > { %v1044_v39 = vunpack.c.l.b16 %v982_v24  ;;  %v1295_v40 = vshll.u32 %v4916_v28, 16  ;;  %v2113_v41 = vrot.slane %v4916_v28, 5  ;;  %v938_v43 = vmax.f32 %v777_v35, 0.0  ;;  %5753 = vmatprep.subr.bf16.mxu0 %v5994_v13 }
 0x14b   : > { %v1292_v44 = vor.u32 %v1291_v31, %v1287_v29  ;;  %v5385_v45 = vpop.f32.mrf.mxu0  ;;  %v1288_v63 = vsel %vm6293_vm6, %v1283_v46, %v1287_v29  ;;  %5754 = vmatpush3.bf16.msra.mxu0 %v5994_v13 }
 0x14c   : > { %v1297_v27 = vrot.slane %v1295_v40, 5  ;;  %v4917_v48 = vpack.c.bf16 %v938_v43, %v938_v43  ;;  %v6402_v49 = vpack.c.b16 %v1044_v39, %v1043_v23  ;;  %v2114_v50 = vsel %vm6282_vm3, %v2112_v34, %v2113_v41  ;;  %v5995_v34 = vld [vmem:[%s7719_s2 + $0x188] sm:$0xff]  }
 0x14d   : > { %v780_v51 = vpop.f32.mrf.mxu0  ;;  %v1293_v54 = vrot.slane %v1292_v44, 4  ;;  %v6412_v58 = vcombine.low %v2111_v38, %v2114_v50  ;;  %5755 = vmatprep.subr.bf16.mxu0 %v5995_v34 }
 0x14e   : > { %v1300_v59 = vshrl.u32 %v4917_v48, 16  ;;  %v1303_v60 = vshll.u32 %v4917_v48, 16  ;;  %v939_v61 = vmax.f32 %v780_v51, 0.0  ;;  %v4661_v20 = vrot.slane %v4917_v48, 9  ;;  %v5997_v51 = vld [vmem:[%s7719_s2 + $0x180] sm:$0xff]  }
 0x14f   : > { %v5386_v62 = vpop.f32.mrf.mxu0  ;;  %v1298_v0 = vsel %vm6293_vm6, %v1293_v54, %v1297_v27  ;;  %5756 = vmatpush3.bf16.msra.mxu0 %v5995_v34 }
 0x150   : > { %v1302_v3 = vrot.slane %v1300_v59, 4  ;;  %v1305_v5 = vrot.slane %v1303_v60, 5  ;;  %v6418_v7 = vpack.c.bf16 %v939_v61, %v938_v43  ;;  %v4918_v9 = vpack.c.bf16 %v939_v61, %v939_v61  ;;  %5757 = vmatprep.subr.bf16.mxu0 %v5997_v51 }
 0x151   : > { %v785_v10 = vpop.f32.mrf.mxu0  ;;  %v6420_v11 = vcombine.low %v1288_v63, %v1298_v0 }
 0x152   : > { %v1309_v2 = vshll.u32 %v4918_v9, 16  ;;  %v1313_v15 = vshrl.u32 %v4918_v9, 16  ;;  %v2117_v17 = vrot.slane %v4918_v9, 5  ;;  %v1306_v18 = vor.u32 %v1305_v5, %v1302_v3 }
 0x153   : > { %7742 = vst [vmem:[#allocation8_spill] sm:$0xff] %v6420_v11  ;;  %v940_v22 = vmax.f32 %v785_v10, 0.0  ;;  %5480 = vmatmul.mubr.bf16.gmra.mxu1 %v6420_v11  ;;  %5671 = vmatprep.mubr.bf16.mxu0 %v6420_v11  ;;  %v5389_v23 = vpop.f32.mrf.mxu0 }
 0x154   : > { %v1311_v24 = vrot.slane %v1309_v2, 5  ;;  %v1315_v28 = vrot.slane %v1313_v15, 4  ;;  %v2118_v35 = vsel %vm6282_vm3, %v4661_v20, %v2117_v17  ;;  %v2119_v39 = vrot.slane %v2117_v17, 4  ;;  %5758 = vmatpush3.bf16.msra.mxu0 %v5997_v51 }
 0x155   : > { %v4919_v29 = vpack.c.bf16 %v940_v22, %v940_v22  ;;  %v788_v31 = vpop.f32.mrf.mxu0  ;;  %v1307_v44 = vrot.slane %v1306_v18, 4 }
 0x156   : > { %v1316_v37 = vor.u32 %v1315_v28, %v1311_v24  ;;  %v941_v38 = vmax.f32 %v788_v31, 0.0 }
 0x157   : > { %v1319_v40 = vshll.u32 %v4919_v29, 16  ;;  %v2120_v41 = vrot.slane %v4919_v29, 5  ;;  %v5390_v43 = vpop.f32.mrf.mxu0  ;;  %v1312_v61 = vsel %vm6293_vm6, %v1307_v44, %v1311_v24 }
 0x158   : > { %v984_v45 = vpack.c.bf16 %v941_v38, %v940_v22  ;;  %v4920_v46 = vpack.c.bf16 %v941_v38, %v941_v38  ;;  %v1317_v27 = vrot.slane %v1316_v37, 4 }
 0x159   : > { %v1321_v48 = vrot.slane %v1319_v40, 5  ;;  %v793_v50 = vpop.f32.mrf.mxu0  ;;  %v2121_v54 = vsel %vm6282_vm3, %v2119_v39, %v2120_v41 }
 0x15a   : > { %v1324_v55 = vshrl.u32 %v4920_v46, 16  ;;  %v1327_v57 = vshll.u32 %v4920_v46, 16  ;;  %v942_v59 = vmax.f32 %v793_v50, 0.0  ;;  %v6447_v63 = vcombine.low %v2118_v35, %v2121_v54 }
 0x15b   : > { %v5393_v60 = vpop.f32.mrf.mxu0  ;;  %v1322_v62 = vsel %vm6293_vm6, %v1317_v27, %v1321_v48  ;;  %v4662_v13 = vrot.slane %v4920_v46, 9  ;;  %v1049_v23 = vunpack.c.h.b16 %v984_v45 }
 0x15c   : > { %v1326_v0 = vrot.slane %v1324_v55, 4  ;;  %v1329_v3 = vrot.slane %v1327_v57, 5  ;;  %v6449_v5 = vcombine.low %v1312_v61, %v1322_v62  ;;  %v4921_v9 = vpack.c.bf16 %v942_v59, %v942_v59 }
 0x15d   : > { %v796_v10 = vpop.f32.mrf.mxu0 }
 0x15e   : > { %7743 = vst [vmem:[#allocation9_spill] sm:$0xff] %v6449_v5  ;;  %v943_v2 = vmax.f32 %v796_v10, 0.0  ;;  %5483 = vmatprep.mubr.bf16.mxu1 %v6449_v5  ;;  %5672 = vmatmul.mubr.bf16.gmra.mxu0 %v6449_v5  ;;  %v1330_v15 = vor.u32 %v1329_v3, %v1326_v0  ;;  %v1333_v17 = vshll.u32 %v4921_v9, 16  ;;  %v1337_v18 = vshrl.u32 %v4921_v9, 16 }
 0x15f   : > { %v2124_v20 = vrot.slane %v4921_v9, 5  ;;  %v5394_v22 = vpop.f32.mrf.mxu0 }
 0x160   : > { %v985_v24 = vpack.c.bf16 %v943_v2, %v942_v59  ;;  %v4922_v28 = vpack.c.bf16 %v943_v2, %v943_v2  ;;  %v1335_v29 = vrot.slane %v1333_v17, 5  ;;  %v1339_v31 = vrot.slane %v1337_v18, 4 }
 0x161   : > { %v2126_v34 = vrot.slane %v2124_v20, 4  ;;  %v801_v35 = vpop.f32.mrf.mxu0  ;;  %v2125_v37 = vsel %vm6282_vm3, %v4662_v13, %v2124_v20  ;;  %v1331_v46 = vrot.slane %v1330_v15, 4 }
 0x162   : > { %v1050_v38 = vunpack.c.l.b16 %v985_v24  ;;  %v1343_v39 = vshll.u32 %v4922_v28, 16  ;;  %v2127_v40 = vrot.slane %v4922_v28, 5  ;;  %v944_v41 = vmax.f32 %v801_v35, 0.0 }
 0x163   : > { %v1340_v43 = vor.u32 %v1339_v31, %v1335_v29  ;;  %v5397_v44 = vpop.f32.mrf.mxu0  ;;  %v1336_v62 = vsel %vm6293_vm6, %v1331_v46, %v1335_v29 }
 0x164   : > { %v1345_v27 = vrot.slane %v1343_v39, 5  ;;  %v4923_v48 = vpack.c.bf16 %v944_v41, %v944_v41  ;;  %v6455_v50 = vpack.c.b16 %v1050_v38, %v1049_v23  ;;  %v2128_v45 = vsel %vm6282_vm3, %v2126_v34, %v2127_v40 }
 0x165   : > { %v804_v51 = vpop.f32.mrf.mxu0  ;;  %v1341_v54 = vrot.slane %v1340_v43, 4  ;;  %v6459_v55 = vcombine.low %v2125_v37, %v2128_v45 }
 0x166   : > { %v1348_v57 = vshrl.u32 %v4923_v48, 16  ;;  %v1351_v59 = vshll.u32 %v4923_v48, 16  ;;  %v945_v60 = vmax.f32 %v804_v51, 0.0  ;;  %v4663_v23 = vrot.slane %v4923_v48, 9 }
 0x167   : > { %v5398_v61 = vpop.f32.mrf.mxu0  ;;  %v1346_v0 = vsel %vm6293_vm6, %v1341_v54, %v1345_v27 }
 0x168   : > { %v1350_v3 = vrot.slane %v1348_v57, 4  ;;  %v1353_v9 = vrot.slane %v1351_v59, 5  ;;  %v6465_v10 = vpack.c.bf16 %v945_v60, %v944_v41  ;;  %v4924_v13 = vpack.c.bf16 %v945_v60, %v945_v60 }
 0x169   : > { %v809_v2 = vpop.f32.mrf.mxu0  ;;  %v6467_v15 = vcombine.low %v1336_v62, %v1346_v0 }
 0x16a   : > { %v1357_v17 = vshll.u32 %v4924_v13, 16  ;;  %v1361_v18 = vshrl.u32 %v4924_v13, 16  ;;  %v2131_v20 = vrot.slane %v4924_v13, 5  ;;  %v1354_v22 = vor.u32 %v1353_v9, %v1350_v3 }
 0x16b   : > { %7744 = vst [vmem:[#allocation10_spill] sm:$0xff] %v6467_v15  ;;  %v946_v24 = vmax.f32 %v809_v2, 0.0  ;;  %5484 = vmatmul.mubr.bf16.gmra.mxu1 %v6467_v15  ;;  %5675 = vmatprep.mubr.bf16.mxu0 %v6467_v15  ;;  %v5401_v28 = vpop.f32.mrf.mxu0 }
 0x16c   : > { %v1359_v29 = vrot.slane %v1357_v17, 5  ;;  %v1363_v31 = vrot.slane %v1361_v18, 4  ;;  %v2132_v37 = vsel %vm6282_vm3, %v4663_v23, %v2131_v20  ;;  %v2133_v40 = vrot.slane %v2131_v20, 4 }
 0x16d   : > { %v4925_v34 = vpack.c.bf16 %v946_v24, %v946_v24  ;;  %v812_v35 = vpop.f32.mrf.mxu0  ;;  %v1355_v46 = vrot.slane %v1354_v22, 4 }
 0x16e   : > { %v1364_v38 = vor.u32 %v1363_v31, %v1359_v29  ;;  %v947_v39 = vmax.f32 %v812_v35, 0.0 }
 0x16f   : > { %v1367_v41 = vshll.u32 %v4925_v34, 16  ;;  %v2134_v43 = vrot.slane %v4925_v34, 5  ;;  %v5402_v44 = vpop.f32.mrf.mxu0  ;;  %v1360_v0 = vsel %vm6293_vm6, %v1355_v46, %v1359_v29 }
 0x170   : > { %v987_v27 = vpack.c.bf16 %v947_v39, %v946_v24  ;;  %v4926_v48 = vpack.c.bf16 %v947_v39, %v947_v39  ;;  %v1365_v45 = vrot.slane %v1364_v38, 4 }
 0x171   : > { %v1369_v51 = vrot.slane %v1367_v41, 5  ;;  %v817_v54 = vpop.f32.mrf.mxu0  ;;  %v2135_v57 = vsel %vm6282_vm3, %v2133_v40, %v2134_v43 }
 0x172   : > { %v1372_v59 = vshrl.u32 %v4926_v48, 16  ;;  %v1375_v60 = vshll.u32 %v4926_v48, 16  ;;  %v948_v61 = vmax.f32 %v817_v54, 0.0  ;;  %v6479_v9 = vcombine.low %v2132_v37, %v2135_v57 }
 0x173   : > { %v5405_v62 = vpop.f32.mrf.mxu0  ;;  %v1370_v3 = vsel %vm6293_vm6, %v1365_v45, %v1369_v51  ;;  %v4664_v22 = vrot.slane %v4926_v48, 9  ;;  %v1055_v35 = vunpack.c.h.b16 %v987_v27 }
 0x174   : > { %v1374_v13 = vrot.slane %v1372_v59, 4  ;;  %v1377_v2 = vrot.slane %v1375_v60, 5  ;;  %v6481_v17 = vcombine.low %v1360_v0, %v1370_v3  ;;  %v4927_v18 = vpack.c.bf16 %v948_v61, %v948_v61 }
 0x175   : > { %v820_v20 = vpop.f32.mrf.mxu0 }
 0x176   : > { %7745 = vst [vmem:[#allocation11_spill] sm:$0xff] %v6481_v17  ;;  %v949_v23 = vmax.f32 %v820_v20, 0.0  ;;  %5487 = vmatprep.mubr.bf16.mxu1 %v6481_v17  ;;  %5676 = vmatmul.mubr.bf16.gmra.mxu0 %v6481_v17  ;;  %v1378_v24 = vor.u32 %v1377_v2, %v1374_v13  ;;  %v1381_v28 = vshll.u32 %v4927_v18, 16  ;;  %v1385_v29 = vshrl.u32 %v4927_v18, 16  ;;  %v6494_v13 = vld [vmem:[%s7719_s2 + $0x238] sm:$0xff]  }
 0x177   : > { %v2138_v31 = vrot.slane %v4927_v18, 5  ;;  %v5406_v34 = vpop.f32.mrf.mxu0  ;;  %5839 = vmatprep.subr.bf16.mxu0 %v6494_v13 }
 0x178   : > { %v988_v37 = vpack.c.bf16 %v949_v23, %v948_v61  ;;  %v4928_v38 = vpack.c.bf16 %v949_v23, %v949_v23  ;;  %v1383_v39 = vrot.slane %v1381_v28, 5  ;;  %v1387_v40 = vrot.slane %v1385_v29, 4 }
 0x179   : > { %v2140_v41 = vrot.slane %v2138_v31, 4  ;;  %v825_v43 = vpop.f32.mrf.mxu0  ;;  %v2139_v44 = vsel %vm6282_vm3, %v4664_v22, %v2138_v31  ;;  %v1379_v59 = vrot.slane %v1378_v24, 4 }
 0x17a   : > { %v1056_v46 = vunpack.c.l.b16 %v988_v37  ;;  %v1391_v48 = vshll.u32 %v4928_v38, 16  ;;  %v2141_v45 = vrot.slane %v4928_v38, 5  ;;  %v950_v51 = vmax.f32 %v825_v43, 0.0 }
 0x17b   : > { %v1388_v54 = vor.u32 %v1387_v40, %v1383_v39  ;;  %v5409_v57 = vpop.f32.mrf.mxu0  ;;  %v1384_v24 = vsel %vm6293_vm6, %v1379_v59, %v1383_v39 }
 0x17c   : > { %v1393_v60 = vrot.slane %v1391_v48, 5  ;;  %v4929_v62 = vpack.c.bf16 %v950_v51, %v950_v51  ;;  %v6487_v0 = vpack.c.b16 %v1056_v46, %v1055_v35  ;;  %v2142_v27 = vsel %vm6282_vm3, %v2140_v41, %v2141_v45 }
 0x17d   : > { %v828_v61 = vpop.f32.mrf.mxu0  ;;  %v1389_v3 = vrot.slane %v1388_v54, 4  ;;  %v6496_v2 = vcombine.low %v2139_v44, %v2142_v27 }
 0x17e   : > { %v1396_v18 = vshrl.u32 %v4929_v62, 16  ;;  %v1399_v20 = vshll.u32 %v4929_v62, 16  ;;  %v951_v22 = vmax.f32 %v828_v61, 0.0  ;;  %v4665_v46 = vrot.slane %v4929_v62, 9 }
 0x17f   : > { %v5410_v23 = vpop.f32.mrf.mxu0  ;;  %v1394_v28 = vsel %vm6293_vm6, %v1389_v3, %v1393_v60 }
 0x180   : > { %v1398_v29 = vrot.slane %v1396_v18, 4  ;;  %v1401_v31 = vrot.slane %v1399_v20, 5  ;;  %v6503_v34 = vpack.c.bf16 %v951_v22, %v950_v51  ;;  %v4930_v35 = vpack.c.bf16 %v951_v22, %v951_v22 }
 0x181   : > { %v833_v37 = vpop.f32.mrf.mxu0  ;;  %v6505_v38 = vcombine.low %v1384_v24, %v1394_v28 }
 0x182   : > { %v1405_v40 = vshll.u32 %v4930_v35, 16  ;;  %v1409_v41 = vshrl.u32 %v4930_v35, 16  ;;  %v2145_v43 = vrot.slane %v4930_v35, 5  ;;  %v1402_v44 = vor.u32 %v1401_v31, %v1398_v29 }
 0x183   : > { %7746 = vst [vmem:[#allocation12_spill] sm:$0xff] %v6505_v38  ;;  %v952_v48 = vmax.f32 %v833_v37, 0.0  ;;  %5488 = vmatmul.mubr.bf16.gmra.mxu1 %v6505_v38  ;;  %5679 = vmatprep.mubr.bf16.mxu0 %v6505_v38  ;;  %v5413_v39 = vpop.f32.mrf.mxu0 }
 0x184   : > { %v1407_v45 = vrot.slane %v1405_v40, 5  ;;  %v1411_v54 = vrot.slane %v1409_v41, 4  ;;  %v2146_v59 = vsel %vm6282_vm3, %v4665_v46, %v2145_v43  ;;  %v2147_v61 = vrot.slane %v2145_v43, 4 }
 0x185   : > { %v4931_v57 = vpack.c.bf16 %v952_v48, %v952_v48  ;;  %v836_v51 = vpop.f32.mrf.mxu0  ;;  %v1403_v62 = vrot.slane %v1402_v44, 4 }
 0x186   : > { %v1412_v60 = vor.u32 %v1411_v54, %v1407_v45  ;;  %v953_v27 = vmax.f32 %v836_v51, 0.0 }
 0x187   : > { %v1415_v3 = vshll.u32 %v4931_v57, 16  ;;  %v2148_v18 = vrot.slane %v4931_v57, 5  ;;  %v5414_v20 = vpop.f32.mrf.mxu0  ;;  %v1408_v46 = vsel %vm6293_vm6, %v1403_v62, %v1407_v45 }
 0x188   : > { %v990_v22 = vpack.c.bf16 %v953_v27, %v952_v48  ;;  %v4932_v23 = vpack.c.bf16 %v953_v27, %v953_v27  ;;  %v1413_v24 = vrot.slane %v1412_v60, 4 }
 0x189   : > { %v1417_v28 = vrot.slane %v1415_v3, 5  ;;  %v841_v29 = vpop.f32.mrf.mxu0  ;;  %v2149_v31 = vsel %vm6282_vm3, %v2147_v61, %v2148_v18 }
 0x18a   : > { %v1420_v35 = vshrl.u32 %v4932_v23, 16  ;;  %v1423_v37 = vshll.u32 %v4932_v23, 16  ;;  %v954_v40 = vmax.f32 %v841_v29, 0.0  ;;  %v6517_v39 = vcombine.low %v2146_v59, %v2149_v31 }
 0x18b   : > { %v5417_v41 = vpop.f32.mrf.mxu0  ;;  %v1418_v43 = vsel %vm6293_vm6, %v1413_v24, %v1417_v28  ;;  %v4666_v60 = vrot.slane %v4932_v23, 9  ;;  %v1061_v62 = vunpack.c.h.b16 %v990_v22 }
 0x18c   : > { %v1422_v44 = vrot.slane %v1420_v35, 4  ;;  %v1425_v48 = vrot.slane %v1423_v37, 5  ;;  %v6519_v54 = vcombine.low %v1408_v46, %v1418_v43  ;;  %v4933_v57 = vpack.c.bf16 %v954_v40, %v954_v40 }
 0x18d   : > { %v844_v51 = vpop.f32.mrf.mxu0 }
 0x18e   : > { %7747 = vst [vmem:[#allocation13_spill] sm:$0xff] %v6519_v54  ;;  %v955_v27 = vmax.f32 %v844_v51, 0.0  ;;  %5491 = vmatprep.mubr.bf16.mxu1 %v6519_v54  ;;  %5680 = vmatmul.mubr.bf16.gmra.mxu0 %v6519_v54  ;;  %v1426_v61 = vor.u32 %v1425_v48, %v1422_v44  ;;  %v1429_v3 = vshll.u32 %v4933_v57, 16  ;;  %v1433_v45 = vshrl.u32 %v4933_v57, 16 }
 0x18f   : > { %v2152_v18 = vrot.slane %v4933_v57, 5  ;;  %v5418_v20 = vpop.f32.mrf.mxu0 }
 0x190   : > { %v991_v59 = vpack.c.bf16 %v955_v27, %v954_v40  ;;  %v4934_v24 = vpack.c.bf16 %v955_v27, %v955_v27  ;;  %v1431_v28 = vrot.slane %v1429_v3, 5  ;;  %v1435_v29 = vrot.slane %v1433_v45, 4 }
 0x191   : > { %v2154_v31 = vrot.slane %v2152_v18, 4  ;;  %v849_v35 = vpop.f32.mrf.mxu0  ;;  %v2153_v23 = vsel %vm6282_vm3, %v4666_v60, %v2152_v18  ;;  %v1427_v48 = vrot.slane %v1426_v61, 4 }
 0x192   : > { %v1062_v37 = vunpack.c.l.b16 %v991_v59  ;;  %v1439_v41 = vshll.u32 %v4934_v24, 16  ;;  %v2155_v46 = vrot.slane %v4934_v24, 5  ;;  %v956_v43 = vmax.f32 %v849_v35, 0.0 }
 0x193   : > { %v1436_v51 = vor.u32 %v1435_v29, %v1431_v28  ;;  %v5421_v44 = vpop.f32.mrf.mxu0  ;;  %v1432_v24 = vsel %vm6293_vm6, %v1427_v48, %v1431_v28 }
 0x194   : > { %v1441_v56 = vrot.slane %v1439_v41, 5  ;;  %v4935_v57 = vpack.c.bf16 %v956_v43, %v956_v43  ;;  %v6525_v20 = vpack.c.b16 %v1062_v37, %v1061_v62  ;;  %v2156_v22 = vsel %vm6282_vm3, %v2154_v31, %v2155_v46 }
 0x195   : > { %v852_v40 = vpop.f32.mrf.mxu0  ;;  %v1437_v27 = vrot.slane %v1436_v51, 4  ;;  %v6529_v3 = vcombine.low %v2153_v23, %v2156_v22 }
 0x196   : > { %v1444_v45 = vshrl.u32 %v4935_v57, 16  ;;  %v1447_v60 = vshll.u32 %v4935_v57, 16  ;;  %v957_v18 = vmax.f32 %v852_v40, 0.0  ;;  %v4667_v22 = vrot.slane %v4935_v57, 9 }
 0x197   : > { %v5422_v59 = vpop.f32.mrf.mxu0  ;;  %v1442_v61 = vsel %vm6293_vm6, %v1437_v27, %v1441_v56 }
 0x198   : > { %v1446_v29 = vrot.slane %v1444_v45, 4  ;;  %v1449_v62 = vrot.slane %v1447_v60, 5  ;;  %v6535_v35 = vpack.c.bf16 %v957_v18, %v956_v43  ;;  %v4936_v37 = vpack.c.bf16 %v957_v18, %v957_v18 }
 0x199   : > { %v857_v31 = vpop.f32.mrf.mxu0  ;;  %v6537_v41 = vcombine.low %v1432_v24, %v1442_v61 }
 0x19a   : > { %v1453_v23 = vshll.u32 %v4936_v37, 16  ;;  %v1457_v46 = vshrl.u32 %v4936_v37, 16  ;;  %v2159_v51 = vrot.slane %v4936_v37, 5  ;;  %v1450_v44 = vor.u32 %v1449_v62, %v1446_v29 }
 0x19b   : > { %7748 = vst [vmem:[#allocation14_spill] sm:$0xff] %v6537_v41  ;;  %v958_v40 = vmax.f32 %v857_v31, 0.0  ;;  %5492 = vmatmul.mubr.bf16.gmra.mxu1 %v6537_v41  ;;  %5683 = vmatprep.mubr.bf16.mxu0 %v6537_v41  ;;  %v5425_v28 = vpop.f32.mrf.mxu0 }
 0x19c   : > { %v1455_v56 = vrot.slane %v1453_v23, 5  ;;  %v1459_v48 = vrot.slane %v1457_v46, 4  ;;  %v2160_v45 = vsel %vm6282_vm3, %v4667_v22, %v2159_v51  ;;  %v2161_v59 = vrot.slane %v2159_v51, 4 }
 0x19d   : > { %v4937_v27 = vpack.c.bf16 %v958_v40, %v958_v40  ;;  %v860_v43 = vpop.f32.mrf.mxu0  ;;  %v1451_v57 = vrot.slane %v1450_v44, 4 }
 0x19e   : > { %v1460_v60 = vor.u32 %v1459_v48, %v1455_v56  ;;  %v959_v18 = vmax.f32 %v860_v43, 0.0 }
 0x19f   : > { %v1463_v24 = vshll.u32 %v4937_v27, 16  ;;  %v2162_v61 = vrot.slane %v4937_v27, 5  ;;  %v5426_v29 = vpop.f32.mrf.mxu0  ;;  %v1456_v22 = vsel %vm6293_vm6, %v1451_v57, %v1455_v56 }
 0x1a0   : > { %v993_v62 = vpack.c.bf16 %v959_v18, %v958_v40  ;;  %v4938_v37 = vpack.c.bf16 %v959_v18, %v959_v18  ;;  %v1461_v31 = vrot.slane %v1460_v60, 4 }
 0x1a1   : > { %v1465_v25 = vrot.slane %v1463_v24, 5  ;;  %v865_v41 = vpop.f32.mrf.mxu0  ;;  %v2163_v23 = vsel %vm6282_vm3, %v2161_v59, %v2162_v61 }
 0x1a2   : > { %v1468_v46 = vshrl.u32 %v4938_v37, 16  ;;  %v1471_v28 = vshll.u32 %v4938_v37, 16  ;;  %v960_v54 = vmax.f32 %v865_v41, 0.0  ;;  %v6549_v48 = vcombine.low %v2160_v45, %v2163_v23 }
 0x1a3   : > { %v5429_v38 = vpop.f32.mrf.mxu0  ;;  %v1466_v51 = vsel %vm6293_vm6, %v1461_v31, %v1465_v25  ;;  %v4668_v18 = vrot.slane %v4938_v37, 9  ;;  %v1067_v25 = vunpack.c.h.b16 %v993_v62 }
 0x1a4   : > { %v1470_v44 = vrot.slane %v1468_v46, 4  ;;  %v1473_v40 = vrot.slane %v1471_v28, 5  ;;  %v6551_v27 = vcombine.low %v1456_v22, %v1466_v51  ;;  %v4939_v43 = vpack.c.bf16 %v960_v54, %v960_v54 }
 0x1a5   : > { %v868_v60 = vpop.f32.mrf.mxu0 }
 0x1a6   : > { %7749 = vst [vmem:[#allocation15_spill] sm:$0xff] %v6551_v27  ;;  %v961_v59 = vmax.f32 %v868_v60, 0.0  ;;  %5495 = vmatprep.mubr.bf16.mxu1 %v6551_v27  ;;  %5684 = vmatmul.mubr.bf16.gmra.mxu0 %v6551_v27  ;;  %v1474_v38 = vor.u32 %v1473_v40, %v1470_v44  ;;  %v1477_v41 = vshll.u32 %v4939_v43, 16  ;;  %v1481_v56 = vshrl.u32 %v4939_v43, 16 }
 0x1a7   : > { %v2166_v24 = vrot.slane %v4939_v43, 5  ;;  %v5430_v61 = vpop.f32.mrf.mxu0 }
 0x1a8   : > { %v994_v45 = vpack.c.bf16 %v961_v59, %v960_v54  ;;  %v4940_v29 = vpack.c.bf16 %v961_v59, %v961_v59  ;;  %v1479_v57 = vrot.slane %v1477_v41, 5  ;;  %v1483_v31 = vrot.slane %v1481_v56, 4 }
 0x1a9   : > { %v2168_v23 = vrot.slane %v2166_v24, 4  ;;  %v873_v46 = vpop.f32.mrf.mxu0  ;;  %v2167_v37 = vsel %vm6282_vm3, %v4668_v18, %v2166_v24  ;;  %v1475_v40 = vrot.slane %v1474_v38, 4 }
 0x1aa   : > { %v1068_v28 = vunpack.c.l.b16 %v994_v45  ;;  %v1487_v22 = vshll.u32 %v4940_v29, 16  ;;  %v2169_v51 = vrot.slane %v4940_v29, 5  ;;  %v962_v60 = vmax.f32 %v873_v46, 0.0 }
 0x1ab   : > { %v1484_v27 = vor.u32 %v1483_v31, %v1479_v57  ;;  %v5433_v44 = vpop.f32.mrf.mxu0  ;;  %v1480_v29 = vsel %vm6293_vm6, %v1475_v40, %v1479_v57 }
 0x1ac   : > { %v1489_v17 = vrot.slane %v1487_v22, 5  ;;  %v4941_v43 = vpack.c.bf16 %v962_v60, %v962_v60  ;;  %v6557_v61 = vpack.c.b16 %v1068_v28, %v1067_v25  ;;  %v2170_v54 = vsel %vm6282_vm3, %v2168_v23, %v2169_v51 }
 0x1ad   : > { %v876_v62 = vpop.f32.mrf.mxu0  ;;  %v1485_v59 = vrot.slane %v1484_v27, 4  ;;  %v6561_v41 = vcombine.low %v2167_v37, %v2170_v54 }
 0x1ae   : > { %v1492_v56 = vshrl.u32 %v4941_v43, 16  ;;  %v1495_v18 = vshll.u32 %v4941_v43, 16  ;;  %v963_v24 = vmax.f32 %v876_v62, 0.0  ;;  %v4669_v54 = vrot.slane %v4941_v43, 9 }
 0x1af   : > { %v5434_v45 = vpop.f32.mrf.mxu0  ;;  %v1490_v38 = vsel %vm6293_vm6, %v1485_v59, %v1489_v17 }
 0x1b0   : > { %v1494_v31 = vrot.slane %v1492_v56, 4  ;;  %v1497_v25 = vrot.slane %v1495_v18, 5  ;;  %v6567_v46 = vpack.c.bf16 %v963_v24, %v962_v60  ;;  %v4942_v28 = vpack.c.bf16 %v963_v24, %v963_v24 }
 0x1b1   : > { %v881_v23 = vpop.f32.mrf.mxu0  ;;  %v6569_v22 = vcombine.low %v1480_v29, %v1490_v38 }
 0x1b2   : > { %v1501_v27 = vshll.u32 %v4942_v28, 16  ;;  %v1505_v37 = vshrl.u32 %v4942_v28, 16  ;;  %v2173_v51 = vrot.slane %v4942_v28, 5  ;;  %v1498_v44 = vor.u32 %v1497_v25, %v1494_v31 }
 0x1b3   : > { %7750 = vst [vmem:[#allocation16_spill] sm:$0xff] %v6569_v22  ;;  %v964_v62 = vmax.f32 %v881_v23, 0.0  ;;  %5496 = vmatmul.mubr.bf16.gmra.mxu1 %v6569_v22  ;;  %5687 = vmatprep.mubr.bf16.mxu0 %v6569_v22  ;;  %v5437_v57 = vpop.f32.mrf.mxu0 }
 0x1b4   : > { %v1503_v17 = vrot.slane %v1501_v27, 5  ;;  %v1507_v40 = vrot.slane %v1505_v37, 4  ;;  %v2174_v56 = vsel %vm6282_vm3, %v4669_v54, %v2173_v51  ;;  %v2175_v45 = vrot.slane %v2173_v51, 4 }
 0x1b5   : > { %v4943_v59 = vpack.c.bf16 %v964_v62, %v964_v62  ;;  %v884_v60 = vpop.f32.mrf.mxu0  ;;  %v1499_v43 = vrot.slane %v1498_v44, 4 }
 0x1b6   : > { %v1508_v18 = vor.u32 %v1507_v40, %v1503_v17  ;;  %v965_v24 = vmax.f32 %v884_v60, 0.0 }
 0x1b7   : > { %v1511_v29 = vshll.u32 %v4943_v59, 16  ;;  %v2176_v38 = vrot.slane %v4943_v59, 5  ;;  %v5438_v31 = vpop.f32.mrf.mxu0  ;;  %v1504_v54 = vsel %vm6293_vm6, %v1499_v43, %v1503_v17 }
 0x1b8   : > { %v996_v25 = vpack.c.bf16 %v965_v24, %v964_v62  ;;  %v4944_v28 = vpack.c.bf16 %v965_v24, %v965_v24  ;;  %v1509_v23 = vrot.slane %v1508_v18, 4 }
 0x1b9   : > { %v1513_v15 = vrot.slane %v1511_v29, 5  ;;  %v889_v22 = vpop.f32.mrf.mxu0  ;;  %v2177_v27 = vsel %vm6282_vm3, %v2175_v45, %v2176_v38 }
 0x1ba   : > { %v1516_v37 = vshrl.u32 %v4944_v28, 16  ;;  %v1519_v57 = vshll.u32 %v4944_v28, 16  ;;  %v966_v5 = vmax.f32 %v889_v22, 0.0  ;;  %v6581_v40 = vcombine.low %v2174_v56, %v2177_v27 }
 0x1bb   : > { %v5441_v11 = vpop.f32.mrf.mxu0  ;;  %v1514_v51 = vsel %vm6293_vm6, %v1509_v23, %v1513_v15  ;;  %v4670_v24 = vrot.slane %v4944_v28, 9  ;;  %v1073_v15 = vunpack.c.h.b16 %v996_v25 }
 0x1bc   : > { %v1518_v44 = vrot.slane %v1516_v37, 4  ;;  %v1521_v62 = vrot.slane %v1519_v57, 5  ;;  %v6583_v59 = vcombine.low %v1504_v54, %v1514_v51  ;;  %v4945_v60 = vpack.c.bf16 %v966_v5, %v966_v5 }
 0x1bd   : > { %v892_v18 = vpop.f32.mrf.mxu0 }
 0x1be   : > { %7751 = vst [vmem:[#allocation17_spill] sm:$0xff] %v6583_v59  ;;  %v967_v45 = vmax.f32 %v892_v18, 0.0  ;;  %5499 = vmatprep.mubr.bf16.mxu1 %v6583_v59  ;;  %5688 = vmatmul.mubr.bf16.gmra.mxu0 %v6583_v59  ;;  %v1522_v11 = vor.u32 %v1521_v62, %v1518_v44  ;;  %v1525_v22 = vshll.u32 %v4945_v60, 16  ;;  %v1529_v17 = vshrl.u32 %v4945_v60, 16 }
 0x1bf   : > { %v2180_v29 = vrot.slane %v4945_v60, 5  ;;  %v5442_v38 = vpop.f32.mrf.mxu0 }
 0x1c0   : > { %v997_v56 = vpack.c.bf16 %v967_v45, %v966_v5  ;;  %v4946_v31 = vpack.c.bf16 %v967_v45, %v967_v45  ;;  %v1527_v43 = vrot.slane %v1525_v22, 5  ;;  %v1531_v23 = vrot.slane %v1529_v17, 4 }
 0x1c1   : > { %v2182_v27 = vrot.slane %v2180_v29, 4  ;;  %v897_v37 = vpop.f32.mrf.mxu0  ;;  %v2181_v28 = vsel %vm6282_vm3, %v4670_v24, %v2180_v29  ;;  %v1523_v62 = vrot.slane %v1522_v11, 4 }
 0x1c2   : > { %v1074_v57 = vunpack.c.l.b16 %v997_v56  ;;  %v1535_v54 = vshll.u32 %v4946_v31, 16  ;;  %v2183_v51 = vrot.slane %v4946_v31, 5  ;;  %v968_v18 = vmax.f32 %v897_v37, 0.0 }
 0x1c3   : > { %v1532_v59 = vor.u32 %v1531_v23, %v1527_v43  ;;  %v5445_v44 = vpop.f32.mrf.mxu0  ;;  %v1528_v11 = vsel %vm6293_vm6, %v1523_v62, %v1527_v43  ;;  %v7753_v62 = vpack.c.bf16 %v6276_v21, %v6270_v14  ;;  %v5996_v21 = vld [vmem:[%s7719_s2 + $0xb0] sm:$0xff]  }
 0x1c4   : > { %v1537_v8 = vrot.slane %v1535_v54, 5  ;;  %v6589_v60 = vpack.c.bf16 %v968_v18, %v968_v18  ;;  %v6591_v25 = vpack.c.b16 %v1074_v57, %v1073_v15  ;;  %v2184_v5 = vsel %vm6282_vm3, %v2182_v27, %v2183_v51 }
 0x1c5   : > { %v900_v45 = vpop.f32.mrf.mxu0  ;;  %v1533_v22 = vrot.slane %v1532_v59, 4  ;;  %v6595_v17 = vcombine.low %v2181_v28, %v2184_v5 }
 0x1c6   : > { %v2768_v24 = vshrl.u32 %v6589_v60, 16  ;;  %v2771_v29 = vshll.u32 %v6589_v60, 16  ;;  %v969_v38 = vmax.f32 %v900_v45, 0.0 }
 0x1c7   : > { %v5446_v56 = vpop.f32.mrf.mxu0  ;;  %v1538_v15 = vsel %vm6293_vm6, %v1533_v22, %v1537_v8 }
 0x1c8   : > { %v2770_v31 = vrot.slane %v2768_v24, 4  ;;  %v2773_v23 = vrot.slane %v2771_v29, 5  ;;  %v6603_v37 = vpack.c.bf16 %v969_v38, %v968_v18  ;;  %v6605_v27 = vpack.c.bf16 %v969_v38, %v969_v38 }
 0x1c9   : > { %v905_v59 = vpop.f32.mrf.mxu0  ;;  %v6607_v28 = vcombine.low %v1528_v11, %v1538_v15 }
 0x1ca   : > { %v2774_v57 = vor.u32 %v2773_v23, %v2770_v31  ;;  %v2777_v54 = vshll.u32 %v6605_v27, 16  ;;  %v2781_v51 = vshrl.u32 %v6605_v27, 16  ;;  %v6611_v44 = vmax.f32 %v905_v59, 0.0 }
 0x1cb   : > { %7752 = vst [vmem:[#allocation18_spill] sm:$0xff] %v6607_v28  ;;  %5500 = vmatmul.mubr.bf16.gmra.mxu1 %v6607_v28  ;;  %5691 = vmatprep.mubr.bf16.mxu0 %v6607_v28  ;;  %v5449_v8 = vpop.f32.mrf.mxu0 }
 0x1cc   : > { %v2779_v43 = vrot.slane %v2777_v54, 5  ;;  %v2783_v18 = vrot.slane %v2781_v51, 4  ;;  %5519 = vmatprep.mubr.bf16.mxu1 %v7753_v62  ;;  %v2775_v5 = vrot.slane %v2774_v57, 4  ;;  %v6620_v45 = vpack.c.bf16 %v6611_v44, %v6611_v44 }
 0x1cd   : > { %v908_v22 = vpop.f32.mrf.mxu0 }
 0x1ce   : > { %v2784_v24 = vor.u32 %v2783_v18, %v2779_v43  ;;  %v6622_v29 = vmax.f32 %v908_v22, 0.0  ;;  %v2787_v38 = vshll.u32 %v6620_v45, 16  ;;  %v2780_v14 = vsel %vm6293_vm6, %v2775_v5, %v2779_v43  ;;  %v5998_v43 = vld [vmem:[%s7719_s2 + $0xa8] sm:$0xff]  }
 0x1cf   : > { %v5450_v56 = vpop.f32.mrf.mxu0 }
 0x1d0   : > { %v2785_v11 = vrot.slane %v2784_v24, 4  ;;  %v2789_v31 = vrot.slane %v2787_v38, 5  ;;  %v6634_v23 = vpack.c.bf16 %v6622_v29, %v6622_v29  ;;  %v7759_v32 = vpack.c.bf16 %v6622_v29, %v6611_v44  ;;  %v6014_v29 = vld [vmem:[%s7719_s2 + $0xe8] sm:$0xff]  }
 0x1d1   : > { %v913_v59 = vpop.f32.mrf.mxu0 }
 0x1d2   : > { %v2790_v57 = vsel %vm6293_vm6, %v2785_v11, %v2789_v31  ;;  %v6639_v54 = vmax.f32 %v913_v59, 0.0  ;;  %v4835_v18 = vrot.slane %v6634_v23, 9  ;;  %v5999_v11 = vld [vmem:[%s7719_s2 + $0xa0] sm:$0xff]   ;;  %v6679_v59 = vld [vmem:[%s7719_s2 + $0x230] sm:$0xff]  }
 0x1d3   : > { %5520 = vmatmul.mubr.bf16.vlgmr.msra.gmra.mxu1 %v6312_v33  ;;  %v5453_v51 = vpop.f32.mrf.mxu0  ;;  %v6643_v8 = vcombine.low %v2780_v14, %v2790_v57  ;;  %v3058_v57 = vrot.slane %v6620_v45, 5  ;;  %v3586_v45 = vshll.u32 %v6634_v23, 16 }
 0x1d4   : > { %5552 = vmatpush3.bf16.msra.mxu1 %v6425_v12  ;;  %5523 = vmatprep.mubr.bf16.mxu1 %v6322_v47  ;;  %v6651_v62 = vpack.c.bf16 %v6639_v54, %v6639_v54  ;;  %v6000_v51 = vld [vmem:[%s7719_s2 + $0x98] sm:$0xff]  }
 0x1d5   : > { %7754 = vst [vmem:[#allocation19_spill] sm:$0xff] %v6643_v8  ;;  %5553 = vmatprep.subr.bf16.mxu1 %v5996_v21  ;;  %v916_v5 = vpop.f32.mrf.mxu0  ;;  %5692 = vmatmul.mubr.bf16.gmra.mxu0 %v6643_v8 }
 0x1d6   : > { %v6654_v22 = vmax.f32 %v916_v5, 0.0  ;;  %5759 = vmatprep.mubr.bf16.mxu0 %v6322_v47  ;;  %v3870_v12 = vrot.slane %v6651_v62, 5  ;;  %v6003_v5 = vld [vmem:[%s7719_s2 + $0x88] sm:$0xff]   ;;  %v3592_v8 = vshll.u32 %v6651_v62, 16  ;;  %v3596_v28 = vshrl.u32 %v6651_v62, 16  ;;  %v6012_v62 = vld [vmem:[%s7719_s2 + $0xf0] sm:$0xff]  }
 0x1d7   : > { %v5454_v24 = vpop.f32.mrf.mxu0 }
 0x1d8   : > { %5554 = vmatpush3.bf16.msra.mxu1 %v5996_v21  ;;  %v6660_v38 = vpack.c.bf16 %v6654_v22, %v6654_v22  ;;  %v3872_v56 = vrot.slane %v3870_v12, 4  ;;  %v6667_v31 = vsel %vm6282_vm3, %v4835_v18, %v3870_v12  ;;  %v6696_v18 = vld [vmem:[%s7719_s2 + $0x228] sm:$0xff]   ;;  %v6006_v12 = vld [vmem:[%s7719_s2 + $0x80] sm:$0xff]   ;;  %v6720_v24 = vld [vmem:[%s7719_s2 + $0x218] sm:$0xff]  }
 0x1d9   : > { %5555 = vmatprep.subr.bf16.mxu1 %v5998_v43  ;;  %7755 = vst [vmem:[#allocation20_spill] sm:$0xff] %v6667_v31 }
 0x1da   : > { %v3873_v14 = vrot.slane %v6660_v38, 5  ;;  %v3602_v44 = vshll.u32 %v6660_v38, 16  ;;  %v6015_v38 = vld [vmem:[%s7719_s2 + $0xe0] sm:$0xff]  }
 0x1db   : > { %5524 = vmatmul.mubr.bf16.gmra.mxu1 %v6349_v1 }
 0x1dc   : > { %5527 = vmatprep.mubr.bf16.mxu1 %v6362_v16  ;;  %5556 = vmatpush3.bf16.msra.mxu1 %v5998_v43  ;;  %v6674_v21 = vsel %vm6282_vm3, %v3872_v56, %v3873_v14  ;;  %v6001_v43 = vld [vmem:[%s7719_s2 + $0x90] sm:$0xff]   ;;  %v6741_v14 = vld [vmem:[%s7719_s2 + $0x208] sm:$0xff]  }
 0x1dd   : > { %7756 = vst [vmem:[#allocation21_spill] sm:$0xff] %v6674_v21  ;;  %5557 = vmatprep.subr.bf16.mxu1 %v5999_v11  ;;  %5760 = vmatmul.mubr.bf16.vlgmr.msra.gmra.mxu0 %v6349_v1  ;;  %v6728_v56 = vld [vmem:[%s7719_s2 + $0x210] sm:$0xff]  }
 0x1de   : > { %5763 = vmatprep.mubr.bf16.mxu0 %v6362_v16  ;;  %5840 = vmatpush3.bf16.msra.mxu0 %v6494_v13  ;;  %v6704_v13 = vld [vmem:[%s7719_s2 + $0x220] sm:$0xff]  }
 0x1df   : > { %5841 = vmatprep.subr.bf16.mxu0 %v6679_v59 }
 0x1e0   : > { %5558 = vmatpush3.bf16.msra.mxu1 %v5999_v11  ;;  %v6009_v11 = vld [vmem:[%s7719_s2 + $0xf8] sm:$0xff]  }
 0x1e1   : > { %5559 = vmatprep.subr.bf16.mxu1 %v6000_v51 }
 0x1e2   : > { %5842 = vmatpush3.bf16.msra.mxu0 %v6679_v59 }
 0x1e3   : > { %5528 = vmatmul.mubr.bf16.gmra.mxu1 %v6402_v49  ;;  %5843 = vmatprep.subr.bf16.mxu0 %v6696_v18 }
 0x1e4   : > { %5531 = vmatprep.mubr.bf16.mxu1 %v6418_v7  ;;  %5560 = vmatpush3.bf16.msra.mxu1 %v6000_v51  ;;  %v6750_v51 = vld [vmem:[%s7719_s2 + $0x200] sm:$0xff]  }
 0x1e5   : > { %5561 = vmatprep.subr.bf16.mxu1 %v6001_v43  ;;  %5764 = vmatmul.mubr.bf16.gmra.mxu0 %v6402_v49 }
 0x1e6   : > { %5767 = vmatprep.mubr.bf16.mxu0 %v6418_v7  ;;  %5844 = vmatpush3.bf16.msra.mxu0 %v6696_v18 }
 0x1e7   : > { %5845 = vmatprep.subr.bf16.mxu0 %v6704_v13 }
 0x1e8   : > { %5562 = vmatpush3.bf16.msra.mxu1 %v6001_v43  ;;  %v3055_v43 = vrot.slane %v6605_v27, 5  ;;  %v1000_v27 = vpack.c.bf16 %v6654_v22, %v6639_v54  ;;  %v1079_v54 = vunpack.c.h.b16 %v7759_v32  ;;  %v6825_v32 = vpop.f32.mrf.mxu1 }
 0x1e9   : > { %5563 = vmatprep.subr.bf16.mxu1 %v6003_v5 }
 0x1ea   : > { %5846 = vmatpush3.bf16.msra.mxu0 %v6704_v13 }
 0x1eb   : > { %5532 = vmatmul.mubr.bf16.gmra.mxu1 %v6455_v50  ;;  %5847 = vmatprep.subr.bf16.mxu0 %v6720_v24 }
 0x1ec   : > { %5535 = vmatprep.mubr.bf16.mxu1 %v6465_v10  ;;  %5564 = vmatpush3.bf16.msra.mxu1 %v6003_v5  ;;  %v4760_v5 = vrot.slane %v6589_v60, 9  ;;  %v3583_v60 = vshrl.u32 %v6634_v23, 16  ;;  %v3594_v23 = vrot.slane %v3592_v8, 5 }
 0x1ed   : > { %5565 = vmatprep.subr.bf16.mxu1 %v6006_v12  ;;  %5768 = vmatmul.mubr.bf16.gmra.mxu0 %v6455_v50 }
 0x1ee   : > { %5771 = vmatprep.mubr.bf16.mxu0 %v6465_v10  ;;  %5848 = vmatpush3.bf16.msra.mxu0 %v6720_v24  ;;  %v3056_v15 = vsel %vm6282_vm3, %v4760_v5, %v3055_v43  ;;  %v3585_v22 = vrot.slane %v3583_v60, 4  ;;  %v6016_v60 = vld [vmem:[%s7719_s2 + $0xd8] sm:$0xff]  }
 0x1ef   : > { %5849 = vmatprep.subr.bf16.mxu0 %v6728_v56 }
 0x1f0   : > { %5566 = vmatpush3.bf16.msra.mxu1 %v6006_v12  ;;  %v3057_v12 = vrot.slane %v3055_v43, 4  ;;  %v7758_v43 = vcombine.low %v6290_v42, %v6299_v53 }
 0x1f1   : > { %5599 = vmatprep.subr.bf16.mxu1 %v6009_v11 }
 0x1f2   : > { %5850 = vmatpush3.bf16.msra.mxu0 %v6728_v56  ;;  %v3059_v21 = vsel %vm6282_vm3, %v3057_v12, %v3058_v57  ;;  %v3598_v57 = vrot.slane %v3596_v28, 4  ;;  %v3604_v12 = vrot.slane %v3602_v44, 5 }
 0x1f3   : > { %5536 = vmatmul.mubr.bf16.gmra.mxu1 %v6487_v0  ;;  %5851 = vmatprep.subr.bf16.mxu0 %v6741_v14  ;;  %v6774_v31 = vcombine.low %v3056_v15, %v3059_v21  ;;  %v1080_v15 = vunpack.c.l.b16 %v1000_v27  ;;  %v3588_v21 = vrot.slane %v3586_v45, 5 }
 0x1f4   : > { %5539 = vmatprep.mubr.bf16.mxu1 %v6503_v34  ;;  %v3599_v53 = vor.u32 %v3598_v57, %v3594_v23 }
 0x1f5   : > { %5772 = vmatmul.mubr.bf16.gmra.mxu0 %v6487_v0  ;;  %7757 = vst [vmem:[#allocation22_spill] sm:$0xff] %v6774_v31  ;;  %v3339_v5 = vpack.c.b16 %v1080_v15, %v1079_v54  ;;  %v3589_v42 = vor.u32 %v3588_v21, %v3585_v22  ;;  %v6019_v54 = vld [vmem:[%s7719_s2 + $0xc0] sm:$0xff]   ;;  %v6832_v15 = vpop.f32.mrf.mxu1  ;;  %v6020_v22 = vld [vmem:[%s7719_s2 + $0x178] sm:$0xff]  }
 0x1f6   : > { %5775 = vmatprep.mubr.bf16.mxu0 %v6503_v34  ;;  %5852 = vmatpush3.bf16.msra.mxu0 %v6741_v14  ;;  %v3600_v8 = vrot.slane %v3599_v53, 4 }
 0x1f7   : > { %5853 = vmatprep.subr.bf16.mxu0 %v6750_v51  ;;  %v3590_v28 = vrot.slane %v3589_v42, 4  ;;  %v6839_v21 = vpop.f32.mrf.mxu1 }
 0x1f8   : > { %v3605_v27 = vsel %vm6293_vm6, %v3600_v8, %v3604_v12  ;;  %v6021_v8 = vld [vmem:[%s7719_s2 + $0x170] sm:$0xff]  }
 0x1fa   : > { %5854 = vmatpush3.bf16.msra.mxu0 %v6750_v51 }
 0x1fb   : > { %5540 = vmatmul.mubr.bf16.gmra.mxu1 %v6525_v20 }
 0x1fc   : > { %5543 = vmatprep.mubr.bf16.mxu1 %v6535_v35 }
 0x1fd   : > { %5776 = vmatmul.mubr.bf16.gmra.mxu0 %v6525_v20 }
 0x1fe   : > { %5779 = vmatprep.mubr.bf16.mxu0 %v6535_v35 }
 0x203   : > { %5544 = vmatmul.mubr.bf16.gmra.mxu1 %v6557_v61 }
 0x204   : > { %5547 = vmatprep.mubr.bf16.mxu1 %v6567_v46 }
 0x205   : > { %5780 = vmatmul.mubr.bf16.gmra.mxu0 %v6557_v61 }
 0x206   : > { %5783 = vmatprep.mubr.bf16.mxu0 %v6567_v46 }
 0x20b   : > { %5548 = vmatmul.mubr.bf16.gmra.mxu1 %v6591_v25 }
 0x20c   : > { %5567 = vmatprep.mubr.bf16.mxu1 %v7758_v43  ;;  %v6017_v43 = vld [vmem:[%s7719_s2 + $0xd0] sm:$0xff]  }
 0x20d   : > { %5784 = vmatmul.mubr.bf16.gmra.mxu0 %v6591_v25 }
 0x20e   : > { %5787 = vmatprep.mubr.bf16.mxu0 %v6603_v37 }
 0x213   : > { %5568 = vmatmul.mubr.bf16.vlgmr.msra.gmra.mxu1 %v6316_v36 }
 0x214   : > { %5600 = vmatpush3.bf16.msra.mxu1 %v6009_v11  ;;  %5571 = vmatprep.mubr.bf16.mxu1 %v6338_v26  ;;  %v3595_v11 = vsel %vm6293_vm6, %v3590_v28, %v3594_v23  ;;  %v6843_v23 = vpop.f32.mrf.mxu1 }
 0x215   : > { %5601 = vmatprep.subr.bf16.mxu1 %v6012_v62  ;;  %5788 = vmatmul.mubr.bf16.gmra.mxu0 %v3339_v5  ;;  %v6811_v45 = vcombine.low %v3595_v11, %v3605_v27  ;;  %v6023_v11 = vld [vmem:[%s7719_s2 + $0x160] sm:$0xff]  }
 0x216   : > { %5855 = vmatprep.mubr.bf16.mxu0 %v6338_v26  ;;  %v6846_v57 = vpop.f32.mrf.mxu1 }
 0x217   : > { %7760 = vst [vmem:[#allocation23_spill] sm:$0xff] %v6811_v45 }
 0x218   : > { %5602 = vmatpush3.bf16.msra.mxu1 %v6012_v62  ;;  %v6849_v62 = vpop.f32.mrf.mxu1 }
 0x219   : > { %5603 = vmatprep.subr.bf16.mxu1 %v6014_v29 }
 0x21a   : > { %v6854_v5 = vpop.f32.mrf.mxu1 }
 0x21b   : > { %5572 = vmatmul.mubr.bf16.gmra.mxu1 %v6353_v6 }
 0x21c   : > { %5575 = vmatprep.mubr.bf16.mxu1 %v6385_v4  ;;  %5604 = vmatpush3.bf16.msra.mxu1 %v6014_v29  ;;  %v6857_v42 = vpop.f32.mrf.mxu1 }
 0x21d   : > { %5605 = vmatprep.subr.bf16.mxu1 %v6015_v38  ;;  %5856 = vmatmul.mubr.bf16.vlgmr.msra.gmra.mxu0 %v6353_v6 }
 0x21e   : > { %5859 = vmatprep.mubr.bf16.mxu0 %v6385_v4  ;;  %v6861_v53 = vpop.f32.mrf.mxu1 }
 0x220   : > { %5606 = vmatpush3.bf16.msra.mxu1 %v6015_v38  ;;  %v6865_v44 = vpop.f32.mrf.mxu1 }
 0x221   : > { %5607 = vmatprep.subr.bf16.mxu1 %v6016_v60 }
 0x222   : > { %v6869_v29 = vpop.f32.mrf.mxu1 }
 0x223   : > { %5576 = vmatmul.mubr.bf16.gmra.mxu1 %v6412_v58 }
 0x224   : > { %5579 = vmatprep.mubr.bf16.mxu1 %v6447_v63  ;;  %5608 = vmatpush3.bf16.msra.mxu1 %v6016_v60  ;;  %v6872_v28 = vpop.f32.mrf.mxu1 }
 0x225   : > { %5609 = vmatprep.subr.bf16.mxu1 %v6017_v43  ;;  %5860 = vmatmul.mubr.bf16.gmra.mxu0 %v6412_v58 }
 0x226   : > { %5863 = vmatprep.mubr.bf16.mxu0 %v6447_v63 }
 0x228   : > { %5610 = vmatpush3.bf16.msra.mxu1 %v6017_v43  ;;  %v6025_v43 = vld [vmem:[%s7719_s2 + $0x150] sm:$0xff]  }
 0x229   : > { %5611 = vmatprep.subr.bf16.mxu1 %v6018_v52 }
 0x22b   : > { %5580 = vmatmul.mubr.bf16.gmra.mxu1 %v6459_v55  ;;  %v6877_v12 = vpop.f32.mrf.mxu1 }
 0x22c   : > { %5583 = vmatprep.mubr.bf16.mxu1 %v6479_v9  ;;  %5612 = vmatpush3.bf16.msra.mxu1 %v6018_v52 }
 0x22d   : > { %5613 = vmatprep.subr.bf16.mxu1 %v6019_v54  ;;  %5864 = vmatmul.mubr.bf16.gmra.mxu0 %v6459_v55  ;;  %v6884_v38 = vpop.f32.mrf.mxu1 }
 0x22e   : > { %5867 = vmatprep.mubr.bf16.mxu0 %v6479_v9 }
 0x22f   : > { %v6889_v27 = vpop.f32.mrf.mxu1 }
 0x230   : > { %5614 = vmatpush3.bf16.msra.mxu1 %v6019_v54  ;;  %v6027_v54 = vld [vmem:[%s7719_s2 + $0x140] sm:$0xff]  }
 0x231   : > { %5695 = vmatprep.subr.bf16.mxu1 %v6020_v22 }
 0x233   : > { %5584 = vmatmul.mubr.bf16.gmra.mxu1 %v6496_v2 }
 0x234   : > { %5587 = vmatprep.mubr.bf16.mxu1 %v6517_v39 }
 0x235   : > { %5868 = vmatmul.mubr.bf16.gmra.mxu0 %v6496_v2 }
 0x236   : > { %5871 = vmatprep.mubr.bf16.mxu0 %v6517_v39 }
 0x23b   : > { %5588 = vmatmul.mubr.bf16.gmra.mxu1 %v6529_v3 }
 0x23c   : > { %5591 = vmatprep.mubr.bf16.mxu1 %v6549_v48 }
 0x23d   : > { %5872 = vmatmul.mubr.bf16.gmra.mxu0 %v6529_v3 }
 0x23e   : > { %5875 = vmatprep.mubr.bf16.mxu0 %v6549_v48 }
 0x243   : > { %5592 = vmatmul.mubr.bf16.gmra.mxu1 %v6561_v41 }
 0x244   : > { %5595 = vmatprep.mubr.bf16.mxu1 %v6581_v40 }
 0x245   : > { %5876 = vmatmul.mubr.bf16.gmra.mxu0 %v6561_v41 }
 0x246   : > { %5879 = vmatprep.mubr.bf16.mxu0 %v6581_v40 }
 0x24b   : > { %5596 = vmatmul.mubr.bf16.gmra.mxu1 %v6595_v17 }
 0x24c   : > { %5615 = vmatprep.mubr.bf16.mxu1 %v6312_v33  ;;  %v6022_v33 = vld [vmem:[%s7719_s2 + $0x168] sm:$0xff]  }
 0x24d   : > { %5880 = vmatmul.mubr.bf16.gmra.mxu0 %v6595_v17 }
 0x253   : > { %5616 = vmatmul.mubr.bf16.vlgmr.msra.gmra.mxu1 %v6322_v47  ;;  %v6024_v47 = vld [vmem:[%s7719_s2 + $0x158] sm:$0xff]  }
 0x254   : > { %5696 = vmatpush3.bf16.msra.mxu1 %v6020_v22  ;;  %5619 = vmatprep.mubr.bf16.mxu1 %v6349_v1  ;;  %v6896_v1 = vpop.f32.mrf.mxu1  ;;  %v6028_v22 = vld [vmem:[%s7719_s2 + $0x1f8] sm:$0xff]  }
 0x255   : > { %5697 = vmatprep.subr.bf16.mxu1 %v6021_v8 }
 0x256   : > { %v6898_v60 = vpop.f32.mrf.mxu1 }
 0x258   : > { %5698 = vmatpush3.bf16.msra.mxu1 %v6021_v8 }
 0x259   : > { %5699 = vmatprep.subr.bf16.mxu1 %v6022_v33 }
 0x25b   : > { %5620 = vmatmul.mubr.bf16.gmra.mxu1 %v6362_v16  ;;  %v6905_v16 = vpop.f32.mrf.mxu1 }
 0x25c   : > { %5623 = vmatprep.mubr.bf16.mxu1 %v6402_v49  ;;  %5700 = vmatpush3.bf16.msra.mxu1 %v6022_v33  ;;  %v6026_v49 = vld [vmem:[%s7719_s2 + $0x148] sm:$0xff]  }
 0x25d   : > { %5701 = vmatprep.subr.bf16.mxu1 %v6023_v11  ;;  %v6910_v52 = vpop.f32.mrf.mxu1 }
 0x25e   : > { %7761 = vst [vmem:[#allocation24_spill] sm:$0xff] %v6910_v52 }
 0x260   : > { %5702 = vmatpush3.bf16.msra.mxu1 %v6023_v11 }
 0x261   : > { %5703 = vmatprep.subr.bf16.mxu1 %v6024_v47 }
 0x263   : > { %5624 = vmatmul.mubr.bf16.gmra.mxu1 %v6418_v7  ;;  %v6917_v7 = vpop.f32.mrf.mxu0 }
 0x264   : > { %5627 = vmatprep.mubr.bf16.mxu1 %v6455_v50  ;;  %5704 = vmatpush3.bf16.msra.mxu1 %v6024_v47  ;;  %7762 = vst [vmem:[#allocation25_spill] sm:$0xff] %v6917_v7  ;;  %v6919_v50 = vpop.f32.mrf.mxu1 }
 0x265   : > { %5705 = vmatprep.subr.bf16.mxu1 %v6025_v43  ;;  %7763 = vst [vmem:[#allocation26_spill] sm:$0xff] %v6919_v50  ;;  %v6926_v33 = vpop.f32.mrf.mxu0 }
 0x266   : > { %v6924_v8 = vpop.f32.mrf.mxu1  ;;  %7765 = vst [vmem:[#allocation28_spill] sm:$0xff] %v6926_v33 }
 0x267   : > { %7764 = vst [vmem:[#allocation27_spill] sm:$0xff] %v6924_v8  ;;  %v6036_v8 = vld [vmem:[%s7719_s2 + $0x238] sm:$0xff]  }
 0x268   : > { %5706 = vmatpush3.bf16.msra.mxu1 %v6025_v43  ;;  %v6928_v11 = vpop.f32.mrf.mxu1 }
 0x269   : > { %5707 = vmatprep.subr.bf16.mxu1 %v6026_v49  ;;  %7766 = vst [vmem:[#allocation29_spill] sm:$0xff] %v6928_v11 }
 0x26b   : > { %5628 = vmatmul.mubr.bf16.gmra.mxu1 %v6465_v10  ;;  %v6932_v10 = vpop.f32.mrf.mxu0 }
 0x26c   : > { %5631 = vmatprep.mubr.bf16.mxu1 %v6487_v0  ;;  %5708 = vmatpush3.bf16.msra.mxu1 %v6026_v49  ;;  %7767 = vst [vmem:[#allocation30_spill] sm:$0xff] %v6932_v10  ;;  %v6934_v0 = vpop.f32.mrf.mxu1 }
 0x26d   : > { %5709 = vmatprep.subr.bf16.mxu1 %v6027_v54  ;;  %7768 = vst [vmem:[#allocation31_spill] sm:$0xff] %v6934_v0  ;;  %v6936_v47 = vpop.f32.mrf.mxu0 }
 0x26e   : > { %7769 = vst [vmem:[#allocation32_spill] sm:$0xff] %v6936_v47  ;;  %v6940_v49 = vpop.f32.mrf.mxu1 }
 0x26f   : > { %v6938_v43 = vpop.f32.mrf.mxu0  ;;  %7771 = vst [vmem:[#allocation34_spill] sm:$0xff] %v6940_v49 }
 0x270   : > { %5710 = vmatpush3.bf16.msra.mxu1 %v6027_v54  ;;  %7770 = vst [vmem:[#allocation33_spill] sm:$0xff] %v6938_v43 }
 0x271   : > { %5791 = vmatprep.subr.bf16.mxu1 %v6028_v22  ;;  %v6946_v33 = vpop.f32.mrf.mxu0 }
 0x272   : > { %7773 = vst [vmem:[#allocation36_spill] sm:$0xff] %v6946_v33 }
 0x273   : > { %5632 = vmatmul.mubr.bf16.gmra.mxu1 %v6503_v34  ;;  %v6944_v54 = vpop.f32.mrf.mxu1 }
 0x274   : > { %5635 = vmatprep.mubr.bf16.mxu1 %v6525_v20  ;;  %7772 = vst [vmem:[#allocation35_spill] sm:$0xff] %v6944_v54  ;;  %v6950_v20 = vpop.f32.mrf.mxu0 }
 0x275   : > { %v6948_v34 = vpop.f32.mrf.mxu1  ;;  %7775 = vst [vmem:[#allocation38_spill] sm:$0xff] %v6950_v20 }
 0x276   : > { %7774 = vst [vmem:[#allocation37_spill] sm:$0xff] %v6948_v34  ;;  %v6956_v10 = vpop.f32.mrf.mxu0 }
 0x277   : > { %v6954_v47 = vpop.f32.mrf.mxu1  ;;  %7777 = vst [vmem:[#allocation40_spill] sm:$0xff] %v6956_v10  ;;  %v6029_v10 = vld [vmem:[%s7719_s2 + $0x1f0] sm:$0xff]  }
 0x278   : > { %7776 = vst [vmem:[#allocation39_spill] sm:$0xff] %v6954_v47  ;;  %v6958_v43 = vpop.f32.mrf.mxu0 }
 0x279   : > { %7778 = vst [vmem:[#allocation41_spill] sm:$0xff] %v6958_v43 }
 0x27a   : > { %v6966_v33 = vpop.f32.mrf.mxu0 }
 0x27b   : > { %5636 = vmatmul.mubr.bf16.gmra.mxu1 %v6535_v35  ;;  %v6960_v35 = vpop.f32.mrf.mxu1  ;;  %7779 = vst [vmem:[#allocation42_spill] sm:$0xff] %v6966_v33 }
 0x27c   : > { %5639 = vmatprep.mubr.bf16.mxu1 %v6557_v61 }
 0x283   : > { %5640 = vmatmul.mubr.bf16.gmra.mxu1 %v6567_v46 }
 0x284   : > { %5643 = vmatprep.mubr.bf16.mxu1 %v6591_v25  ;;  %v6972_v25 = vpop.f32.mrf.mxu0 }
 0x285   : > { %7780 = vst [vmem:[#allocation43_spill] sm:$0xff] %v6972_v25  ;;  %v6030_v25 = vld [vmem:[%s7719_s2 + $0x1e8] sm:$0xff]  }
 0x28b   : > { %v6962_v61 = vpop.f32.mrf.mxu1  ;;  %5644 = vmatmul.mubr.bf16.gmra.mxu1 %v6603_v37 }
 0x28c   : > { %5711 = vmatprep.mubr.bf16.mxu1 %v6316_v36  ;;  %v6983_v36 = vpop.f32.mrf.mxu0 }
 0x28d   : > { %v6968_v20 = vpop.f32.mrf.mxu1  ;;  %7781 = vst [vmem:[#allocation44_spill] sm:$0xff] %v6983_v36 }
 0x28e   : > { %v6990_v33 = vpop.f32.mrf.mxu0 }
 0x28f   : > { %v6970_v46 = vpop.f32.mrf.mxu1  ;;  %7782 = vst [vmem:[#allocation45_spill] sm:$0xff] %v6990_v33 }
 0x291   : > { %v6974_v7 = vpop.f32.mrf.mxu1 }
 0x293   : > { %v6979_v43 = vpop.f32.mrf.mxu1  ;;  %5712 = vmatmul.mubr.bf16.vlgmr.msra.gmra.mxu1 %v6338_v26  ;;  %v6031_v26 = vld [vmem:[%s7719_s2 + $0x1e0] sm:$0xff]  }
 0x294   : > { %5792 = vmatpush3.bf16.msra.mxu1 %v6028_v22  ;;  %5715 = vmatprep.mubr.bf16.mxu1 %v6353_v6  ;;  %v6999_v6 = vpop.f32.mrf.mxu0 }
 0x295   : > { %v6985_v37 = vpop.f32.mrf.mxu1  ;;  %5793 = vmatprep.subr.bf16.mxu1 %v6029_v10  ;;  %7783 = vst [vmem:[#allocation46_spill] sm:$0xff] %v6999_v6 }
 0x296   : > { %v7010_v33 = vpop.f32.mrf.mxu0 }
 0x297   : > { %v6992_v45 = vpop.f32.mrf.mxu1  ;;  %7784 = vst [vmem:[#allocation47_spill] sm:$0xff] %v7010_v33 }
 0x298   : > { %5794 = vmatpush3.bf16.msra.mxu1 %v6029_v10  ;;  %v6032_v10 = vld [vmem:[%s7719_s2 + $0x1d8] sm:$0xff]  }
 0x299   : > { %v6994_v47 = vpop.f32.mrf.mxu1  ;;  %5795 = vmatprep.subr.bf16.mxu1 %v6030_v25 }
 0x29b   : > { %v7001_v22 = vpop.f32.mrf.mxu1  ;;  %5716 = vmatmul.mubr.bf16.gmra.mxu1 %v6385_v4  ;;  %v6033_v4 = vld [vmem:[%s7719_s2 + $0x1d0] sm:$0xff]  }
 0x29c   : > { %5719 = vmatprep.mubr.bf16.mxu1 %v6412_v58  ;;  %5796 = vmatpush3.bf16.msra.mxu1 %v6030_v25  ;;  %v7019_v58 = vpop.f32.mrf.mxu0 }
 0x29d   : > { %v7005_v36 = vpop.f32.mrf.mxu1  ;;  %5797 = vmatprep.subr.bf16.mxu1 %v6031_v26  ;;  %7785 = vst [vmem:[#allocation48_spill] sm:$0xff] %v7019_v58 }
 0x29e   : > { %v7025_v33 = vpop.f32.mrf.mxu0 }
 0x29f   : > { %v7012_v34 = vpop.f32.mrf.mxu1  ;;  %7786 = vst [vmem:[#allocation49_spill] sm:$0xff] %v7025_v33 }
 0x2a0   : > { %5798 = vmatpush3.bf16.msra.mxu1 %v6031_v26  ;;  %v6034_v26 = vld [vmem:[%s7719_s2 + $0x1c8] sm:$0xff]   ;;  %v7034_v58 = vpop.f32.mrf.mxu0 }
 0x2a1   : > { %v7014_v6 = vpop.f32.mrf.mxu1  ;;  %5799 = vmatprep.subr.bf16.mxu1 %v6032_v10  ;;  %7787 = vst [vmem:[#allocation50_spill] sm:$0xff] %v7034_v58 }
 0x2a3   : > { %v7021_v25 = vpop.f32.mrf.mxu1  ;;  %5720 = vmatmul.mubr.bf16.gmra.mxu1 %v6447_v63  ;;  %v6035_v63 = vld [vmem:[%s7719_s2 + $0x1c0] sm:$0xff]  }
 0x2a4   : > { %5723 = vmatprep.mubr.bf16.mxu1 %v6459_v55  ;;  %5800 = vmatpush3.bf16.msra.mxu1 %v6032_v10  ;;  %v7045_v10 = vpop.f32.mrf.mxu0 }
 0x2a5   : > { %v7027_v54 = vpop.f32.mrf.mxu1  ;;  %5801 = vmatprep.subr.bf16.mxu1 %v6033_v4  ;;  %7788 = vst [vmem:[#allocation51_spill] sm:$0xff] %v7045_v10 }
 0x2a6   : > { %v7051_v58 = vpop.f32.mrf.mxu0 }
 0x2a7   : > { %v7032_v49 = vpop.f32.mrf.mxu1  ;;  %7789 = vst [vmem:[#allocation52_spill] sm:$0xff] %v7051_v58 }
 0x2a8   : > { %5802 = vmatpush3.bf16.msra.mxu1 %v6033_v4 }
 0x2a9   : > { %v7036_v0 = vpop.f32.mrf.mxu1  ;;  %5803 = vmatprep.subr.bf16.mxu1 %v6034_v26 }
 0x2ab   : > { %v7041_v55 = vpop.f32.mrf.mxu1  ;;  %5724 = vmatmul.mubr.bf16.gmra.mxu1 %v6479_v9  ;;  %v7058_v9 = vpop.f32.mrf.mxu0 }
 0x2ac   : > { %5727 = vmatprep.mubr.bf16.mxu1 %v6496_v2  ;;  %5804 = vmatpush3.bf16.msra.mxu1 %v6034_v26  ;;  %7790 = vst [vmem:[#allocation53_spill] sm:$0xff] %v7058_v9 }
 0x2ad   : > { %v7047_v33 = vpop.f32.mrf.mxu1  ;;  %5805 = vmatprep.subr.bf16.mxu1 %v6035_v63 }
 0x2af   : > { %v7049_v4 = vpop.f32.mrf.mxu1 }
 0x2b0   : > { %5806 = vmatpush3.bf16.msra.mxu1 %v6035_v63  ;;  %v7066_v63 = vpop.f32.mrf.mxu0 }
 0x2b1   : > { %v7053_v11 = vpop.f32.mrf.mxu1  ;;  %5887 = vmatprep.subr.bf16.mxu1 %v6036_v8  ;;  %7792 = vst [vmem:[#allocation55_spill] sm:$0xff] %v7066_v63 }
 0x2b2   : > { %v7072_v50 = vpop.f32.mrf.mxu0 }
 0x2b3   : > { %v7060_v2 = vpop.f32.mrf.mxu1  ;;  %5728 = vmatmul.mubr.bf16.gmra.mxu1 %v6517_v39  ;;  %7794 = vst [vmem:[#allocation57_spill] sm:$0xff] %v7072_v50 }
 0x2b4   : > { %5731 = vmatprep.mubr.bf16.mxu1 %v6529_v3  ;;  %v7080_v39 = vpop.f32.mrf.mxu0 }
 0x2b5   : > { %v7064_v26 = vpop.f32.mrf.mxu1  ;;  %7796 = vst [vmem:[#allocation59_spill] sm:$0xff] %v7080_v39 }
 0x2b6   : > { %7791 = vst [vmem:[#allocation54_spill] sm:$0xff] %v7064_v26  ;;  %v7084_v26 = vpop.f32.mrf.mxu0 }
 0x2b7   : > { %v7068_v58 = vpop.f32.mrf.mxu1  ;;  %7798 = vst [vmem:[#allocation61_spill] sm:$0xff] %v7084_v26 }
 0x2b8   : > { %7793 = vst [vmem:[#allocation56_spill] sm:$0xff] %v7068_v58  ;;  %v7092_v50 = vpop.f32.mrf.mxu0 }
 0x2b9   : > { %v7070_v10 = vpop.f32.mrf.mxu1  ;;  %7800 = vst [vmem:[#allocation63_spill] sm:$0xff] %v7092_v50 }
 0x2bb   : > { %v7074_v52 = vpop.f32.mrf.mxu1  ;;  %5732 = vmatmul.mubr.bf16.gmra.mxu1 %v6549_v48 }
 0x2bc   : > { %5735 = vmatprep.mubr.bf16.mxu1 %v6561_v41 }
 0x2bd   : > { %v7078_v9 = vpop.f32.mrf.mxu1 }
 0x2be   : > { %7795 = vst [vmem:[#allocation58_spill] sm:$0xff] %v7078_v9  ;;  %v7098_v9 = vpop.f32.mrf.mxu0 }
 0x2bf   : > { %v7082_v3 = vpop.f32.mrf.mxu1  ;;  %7802 = vst [vmem:[#allocation65_spill] sm:$0xff] %v7098_v9 }
 0x2c0   : > { %7797 = vst [vmem:[#allocation60_spill] sm:$0xff] %v7082_v3 }
 0x2c1   : > { %v7086_v63 = vpop.f32.mrf.mxu1 }
 0x2c3   : > { %v7088_v58 = vpop.f32.mrf.mxu1  ;;  %5736 = vmatmul.mubr.bf16.gmra.mxu1 %v6581_v40  ;;  %v7108_v40 = vpop.f32.mrf.mxu0 }
 0x2c4   : > { %7799 = vst [vmem:[#allocation62_spill] sm:$0xff] %v7088_v58  ;;  %5739 = vmatprep.mubr.bf16.mxu1 %v6595_v17  ;;  %7803 = vst [vmem:[#allocation66_spill] sm:$0xff] %v7108_v40 }
 0x2c5   : > { %v7094_v48 = vpop.f32.mrf.mxu1 }
 0x2c7   : > { %v7096_v41 = vpop.f32.mrf.mxu1 }
 0x2c8   : > { %7801 = vst [vmem:[#allocation64_spill] sm:$0xff] %v7096_v41  ;;  %v7113_v41 = vpop.f32.mrf.mxu0 }
 0x2c9   : > { %v2042_v39 = vpop.f32.mrf.mxu1 }
 0x2ca   : > { %v7101_v3 = vadd.f32 %v2042_v39, %v6960_v35 }
 0x2cb   : > { %v5549_v26 = vpop.f32.mrf.mxu1  ;;  %5740 = vmatmul.mubr.bf16.gmra.mxu1 %v6774_v31  ;;  %v1952_v31 = vadd.f32 %v6979_v43, %v6825_v32  ;;  %v1955_v32 = vadd.f32 %v6992_v45, %v6839_v21 }
 0x2cc   : > { %v7105_v58 = vadd.f32 %v5549_v26, %v6962_v61  ;;  %5807 = vmatprep.mubr.bf16.mxu1 %v6340_v30  ;;  %v7123_v30 = vpop.f32.mrf.mxu0 }
 0x2cd   : > { %v2055_v17 = vpop.f32.mrf.mxu1 }
 0x2ce   : > { %v7111_v50 = vadd.f32 %v2055_v17, %v6968_v20  ;;  %v1944_v20 = vadd.f32 %v6985_v37, %v6832_v15  ;;  %v7136_v43 = vpop.f32.mrf.mxu0 }
 0x2cf   : > { %v5550_v9 = vpop.f32.mrf.mxu1 }
 0x2d0   : > { %v7116_v35 = vadd.f32 %v5550_v9, %v6970_v46  ;;  %v7804_v46 = vld [vmem:[#allocation7_spill] sm:$0xff]  ;;  %v7148_v45 = vpop.f32.mrf.mxu0 }
 0x2d1   : > { %v2058_v39 = vpop.f32.mrf.mxu1 }
 0x2d2   : > { %v7121_v61 = vadd.f32 %v2058_v39, %v6974_v7 }
 0x2d3   : > { %v5569_v26 = vpop.f32.mrf.mxu1  ;;  %5808 = vmatmul.mubr.bf16.vlgmr.msra.gmra.mxu1 %v6364_v19  ;;  %v1947_v19 = vadd.f32 %v6994_v47, %v6843_v23  ;;  %v1960_v23 = vadd.f32 %v7005_v36, %v6849_v62  ;;  %v1963_v62 = vadd.f32 %v7014_v6, %v6857_v42  ;;  %v1976_v42 = vadd.f32 %v7027_v54, %v6865_v44 }
 0x2d4   : > { %v7128_v17 = vadd.f32 %v5569_v26, %v1952_v31  ;;  %5895 = vmatpush3.bf16.msra.mxu1 %v6036_v8  ;;  %5811 = vmatprep.mubr.bf16.mxu1 %v7804_v46  ;;  %v1968_v8 = vadd.f32 %v7001_v22, %v6846_v57  ;;  %v7805_v26 = vld [vmem:[#allocation8_spill] sm:$0xff]  ;;  %v1971_v57 = vadd.f32 %v7012_v34, %v6854_v5  ;;  %v7162_v46 = vpop.f32.mrf.mxu0 }
 0x2d5   : > { %v2348_v9 = vpop.f32.mrf.mxu1  ;;  %5888 = vmatprep.subr.bf16.mxu1 %v6679_v59  ;;  %v1979_v44 = vadd.f32 %v7036_v0, %v6872_v28  ;;  %v1992_v28 = vadd.f32 %v7047_v33, %v6884_v38  ;;  %v1995_v38 = vadd.f32 %v7053_v11, %v6896_v1  ;;  %v7813_v1 = vld [vmem:[#allocation15_spill] sm:$0xff] }
 0x2d6   : > { %v7134_v7 = vadd.f32 %v2348_v9, %v1944_v20  ;;  %v7806_v20 = vld [vmem:[#allocation9_spill] sm:$0xff]  ;;  %v7174_v5 = vpop.f32.mrf.mxu0 }
 0x2d7   : > { %v5570_v39 = vpop.f32.mrf.mxu1 }
 0x2d8   : > { %v7140_v15 = vadd.f32 %v5570_v39, %v1955_v32  ;;  %5896 = vmatpush3.bf16.msra.mxu1 %v6679_v59 }
 0x2d9   : > { %v2351_v31 = vpop.f32.mrf.mxu1  ;;  %5889 = vmatprep.subr.bf16.mxu1 %v6696_v18 }
 0x2da   : > { %v7146_v37 = vadd.f32 %v2351_v31, %v1947_v19  ;;  %v7807_v19 = vld [vmem:[#allocation10_spill] sm:$0xff]  ;;  %v7808_v31 = vld [vmem:[#allocation11_spill] sm:$0xff] }
 0x2db   : > { %v5573_v21 = vpop.f32.mrf.mxu1  ;;  %5812 = vmatmul.mubr.bf16.gmra.mxu1 %v7805_v26 }
 0x2dc   : > { %v7153_v47 = vadd.f32 %v5573_v21, %v1968_v8  ;;  %5815 = vmatprep.mubr.bf16.mxu1 %v7806_v20  ;;  %5897 = vmatpush3.bf16.msra.mxu1 %v6696_v18  ;;  %v1984_v18 = vadd.f32 %v7021_v25, %v6861_v53  ;;  %v1987_v53 = vadd.f32 %v7032_v49, %v6869_v29  ;;  %v7188_v8 = vpop.f32.mrf.mxu0  ;;  %v7809_v20 = vld [vmem:[#allocation12_spill] sm:$0xff] }
 0x2dd   : > { %v2364_v59 = vpop.f32.mrf.mxu1  ;;  %5890 = vmatprep.subr.bf16.mxu1 %v6704_v13 }
 0x2de   : > { %v7160_v22 = vadd.f32 %v2364_v59, %v1960_v23  ;;  %v7200_v29 = vpop.f32.mrf.mxu0  ;;  %v7810_v59 = vld [vmem:[#allocation13_spill] sm:$0xff] }
 0x2df   : > { %v5574_v9 = vpop.f32.mrf.mxu1 }
 0x2e0   : > { %v7166_v36 = vadd.f32 %v5574_v9, %v1971_v57  ;;  %5898 = vmatpush3.bf16.msra.mxu1 %v6704_v13  ;;  %v7214_v57 = vpop.f32.mrf.mxu0 }
 0x2e1   : > { %v2367_v32 = vpop.f32.mrf.mxu1  ;;  %5891 = vmatprep.subr.bf16.mxu1 %v6720_v24 }
 0x2e2   : > { %v7172_v39 = vadd.f32 %v2367_v32, %v1963_v62 }
 0x2e3   : > { %v5577_v34 = vpop.f32.mrf.mxu1  ;;  %5816 = vmatmul.mubr.bf16.gmra.mxu1 %v7807_v19 }
 0x2e4   : > { %v7179_v6 = vadd.f32 %v5577_v34, %v1984_v18  ;;  %5819 = vmatprep.mubr.bf16.mxu1 %v7808_v31  ;;  %5899 = vmatpush3.bf16.msra.mxu1 %v6720_v24  ;;  %v2000_v24 = vadd.f32 %v7041_v55, %v6877_v12  ;;  %v2003_v12 = vadd.f32 %v7049_v4, %v6889_v27  ;;  %v7225_v18 = vpop.f32.mrf.mxu0  ;;  %v7811_v4 = vld [vmem:[#allocation14_spill] sm:$0xff]  ;;  %v7815_v31 = vld [vmem:[#allocation56_spill] sm:$0xff] }
 0x2e5   : > { %v2380_v13 = vpop.f32.mrf.mxu1  ;;  %5892 = vmatprep.subr.bf16.mxu1 %v6728_v56  ;;  %v7812_v34 = vld [vmem:[#allocation54_spill] sm:$0xff] }
 0x2e6   : > { %v7186_v25 = vadd.f32 %v2380_v13, %v1976_v42  ;;  %v2008_v19 = vadd.f32 %v7812_v34, %v6905_v16  ;;  %v7817_v16 = vld [vmem:[#allocation27_spill] sm:$0xff] }
 0x2e7   : > { %v5578_v21 = vpop.f32.mrf.mxu1 }
 0x2e8   : > { %v7192_v54 = vadd.f32 %v5578_v21, %v1987_v53  ;;  %5900 = vmatpush3.bf16.msra.mxu1 %v6728_v56  ;;  %v7816_v21 = vld [vmem:[#allocation26_spill] sm:$0xff] }
 0x2e9   : > { %v2383_v26 = vpop.f32.mrf.mxu1  ;;  %5893 = vmatprep.subr.bf16.mxu1 %v6741_v14 }
 0x2ea   : > { %v7198_v23 = vadd.f32 %v2383_v26, %v1979_v44  ;;  %v2011_v44 = vadd.f32 %v7070_v10, %v7816_v21  ;;  %v7826_v21 = vld [vmem:[#allocation62_spill] sm:$0xff] }
 0x2eb   : > { %v5581_v49 = vpop.f32.mrf.mxu1  ;;  %5820 = vmatmul.mubr.bf16.gmra.mxu1 %v7809_v20 }
 0x2ec   : > { %v7205_v0 = vadd.f32 %v5581_v49, %v2000_v24  ;;  %5823 = vmatprep.mubr.bf16.mxu1 %v7810_v59  ;;  %5901 = vmatpush3.bf16.msra.mxu1 %v6741_v14  ;;  %v2016_v14 = vadd.f32 %v7060_v2, %v6898_v60  ;;  %v7237_v60 = vpop.f32.mrf.mxu0  ;;  %v2032_v49 = vadd.f32 %v7074_v52, %v7817_v16 }
 0x2ed   : > { %v2396_v56 = vpop.f32.mrf.mxu1  ;;  %5894 = vmatprep.subr.bf16.mxu1 %v6750_v51 }
 0x2ee   : > { %v7212_v55 = vadd.f32 %v2396_v56, %v1992_v28  ;;  %v7247_v28 = vpop.f32.mrf.mxu0  ;;  %v7818_v56 = vld [vmem:[#allocation16_spill] sm:$0xff] }
 0x2ef   : > { %v5582_v9 = vpop.f32.mrf.mxu1 }
 0x2f0   : > { %v7218_v33 = vadd.f32 %v5582_v9, %v2003_v12  ;;  %5902 = vmatpush3.bf16.msra.mxu1 %v6750_v51  ;;  %v7814_v51 = vld [vmem:[#allocation24_spill] sm:$0xff]  ;;  %v7819_v12 = vld [vmem:[#allocation29_spill] sm:$0xff]  ;;  %v7820_v9 = vld [vmem:[#allocation58_spill] sm:$0xff]  ;;  %v7259_v52 = vpop.f32.mrf.mxu0 }
 0x2f1   : > { %v2399_v62 = vpop.f32.mrf.mxu1  ;;  %v2019_v13 = vadd.f32 %v7815_v31, %v7814_v51 }
 0x2f2   : > { %v7223_v32 = vadd.f32 %v2399_v62, %v1995_v38  ;;  %v2024_v38 = vadd.f32 %v7820_v9, %v7819_v12  ;;  %v7269_v16 = vpop.f32.mrf.mxu0 }
 0x2f3   : > { %v5585_v27 = vpop.f32.mrf.mxu1  ;;  %5824 = vmatmul.mubr.bf16.gmra.mxu1 %v7811_v4  ;;  %v7823_v4 = vld [vmem:[#allocation60_spill] sm:$0xff] }
 0x2f4   : > { %v7230_v42 = vadd.f32 %v5585_v27, %v2016_v14  ;;  %5827 = vmatprep.mubr.bf16.mxu1 %v7813_v1  ;;  %v7821_v14 = vld [vmem:[#allocation17_spill] sm:$0xff]  ;;  %v7822_v27 = vld [vmem:[#allocation31_spill] sm:$0xff] }
 0x2f5   : > { %v2412_v11 = vpop.f32.mrf.mxu1  ;;  %v2035_v34 = vadd.f32 %v7823_v4, %v7822_v27 }
 0x2f6   : > { %v7235_v53 = vadd.f32 %v2412_v11, %v2008_v19  ;;  %v7824_v11 = vld [vmem:[#allocation34_spill] sm:$0xff] }
 0x2f7   : > { %v5586_v2 = vpop.f32.mrf.mxu1  ;;  %v2027_v51 = vadd.f32 %v7086_v63, %v7824_v11 }
 0x2f8   : > { %v7241_v26 = vadd.f32 %v5586_v2, %v2019_v13  ;;  %v7825_v2 = vld [vmem:[#allocation35_spill] sm:$0xff] }
 0x2f9   : > { %v2415_v24 = vpop.f32.mrf.mxu1 }
 0x2fa   : > { %v7245_v20 = vadd.f32 %v2415_v24, %v2011_v44  ;;  %v2048_v44 = vadd.f32 %v7826_v21, %v7825_v2  ;;  %v7833_v21 = vld [vmem:[#allocation23_spill] sm:$0xff] }
 0x2fb   : > { %v5589_v59 = vpop.f32.mrf.mxu1  ;;  %5828 = vmatmul.mubr.bf16.gmra.mxu1 %v7818_v56  ;;  %v7828_v56 = vld [vmem:[#allocation37_spill] sm:$0xff] }
 0x2fc   : > { %v7252_v62 = vadd.f32 %v5589_v59, %v2032_v49  ;;  %5831 = vmatprep.mubr.bf16.mxu1 %v7821_v14  ;;  %v7827_v59 = vld [vmem:[#allocation18_spill] sm:$0xff]  ;;  %v2040_v12 = vadd.f32 %v7094_v48, %v7828_v56  ;;  %v7830_v14 = vld [vmem:[#allocation39_spill] sm:$0xff] }
 0x2fd   : > { %v2428_v10 = vpop.f32.mrf.mxu1 }
 0x2fe   : > { %v7257_v19 = vadd.f32 %v2428_v10, %v2024_v38  ;;  %v7829_v38 = vld [vmem:[#allocation19_spill] sm:$0xff]  ;;  %v7831_v10 = vld [vmem:[#allocation64_spill] sm:$0xff] }
 0x2ff   : > { %v5590_v1 = vpop.f32.mrf.mxu1  ;;  %v2051_v27 = vadd.f32 %v7831_v10, %v7830_v14 }
 0x300   : > { %v7263_v31 = vadd.f32 %v5590_v1, %v2035_v34  ;;  %v7281_v34 = vpop.f32.mrf.mxu0 }
 0x301   : > { %v2431_v13 = vpop.f32.mrf.mxu1 }
 0x302   : > { %v7267_v24 = vadd.f32 %v2431_v13, %v2027_v51  ;;  %v7288_v48 = vpop.f32.mrf.mxu0 }
 0x303   : > { %v5593_v49 = vpop.f32.mrf.mxu1  ;;  %5832 = vmatmul.mubr.bf16.gmra.mxu1 %v7827_v59  ;;  %7832 = vst [vmem:[#allocation7_spill] sm:$0xff] %v7288_v48 }
 0x304   : > { %v7274_v9 = vadd.f32 %v5593_v49, %v2048_v44  ;;  %5835 = vmatprep.mubr.bf16.mxu1 %v7829_v38  ;;  %v7834_v49 = vld [vmem:[#allocation22_spill] sm:$0xff] }
 0x305   : > { %v2444_v63 = vpop.f32.mrf.mxu1 }
 0x306   : > { %v7279_v4 = vadd.f32 %v2444_v63, %v2040_v12  ;;  %v7298_v12 = vpop.f32.mrf.mxu0 }
 0x307   : > { %v5594_v1 = vpop.f32.mrf.mxu1 }
 0x308   : > { %v7283_v11 = vadd.f32 %v5594_v1, %v2051_v27  ;;  %v7306_v10 = vpop.f32.mrf.mxu0  ;;  %v7835_v27 = vld [vmem:[#allocation20_spill] sm:$0xff]  ;;  %v7836_v1 = vld [vmem:[#allocation21_spill] sm:$0xff] }
 0x309   : > { %v2447_v51 = vpop.f32.mrf.mxu1 }
 0x30a   : > { %v7286_v13 = vadd.f32 %v2447_v51, %v7101_v3  ;;  %v7837_v51 = vcombine.low %v7835_v27, %v7836_v1 }
 0x30b   : > { %v5597_v2 = vpop.f32.mrf.mxu1  ;;  %5836 = vmatmul.mubr.bf16.gmra.mxu1 %v7833_v21 }
 0x30c   : > { %v7292_v44 = vadd.f32 %v5597_v2, %v7105_v58  ;;  %5883 = vmatprep.mubr.bf16.mxu1 %v7834_v49 }
 0x30d   : > { %v2460_v59 = vpop.f32.mrf.mxu1 }
 0x30e   : > { %v7296_v56 = vadd.f32 %v2460_v59, %v7111_v50 }
 0x30f   : > { %v5598_v38 = vpop.f32.mrf.mxu1 }
 0x310   : > { %v7301_v3 = vadd.f32 %v5598_v38, %v7116_v35  ;;  %v7317_v35 = vpop.f32.mrf.mxu0 }
 0x311   : > { %v2463_v63 = vpop.f32.mrf.mxu1  ;;  %7838 = vst [vmem:[#allocation8_spill] sm:$0xff] %v7317_v35 }
 0x312   : > { %v7304_v14 = vadd.f32 %v2463_v63, %v7121_v61  ;;  %v7325_v63 = vpop.f32.mrf.mxu0 }
 0x313   : > { %v5617_v58 = vpop.f32.mrf.mxu1  ;;  %5884 = vmatmul.mubr.bf16.vlgmr.msra.gmra.mxu1 %v7837_v51  ;;  %7839 = vst [vmem:[#allocation9_spill] sm:$0xff] %v7325_v63 }
 0x314   : > { %v7312_v50 = vadd.f32 %v5617_v58, %v7128_v17  ;;  %v7333_v1 = vpop.f32.mrf.mxu0 }
 0x315   : > { %v2608_v2 = vpop.f32.mrf.mxu1 }
 0x316   : > { %v7315_v21 = vadd.f32 %v2608_v2, %v7134_v7 }
 0x317   : > { %v5618_v49 = vpop.f32.mrf.mxu1 }
 0x318   : > { %v7320_v61 = vadd.f32 %v5618_v49, %v7140_v15  ;;  %v7341_v49 = vpop.f32.mrf.mxu0 }
 0x319   : > { %v2611_v59 = vpop.f32.mrf.mxu1 }
 0x31a   : > { %v7323_v38 = vadd.f32 %v2611_v59, %v7146_v37 }
 0x31b   : > { %v5621_v27 = vpop.f32.mrf.mxu1 }
 0x31c   : > { %v7328_v17 = vadd.f32 %v5621_v27, %v7153_v47 }
 0x31d   : > { %v2624_v58 = vpop.f32.mrf.mxu1 }
 0x31e   : > { %v7331_v7 = vadd.f32 %v2624_v58, %v7160_v22  ;;  %v7349_v58 = vpop.f32.mrf.mxu0 }
 0x31f   : > { %v5622_v51 = vpop.f32.mrf.mxu1  ;;  %7840 = vst [vmem:[#allocation10_spill] sm:$0xff] %v7349_v58 }
 0x320   : > { %v7336_v15 = vadd.f32 %v5622_v51, %v7166_v36 }
 0x321   : > { %v2627_v2 = vpop.f32.mrf.mxu1 }
 0x322   : > { %v7339_v37 = vadd.f32 %v2627_v2, %v7172_v39  ;;  %v7357_v2 = vpop.f32.mrf.mxu0 }
 0x323   : > { %v5625_v59 = vpop.f32.mrf.mxu1  ;;  %7841 = vst [vmem:[#allocation11_spill] sm:$0xff] %v7357_v2 }
 0x324   : > { %v7344_v47 = vadd.f32 %v5625_v59, %v7179_v6 }
 0x325   : > { %v2640_v27 = vpop.f32.mrf.mxu1 }
 0x326   : > { %v7347_v22 = vadd.f32 %v2640_v27, %v7186_v25  ;;  %v7365_v27 = vpop.f32.mrf.mxu0 }
 0x327   : > { %v5626_v40 = vpop.f32.mrf.mxu1 }
 0x328   : > { %v7352_v36 = vadd.f32 %v5626_v40, %v7192_v54 }
 0x329   : > { %v2643_v51 = vpop.f32.mrf.mxu1 }
 0x32a   : > { %v7355_v39 = vadd.f32 %v2643_v51, %v7198_v23  ;;  %v7373_v51 = vpop.f32.mrf.mxu0 }
 0x32b   : > { %v5629_v63 = vpop.f32.mrf.mxu1 }
 0x32c   : > { %v7360_v6 = vadd.f32 %v5629_v63, %v7205_v0 }
 0x32d   : > { %v2656_v59 = vpop.f32.mrf.mxu1 }
 0x32e   : > { %v7363_v25 = vadd.f32 %v2656_v59, %v7212_v55  ;;  %v7381_v59 = vpop.f32.mrf.mxu0 }
 0x32f   : > { %v5630_v58 = vpop.f32.mrf.mxu1  ;;  %7843 = vst [vmem:[#allocation13_spill] sm:$0xff] %v7381_v59 }
 0x330   : > { %v7368_v40 = vadd.f32 %v5630_v58, %v7218_v33 }
 0x331   : > { %v2659_v54 = vpop.f32.mrf.mxu1 }
 0x332   : > { %v7371_v23 = vadd.f32 %v2659_v54, %v7223_v32  ;;  %v7389_v54 = vpop.f32.mrf.mxu0 }
 0x333   : > { %v5633_v2 = vpop.f32.mrf.mxu1  ;;  %7846 = vst [vmem:[#allocation15_spill] sm:$0xff] %v7389_v54 }
 0x334   : > { %7842 = vst [vmem:[#allocation12_spill] sm:$0xff] %v7371_v23  ;;  %v7376_v0 = vadd.f32 %v5633_v2, %v7230_v42 }
 0x335   : > { %v2672_v63 = vpop.f32.mrf.mxu1 }
 0x336   : > { %v7379_v55 = vadd.f32 %v2672_v63, %v7235_v53  ;;  %v7397_v63 = vpop.f32.mrf.mxu0 }
 0x337   : > { %v5634_v35 = vpop.f32.mrf.mxu1 }
 0x338   : > { %v7384_v33 = vadd.f32 %v5634_v35, %v7241_v26 }
 0x339   : > { %v2675_v58 = vpop.f32.mrf.mxu1 }
 0x33a   : > { %7844 = vst [vmem:[#allocation14_spill] sm:$0xff] %v7384_v33  ;;  %v7387_v32 = vadd.f32 %v2675_v58, %v7245_v20  ;;  %v7405_v58 = vpop.f32.mrf.mxu0 }
 0x33b   : > { %v5637_v23 = vpop.f32.mrf.mxu1 }
 0x33c   : > { %7845 = vst [vmem:[#allocation54_spill] sm:$0xff] %v7387_v32  ;;  %v7392_v42 = vadd.f32 %v5637_v23, %v7252_v62 }
 0x33d   : > { %v2688_v2 = vpop.f32.mrf.mxu1 }
 0x33e   : > { %v7395_v53 = vadd.f32 %v2688_v2, %v7257_v19  ;;  %v7413_v2 = vpop.f32.mrf.mxu0 }
 0x33f   : > { %v5638_v59 = vpop.f32.mrf.mxu1  ;;  %7849 = vst [vmem:[#allocation26_spill] sm:$0xff] %v7413_v2 }
 0x340   : > { %v7400_v26 = vadd.f32 %v5638_v59, %v7263_v31 }
 0x341   : > { %v2691_v35 = vpop.f32.mrf.mxu1 }
 0x342   : > { %7847 = vst [vmem:[#allocation24_spill] sm:$0xff] %v7400_v26  ;;  %v7403_v20 = vadd.f32 %v2691_v35, %v7267_v24  ;;  %v7421_v35 = vpop.f32.mrf.mxu0 }
 0x343   : > { %v5641_v54 = vpop.f32.mrf.mxu1  ;;  %7852 = vst [vmem:[#allocation29_spill] sm:$0xff] %v7421_v35 }
 0x344   : > { %7848 = vst [vmem:[#allocation56_spill] sm:$0xff] %v7403_v20  ;;  %v7408_v62 = vadd.f32 %v5641_v54, %v7274_v9 }
 0x345   : > { %v2704_v23 = vpop.f32.mrf.mxu1 }
 0x346   : > { %v7411_v19 = vadd.f32 %v2704_v23, %v7279_v4  ;;  %v7429_v23 = vpop.f32.mrf.mxu0 }
 0x347   : > { %v5642_v32 = vpop.f32.mrf.mxu1  ;;  %7853 = vst [vmem:[#allocation58_spill] sm:$0xff] %v7429_v23 }
 0x348   : > { %v7416_v31 = vadd.f32 %v5642_v32, %v7283_v11 }
 0x349   : > { %v2707_v59 = vpop.f32.mrf.mxu1 }
 0x34a   : > { %7850 = vst [vmem:[#allocation27_spill] sm:$0xff] %v7416_v31  ;;  %v7419_v24 = vadd.f32 %v2707_v59, %v7286_v13  ;;  %v7854_v59 = vld [vmem:[#allocation25_spill] sm:$0xff] }
 0x34b   : > { %v5645_v20 = vpop.f32.mrf.mxu1  ;;  %v3023_v35 = vadd.f32 %v7854_v59, %v7312_v50 }
 0x34c   : > { %7851 = vst [vmem:[#allocation16_spill] sm:$0xff] %v7419_v24  ;;  %v7424_v9 = vadd.f32 %v5645_v20, %v7292_v44  ;;  %v7439_v24 = vpop.f32.mrf.mxu0 }
 0x34d   : > { %v2720_v54 = vpop.f32.mrf.mxu1  ;;  %7855 = vst [vmem:[#allocation17_spill] sm:$0xff] %v7439_v24 }
 0x34e   : > { %v7427_v4 = vadd.f32 %v2720_v54, %v7296_v56  ;;  %v7856_v56 = vld [vmem:[#allocation28_spill] sm:$0xff] }
 0x34f   : > { %v5646_v2 = vpop.f32.mrf.mxu1  ;;  %v3021_v54 = vadd.f32 %v7856_v56, %v7315_v21 }
 0x350   : > { %v7432_v11 = vadd.f32 %v5646_v2, %v7301_v3  ;;  %v7446_v3 = vpop.f32.mrf.mxu0 }
 0x351   : > { %v2723_v32 = vpop.f32.mrf.mxu1  ;;  %7857 = vst [vmem:[#allocation31_spill] sm:$0xff] %v7446_v3 }
 0x352   : > { %v7435_v13 = vadd.f32 %v2723_v32, %v7304_v14  ;;  %v7858_v32 = vld [vmem:[#allocation33_spill] sm:$0xff]  ;;  %v7457_v59 = vpop.f32.mrf.mxu0 }
 0x353   : > { %v5713_v44 = vpop.f32.mrf.mxu1  ;;  %7859 = vst [vmem:[#allocation60_spill] sm:$0xff] %v7457_v59 }
 0x354   : > { %v3292_v20 = vadd.f32 %v5713_v44, %v3023_v35  ;;  %v3027_v35 = vadd.f32 %v7858_v32, %v7328_v17  ;;  %v7464_v3 = vpop.f32.mrf.mxu0  ;;  %v7861_v32 = vld [vmem:[#allocation41_spill] sm:$0xff] }
 0x355   : > { %v3163_v31 = vpop.f32.mrf.mxu1 }
 0x356   : > { %v3290_v23 = vadd.f32 %v3163_v31, %v3021_v54  ;;  %v7444_v26 = vadd.f32 %v7162_v46, %v3292_v20  ;;  %v7860_v31 = vld [vmem:[#allocation36_spill] sm:$0xff] }
 0x357   : > { %v7448_v2 = vpop.f32.mrf.mxu1  ;;  %v3025_v46 = vadd.f32 %v7860_v31, %v7331_v7 }
 0x358   : > { %v7451_v14 = vadd.f32 %v7174_v5, %v3290_v23 }
 0x359   : > { %v7453_v50 = vpop.f32.mrf.mxu1 }
 0x35b   : > { %v5717_v21 = vpop.f32.mrf.mxu1 }
 0x35c   : > { %v3296_v44 = vadd.f32 %v5717_v21, %v3027_v35  ;;  %v3031_v35 = vadd.f32 %v7861_v32, %v7344_v47  ;;  %v7475_v21 = vpop.f32.mrf.mxu0  ;;  %v7863_v32 = vld [vmem:[#allocation45_spill] sm:$0xff] }
 0x35d   : > { %v3179_v20 = vpop.f32.mrf.mxu1 }
 0x35e   : > { %v3294_v56 = vadd.f32 %v3179_v20, %v3025_v46  ;;  %v7462_v54 = vadd.f32 %v7214_v57, %v3296_v44  ;;  %v7862_v46 = vld [vmem:[#allocation42_spill] sm:$0xff]  ;;  %v7482_v24 = vpop.f32.mrf.mxu0 }
 0x35f   : > { %v7466_v5 = vpop.f32.mrf.mxu1  ;;  %v3029_v57 = vadd.f32 %v7862_v46, %v7347_v22 }
 0x360   : > { %v7469_v23 = vadd.f32 %v7225_v18, %v3294_v56 }
 0x361   : > { %v7471_v17 = vpop.f32.mrf.mxu1 }
 0x363   : > { %v5721_v7 = vpop.f32.mrf.mxu1 }
 0x364   : > { %v3300_v31 = vadd.f32 %v5721_v7, %v3031_v35  ;;  %v3035_v35 = vadd.f32 %v7863_v32, %v7360_v6  ;;  %v7493_v7 = vpop.f32.mrf.mxu0  ;;  %v7867_v32 = vld [vmem:[#allocation49_spill] sm:$0xff] }
 0x365   : > { %v3195_v44 = vpop.f32.mrf.mxu1 }
 0x366   : > { %v3298_v20 = vadd.f32 %v3195_v44, %v3029_v57  ;;  %v7480_v59 = vadd.f32 %v7259_v52, %v3300_v31  ;;  %v7864_v57 = vld [vmem:[#allocation46_spill] sm:$0xff]  ;;  %v7500_v48 = vpop.f32.mrf.mxu0 }
 0x367   : > { %v7484_v18 = vpop.f32.mrf.mxu1  ;;  %v3033_v52 = vadd.f32 %v7864_v57, %v7363_v25 }
 0x368   : > { %v7487_v56 = vadd.f32 %v7269_v16, %v3298_v20 }
 0x369   : > { %v7489_v47 = vpop.f32.mrf.mxu1 }
 0x36b   : > { %v5725_v22 = vpop.f32.mrf.mxu1 }
 0x36c   : > { %v3304_v46 = vadd.f32 %v5725_v22, %v3035_v35  ;;  %v3039_v35 = vadd.f32 %v7867_v32, %v7376_v0  ;;  %v7511_v22 = vpop.f32.mrf.mxu0  ;;  %v7871_v32 = vld [vmem:[#allocation53_spill] sm:$0xff] }
 0x36d   : > { %v3211_v31 = vpop.f32.mrf.mxu1 }
 0x36e   : > { %v3302_v44 = vadd.f32 %v3211_v31, %v3033_v52  ;;  %v7498_v33 = vadd.f32 %v7298_v12, %v3304_v46  ;;  %v7868_v52 = vld [vmem:[#allocation50_spill] sm:$0xff] }
 0x36f   : > { %v7502_v16 = vpop.f32.mrf.mxu1  ;;  %v3037_v12 = vadd.f32 %v7868_v52, %v7379_v55 }
 0x370   : > { %7865 = vst [vmem:[#allocation34_spill] sm:$0xff] %v7498_v33  ;;  %7866 = vst [vmem:[#allocation35_spill] sm:$0xff] %v7502_v16  ;;  %v7505_v20 = vadd.f32 %v7306_v10, %v3302_v44  ;;  %v7518_v16 = vpop.f32.mrf.mxu0 }
 0x371   : > { %v7507_v6 = vpop.f32.mrf.mxu1 }
 0x373   : > { %v5729_v25 = vpop.f32.mrf.mxu1 }
 0x374   : > { %v3308_v57 = vadd.f32 %v5729_v25, %v3039_v35  ;;  %v3043_v35 = vadd.f32 %v7871_v32, %v7392_v42  ;;  %v7529_v25 = vpop.f32.mrf.mxu0  ;;  %v7875_v32 = vld [vmem:[#allocation61_spill] sm:$0xff] }
 0x375   : > { %v3227_v46 = vpop.f32.mrf.mxu1 }
 0x376   : > { %v3306_v31 = vadd.f32 %v3227_v46, %v3037_v12  ;;  %v7516_v33 = vadd.f32 %v7333_v1, %v3308_v57  ;;  %v7872_v12 = vld [vmem:[#allocation55_spill] sm:$0xff] }
 0x377   : > { %v7520_v10 = vpop.f32.mrf.mxu1  ;;  %v3041_v1 = vadd.f32 %v7872_v12, %v7395_v53 }
 0x378   : > { %7869 = vst [vmem:[#allocation62_spill] sm:$0xff] %v7516_v33  ;;  %7870 = vst [vmem:[#allocation18_spill] sm:$0xff] %v7520_v10  ;;  %v7523_v44 = vadd.f32 %v7341_v49, %v3306_v31  ;;  %v7536_v10 = vpop.f32.mrf.mxu0 }
 0x379   : > { %v7525_v0 = vpop.f32.mrf.mxu1 }
 0x37b   : > { %v5733_v55 = vpop.f32.mrf.mxu1 }
 0x37c   : > { %v3312_v52 = vadd.f32 %v5733_v55, %v3043_v35  ;;  %v3047_v35 = vadd.f32 %v7875_v32, %v7408_v62  ;;  %v7547_v55 = vpop.f32.mrf.mxu0  ;;  %v3051_v32 = vadd.f32 %v7113_v41, %v7424_v9 }
 0x37d   : > { %v3243_v57 = vpop.f32.mrf.mxu1 }
 0x37e   : > { %v3310_v46 = vadd.f32 %v3243_v57, %v3041_v1  ;;  %v7534_v33 = vadd.f32 %v7365_v27, %v3312_v52  ;;  %v7876_v1 = vld [vmem:[#allocation63_spill] sm:$0xff] }
 0x37f   : > { %v7538_v49 = vpop.f32.mrf.mxu1  ;;  %v3045_v27 = vadd.f32 %v7876_v1, %v7411_v19 }
 0x380   : > { %7873 = vst [vmem:[#allocation37_spill] sm:$0xff] %v7534_v33  ;;  %7874 = vst [vmem:[#allocation19_spill] sm:$0xff] %v7538_v49  ;;  %v7541_v31 = vadd.f32 %v7373_v51, %v3310_v46  ;;  %v7554_v49 = vpop.f32.mrf.mxu0 }
 0x381   : > { %v7543_v42 = vpop.f32.mrf.mxu1 }
 0x383   : > { %v5737_v53 = vpop.f32.mrf.mxu1 }
 0x384   : > { %v3316_v12 = vadd.f32 %v5737_v53, %v3047_v35  ;;  %v7565_v35 = vpop.f32.mrf.mxu0 }
 0x385   : > { %v3259_v52 = vpop.f32.mrf.mxu1 }
 0x386   : > { %v3314_v57 = vadd.f32 %v3259_v52, %v3045_v27  ;;  %v7552_v33 = vadd.f32 %v7397_v63, %v3316_v12  ;;  %v3049_v63 = vadd.f32 %v7123_v30, %v7427_v4  ;;  %v7575_v27 = vpop.f32.mrf.mxu0  ;;  %v7879_v4 = vld [vmem:[#allocation32_spill] sm:$0xff] }
 0x387   : > { %v7556_v51 = vpop.f32.mrf.mxu1 }
 0x388   : > { %v7559_v46 = vadd.f32 %v7405_v58, %v3314_v57  ;;  %v3052_v58 = vadd.f32 %v7136_v43, %v7432_v11  ;;  %v7878_v57 = vld [vmem:[#allocation30_spill] sm:$0xff]  ;;  %v7588_v43 = vpop.f32.mrf.mxu0 }
 0x389   : > { %v7561_v62 = vpop.f32.mrf.mxu1  ;;  %v3024_v41 = vadd.f32 %v7878_v57, %v7320_v61 }
 0x38b   : > { %v5741_v19 = vpop.f32.mrf.mxu1  ;;  %v3293_v30 = vadd.f32 %v7448_v2, %v3024_v41  ;;  %v7880_v2 = vld [vmem:[#allocation38_spill] sm:$0xff] }
 0x38c   : > { %v7567_v53 = vadd.f32 %v5741_v19, %v3051_v32  ;;  %v3050_v32 = vadd.f32 %v7148_v45, %v7435_v13  ;;  %v7594_v13 = vpop.f32.mrf.mxu0  ;;  %v3028_v57 = vadd.f32 %v7880_v2, %v7336_v15 }
 0x38d   : > { %v3275_v12 = vpop.f32.mrf.mxu1  ;;  %v3553_v45 = vadd.f32 %v7188_v8, %v3293_v30 }
 0x38e   : > { %v7571_v1 = vadd.f32 %v3275_v12, %v3049_v63  ;;  %v3022_v63 = vadd.f32 %v7879_v4, %v7323_v38 }
 0x38f   : > { %v5742_v52 = vpop.f32.mrf.mxu1 }
 0x390   : > { %7877 = vst [vmem:[#allocation39_spill] sm:$0xff] %v7571_v1  ;;  %v7579_v9 = vadd.f32 %v5742_v52, %v3052_v58  ;;  %v3291_v1 = vadd.f32 %v7453_v50, %v3022_v63  ;;  %v3297_v50 = vadd.f32 %v7466_v5, %v3028_v57 }
 0x391   : > { %v3278_v19 = vpop.f32.mrf.mxu1 }
 0x392   : > { %v7586_v12 = vadd.f32 %v3278_v19, %v3050_v32  ;;  %v3551_v19 = vadd.f32 %v7200_v29, %v3291_v1 }
 0x393   : > { %v5809_v11 = vpop.f32.mrf.mxu1 }
 0x394   : > { %v3838_v61 = vadd.f32 %v5809_v11, %v7444_v26  ;;  %v7881_v26 = vld [vmem:[#allocation40_spill] sm:$0xff]  ;;  %v7605_v11 = vpop.f32.mrf.mxu0 }
 0x395   : > { %v3709_v58 = vpop.f32.mrf.mxu1  ;;  %v3026_v4 = vadd.f32 %v7881_v26, %v7339_v37  ;;  %v3557_v37 = vadd.f32 %v7237_v60, %v3297_v50 }
 0x396   : > { %v3836_v52 = vadd.f32 %v3709_v58, %v7451_v14  ;;  %v4107_v41 = vadd.f32 %v7464_v3, %v3838_v61  ;;  %v7612_v2 = vpop.f32.mrf.mxu0 }
 0x397   : > { %v5810_v38 = vpop.f32.mrf.mxu1  ;;  %v3295_v15 = vadd.f32 %v7471_v17, %v3026_v4  ;;  %v7882_v17 = vld [vmem:[#allocation43_spill] sm:$0xff] }
 0x398   : > { %v3839_v32 = vadd.f32 %v5810_v38, %v3553_v45  ;;  %v4105_v14 = vadd.f32 %v7475_v21, %v3836_v52  ;;  %v4139_v61 = vmax.f32 %v4107_v41, 0.0  ;;  %v3032_v57 = vadd.f32 %v7882_v17, %v7352_v36 }
 0x399   : > { %v3712_v63 = vpop.f32.mrf.mxu1 }
 0x39a   : > { %v4108_v8 = vadd.f32 %v7482_v24, %v3839_v32  ;;  %v3837_v30 = vadd.f32 %v3712_v63, %v3551_v19  ;;  %v4137_v21 = vmax.f32 %v4105_v14, 0.0  ;;  %v3555_v32 = vadd.f32 %v7247_v28, %v3295_v15  ;;  %v7883_v19 = vld [vmem:[#allocation44_spill] sm:$0xff]  ;;  %v7625_v63 = vpop.f32.mrf.mxu0 }
 0x39b   : > { %v5813_v3 = vpop.f32.mrf.mxu1  ;;  %v3301_v60 = vadd.f32 %v7484_v18, %v3032_v57  ;;  %v3030_v50 = vadd.f32 %v7883_v19, %v7355_v39  ;;  %v7889_v19 = vld [vmem:[#allocation34_spill] sm:$0xff] }
 0x39c   : > { %v4140_v58 = vmax.f32 %v4108_v8, 0.0  ;;  %v4106_v29 = vadd.f32 %v7493_v7, %v3837_v30  ;;  %v3842_v5 = vadd.f32 %v5813_v3, %v7462_v54 }
 0x39d   : > { %v3725_v1 = vpop.f32.mrf.mxu1  ;;  %v3561_v15 = vadd.f32 %v7281_v34, %v3301_v60  ;;  %v7886_v34 = vld [vmem:[#allocation35_spill] sm:$0xff] }
 0x39e   : > { %v4993_v52 = vpack.c.bf16 %v4140_v58, %v4139_v61  ;;  %v4138_v24 = vmax.f32 %v4106_v29, 0.0  ;;  %v3840_v45 = vadd.f32 %v3725_v1, %v7469_v23  ;;  %v4111_v7 = vadd.f32 %v7500_v48, %v3842_v5  ;;  %v7632_v58 = vpop.f32.mrf.mxu0 }
 0x39f   : > { %v5814_v38 = vpop.f32.mrf.mxu1  ;;  %v3299_v48 = vadd.f32 %v7489_v47, %v3030_v50  ;;  %v7884_v47 = vld [vmem:[#allocation47_spill] sm:$0xff] }
 0x3a0   : > { %5065 = vst [vmem:[%s6114_s23 + $0x8] sm:$0xff] %v4993_v52   ;;  %v4988_v41 = vpack.c.bf16 %v4138_v24, %v4137_v21  ;;  %v3843_v54 = vadd.f32 %v5814_v38, %v3557_v37  ;;  %v4109_v23 = vadd.f32 %v7511_v22, %v3840_v45  ;;  %v4143_v8 = vmax.f32 %v4111_v7, 0.0  ;;  %v7885_v37 = vld [vmem:[#allocation7_spill] sm:$0xff]  ;;  %v7887_v24 = vld [vmem:[#allocation12_spill] sm:$0xff] }
 0x3a1   : > { %v3728_v26 = vpop.f32.mrf.mxu1  ;;  %v3036_v29 = vadd.f32 %v7884_v47, %v7368_v40  ;;  %v3559_v21 = vadd.f32 %v7885_v37, %v3299_v48  ;;  %v7888_v45 = vld [vmem:[#allocation48_spill] sm:$0xff] }
 0x3a2   : > { %4989 = vst [vmem:[%s6114_s23] sm:$0xff] %v4988_v41   ;;  %v4112_v4 = vadd.f32 %v7518_v16, %v3843_v54  ;;  %v3841_v36 = vadd.f32 %v3728_v26, %v3555_v32  ;;  %v4141_v22 = vmax.f32 %v4109_v23, 0.0  ;;  %v3034_v17 = vadd.f32 %v7888_v45, %v7887_v24  ;;  %v4045_v41 = vpop.f32.mrf.mxu0  ;;  %v7890_v23 = vld [vmem:[#allocation8_spill] sm:$0xff]  ;;  %v7897_v24 = vld [vmem:[#allocation62_spill] sm:$0xff] }
 0x3a3   : > { %v5817_v14 = vpop.f32.mrf.mxu1  ;;  %v3305_v52 = vadd.f32 %v7886_v34, %v3036_v29  ;;  %v7896_v47 = vld [vmem:[#allocation52_spill] sm:$0xff] }
 0x3a4   : > { %v4144_v28 = vmax.f32 %v4112_v4, 0.0  ;;  %v4110_v18 = vadd.f32 %v7529_v25, %v3841_v36  ;;  %v3846_v30 = vadd.f32 %v5817_v14, %v7480_v59  ;;  %v3303_v7 = vadd.f32 %v7507_v6, %v3034_v17  ;;  %v5877_v14 = vpop.f32.mrf.mxu0 }
 0x3a5   : > { %v3741_v39 = vpop.f32.mrf.mxu1  ;;  %v3565_v4 = vadd.f32 %v7890_v23, %v3305_v52  ;;  %v7902_v23 = vld [vmem:[#allocation19_spill] sm:$0xff] }
 0x3a6   : > { %v5003_v3 = vpack.c.bf16 %v4144_v28, %v4143_v8  ;;  %v4142_v16 = vmax.f32 %v4110_v18, 0.0  ;;  %v3844_v61 = vadd.f32 %v3741_v39, %v7487_v56  ;;  %v4115_v25 = vadd.f32 %v7536_v10, %v3846_v30  ;;  %v7891_v8 = vld [vmem:[#allocation14_spill] sm:$0xff]  ;;  %v7892_v28 = vld [vmem:[#allocation51_spill] sm:$0xff] }
 0x3a7   : > { %v5818_v5 = vpop.f32.mrf.mxu1  ;;  %v3040_v6 = vadd.f32 %v7892_v28, %v7891_v8 }
 0x3a8   : > { %5067 = vst [vmem:[%s6114_s23 + $0x18] sm:$0xff] %v5003_v3   ;;  %v4998_v1 = vpack.c.bf16 %v4142_v16, %v4141_v22  ;;  %v3847_v59 = vadd.f32 %v5818_v5, %v3561_v15  ;;  %v4113_v56 = vadd.f32 %v7547_v55, %v3844_v61  ;;  %v4147_v54 = vmax.f32 %v4115_v25, 0.0  ;;  %v7893_v15 = vld [vmem:[#allocation9_spill] sm:$0xff]  ;;  %v7894_v3 = vld [vmem:[#allocation18_spill] sm:$0xff] }
 0x3a9   : > { %v3744_v57 = vpop.f32.mrf.mxu1  ;;  %v3563_v22 = vadd.f32 %v7893_v15, %v3303_v7  ;;  %v3309_v16 = vadd.f32 %v7894_v3, %v3040_v6  ;;  %v7895_v61 = vld [vmem:[#allocation54_spill] sm:$0xff]  ;;  %v7905_v15 = vld [vmem:[#allocation37_spill] sm:$0xff] }
 0x3aa   : > { %5066 = vst [vmem:[%s6114_s23 + $0x10] sm:$0xff] %v4998_v1   ;;  %v4116_v38 = vadd.f32 %v7554_v49, %v3847_v59  ;;  %v3845_v40 = vadd.f32 %v3744_v57, %v3559_v21  ;;  %v4145_v36 = vmax.f32 %v4113_v56, 0.0  ;;  %v3038_v29 = vadd.f32 %v7896_v47, %v7895_v61  ;;  %v4058_v59 = vpop.f32.mrf.mxu0  ;;  %v7898_v57 = vld [vmem:[#allocation10_spill] sm:$0xff] }
 0x3ab   : > { %v5821_v10 = vpop.f32.mrf.mxu1  ;;  %v3569_v56 = vadd.f32 %v7898_v57, %v3309_v16  ;;  %v7906_v16 = vld [vmem:[#allocation13_spill] sm:$0xff] }
 0x3ac   : > { %v4148_v32 = vmax.f32 %v4116_v38, 0.0  ;;  %v4114_v60 = vadd.f32 %v7565_v35, %v3845_v40  ;;  %v3850_v50 = vadd.f32 %v5821_v10, %v7889_v19  ;;  %v3307_v37 = vadd.f32 %v7525_v0, %v3038_v29  ;;  %v5878_v7 = vpop.f32.mrf.mxu0  ;;  %v7899_v10 = vld [vmem:[#allocation24_spill] sm:$0xff] }
 0x3ad   : > { %v3757_v26 = vpop.f32.mrf.mxu1 }
 0x3ae   : > { %v5013_v55 = vpack.c.bf16 %v4148_v32, %v4147_v54  ;;  %v4146_v48 = vmax.f32 %v4114_v60, 0.0  ;;  %v3848_v49 = vadd.f32 %v3757_v26, %v7505_v20  ;;  %v4119_v35 = vadd.f32 %v7575_v27, %v3850_v50  ;;  %v7900_v54 = vld [vmem:[#allocation57_spill] sm:$0xff]  ;;  %v7901_v50 = vld [vmem:[#allocation11_spill] sm:$0xff]  ;;  %v4061_v6 = vpop.f32.mrf.mxu0 }
 0x3af   : > { %v5822_v18 = vpop.f32.mrf.mxu1  ;;  %v3044_v0 = vadd.f32 %v7900_v54, %v7899_v10  ;;  %v3567_v26 = vadd.f32 %v7901_v50, %v3307_v37 }
 0x3b0   : > { %5069 = vst [vmem:[%s6114_s23 + $0x28] sm:$0xff] %v5013_v55   ;;  %v5008_v30 = vpack.c.bf16 %v4146_v48, %v4145_v36  ;;  %v3851_v39 = vadd.f32 %v5822_v18, %v3565_v4  ;;  %v4117_v20 = vadd.f32 %v7588_v43, %v3848_v49  ;;  %v4151_v21 = vmax.f32 %v4119_v35, 0.0  ;;  %v7903_v36 = vld [vmem:[#allocation56_spill] sm:$0xff]  ;;  %v7904_v55 = vld [vmem:[#allocation59_spill] sm:$0xff] }
 0x3b1   : > { %v3760_v5 = vpop.f32.mrf.mxu1  ;;  %v3313_v4 = vadd.f32 %v7902_v23, %v3044_v0  ;;  %v3042_v48 = vadd.f32 %v7904_v55, %v7903_v36  ;;  %v7913_v36 = vld [vmem:[#allocation29_spill] sm:$0xff] }
 0x3b2   : > { %5068 = vst [vmem:[%s6114_s23 + $0x20] sm:$0xff] %v5008_v30   ;;  %v4120_v1 = vadd.f32 %v7594_v13, %v3851_v39  ;;  %v3849_v25 = vadd.f32 %v3760_v5, %v3563_v22  ;;  %v4149_v38 = vmax.f32 %v4117_v20, 0.0  ;;  %v5881_v5 = vpop.f32.mrf.mxu0  ;;  %v7907_v20 = vld [vmem:[#allocation27_spill] sm:$0xff] }
 0x3b3   : > { %v5825_v27 = vpop.f32.mrf.mxu1  ;;  %v3311_v18 = vadd.f32 %v7543_v42, %v3042_v48  ;;  %v3573_v61 = vadd.f32 %v7906_v16, %v3313_v4  ;;  %v7914_v16 = vld [vmem:[#allocation58_spill] sm:$0xff] }
 0x3b4   : > { %v4152_v34 = vmax.f32 %v4120_v1, 0.0  ;;  %v4118_v52 = vadd.f32 %v7605_v11, %v3849_v25  ;;  %v3854_v45 = vadd.f32 %v5825_v27, %v7897_v24  ;;  %v7908_v1 = vld [vmem:[#allocation65_spill] sm:$0xff]  ;;  %v7910_v24 = vld [vmem:[#allocation16_spill] sm:$0xff] }
 0x3b5   : > { %v3773_v17 = vpop.f32.mrf.mxu1  ;;  %v3048_v25 = vadd.f32 %v7908_v1, %v7907_v20  ;;  %v7917_v20 = vld [vmem:[#allocation31_spill] sm:$0xff] }
 0x3b6   : > { %v5023_v43 = vpack.c.bf16 %v4152_v34, %v4151_v21  ;;  %v4150_v40 = vmax.f32 %v4118_v52, 0.0  ;;  %v3852_v13 = vadd.f32 %v3773_v17, %v7523_v44  ;;  %v4123_v11 = vadd.f32 %v7612_v2, %v3854_v45  ;;  %v7909_v21 = vld [vmem:[#allocation15_spill] sm:$0xff]  ;;  %v7911_v45 = vld [vmem:[#allocation66_spill] sm:$0xff] }
 0x3b7   : > { %v5826_v32 = vpop.f32.mrf.mxu1  ;;  %v3571_v34 = vadd.f32 %v7909_v21, %v3311_v18  ;;  %v3317_v52 = vadd.f32 %v7556_v51, %v3048_v25  ;;  %v3046_v17 = vadd.f32 %v7911_v45, %v7910_v24  ;;  %v3581_v1 = vadd.f32 %v7917_v20, %v7579_v9 }
 0x3b8   : > { %5071 = vst [vmem:[%s6114_s23 + $0x38] sm:$0xff] %v5023_v43   ;;  %v5018_v60 = vpack.c.bf16 %v4150_v40, %v4149_v38  ;;  %v3855_v19 = vadd.f32 %v5826_v32, %v3569_v56  ;;  %v4121_v44 = vadd.f32 %v7625_v63, %v3852_v13  ;;  %v4155_v30 = vmax.f32 %v4123_v11, 0.0  ;;  %v4074_v43 = vpop.f32.mrf.mxu0  ;;  %v7912_v32 = vld [vmem:[#allocation26_spill] sm:$0xff] }
 0x3b9   : > { %v3776_v49 = vpop.f32.mrf.mxu1  ;;  %v3315_v40 = vadd.f32 %v7561_v62, %v3046_v17 }
 0x3ba   : > { %5070 = vst [vmem:[%s6114_s23 + $0x30] sm:$0xff] %v5018_v60   ;;  %v4124_v8 = vadd.f32 %v7632_v58, %v3855_v19  ;;  %v3853_v28 = vadd.f32 %v3776_v49, %v3567_v26  ;;  %v4153_v47 = vmax.f32 %v4121_v44, 0.0  ;;  %v3577_v60 = vadd.f32 %v7912_v32, %v3317_v52 }
 0x3bb   : > { %v5829_v2 = vpop.f32.mrf.mxu1  ;;  %v3575_v55 = vadd.f32 %v7913_v36, %v3315_v40 }
 0x3bc   : > { %v4156_v35 = vmax.f32 %v4124_v8, 0.0  ;;  %v4122_v39 = vadd.f32 %v4045_v41, %v3853_v28  ;;  %v3858_v22 = vadd.f32 %v5829_v2, %v7905_v15 }
 0x3bd   : > { %v3789_v3 = vpop.f32.mrf.mxu1 }
 0x3be   : > { %v5033_v29 = vpack.c.bf16 %v4156_v35, %v4155_v30  ;;  %v4154_v63 = vmax.f32 %v4122_v39, 0.0  ;;  %v3856_v58 = vadd.f32 %v3789_v3, %v7541_v31  ;;  %v4127_v27 = vadd.f32 %v5877_v14, %v3858_v22 }
 0x3bf   : > { %v5830_v42 = vpop.f32.mrf.mxu1 }
 0x3c0   : > { %5073 = vst [vmem:[%s6114_s23 + $0x48] sm:$0xff] %v5033_v29   ;;  %v5028_v37 = vpack.c.bf16 %v4154_v63, %v4153_v47  ;;  %v3859_v41 = vadd.f32 %v5830_v42, %v3573_v61  ;;  %v4125_v56 = vadd.f32 %v4058_v59, %v3856_v58  ;;  %v4159_v10 = vmax.f32 %v4127_v27, 0.0  ;;  %v7915_v63 = vld [vmem:[#allocation39_spill] sm:$0xff]  ;;  %v7916_v58 = vld [vmem:[#allocation17_spill] sm:$0xff]  ;;  %v7918_v27 = vld [vmem:[#allocation60_spill] sm:$0xff] }
 0x3c1   : > { %v3792_v57 = vpop.f32.mrf.mxu1  ;;  %v3580_v61 = vadd.f32 %v7914_v16, %v7567_v53 }
 0x3c2   : > { %5072 = vst [vmem:[%s6114_s23 + $0x40] sm:$0xff] %v5028_v37   ;;  %v4128_v31 = vadd.f32 %v5878_v7, %v3859_v41  ;;  %v3857_v38 = vadd.f32 %v3792_v57, %v3571_v34  ;;  %v4157_v11 = vmax.f32 %v4125_v56, 0.0  ;;  %v5882_v7 = vpop.f32.mrf.mxu0  ;;  %v3579_v41 = vadd.f32 %v7918_v27, %v7586_v12 }
 0x3c3   : > { %v5833_v13 = vpop.f32.mrf.mxu1 }
 0x3c4   : > { %v4160_v14 = vmax.f32 %v4128_v31, 0.0  ;;  %v4126_v54 = vadd.f32 %v4061_v6, %v3857_v38  ;;  %v3862_v0 = vadd.f32 %v5833_v13, %v7552_v33  ;;  %v4077_v8 = vpop.f32.mrf.mxu0 }
 0x3c5   : > { %v3805_v51 = vpop.f32.mrf.mxu1 }
 0x3c6   : > { %v5043_v19 = vpack.c.bf16 %v4160_v14, %v4159_v10  ;;  %v4158_v50 = vmax.f32 %v4126_v54, 0.0  ;;  %v3860_v59 = vadd.f32 %v3805_v51, %v7559_v46  ;;  %v4131_v62 = vadd.f32 %v5881_v5, %v3862_v0 }
 0x3c7   : > { %v5834_v26 = vpop.f32.mrf.mxu1  ;;  %v3578_v5 = vadd.f32 %v7916_v58, %v7915_v63 }
 0x3c8   : > { %5075 = vst [vmem:[%s6114_s23 + $0x58] sm:$0xff] %v5043_v19   ;;  %v5038_v23 = vpack.c.bf16 %v4158_v50, %v4157_v11  ;;  %v3863_v4 = vadd.f32 %v5834_v26, %v3577_v60  ;;  %v4129_v33 = vadd.f32 %v4074_v43, %v3860_v59  ;;  %v4163_v6 = vmax.f32 %v4131_v62, 0.0 }
 0x3c9   : > { %v3808_v48 = vpop.f32.mrf.mxu1 }
 0x3ca   : > { %5074 = vst [vmem:[%s6114_s23 + $0x50] sm:$0xff] %v5038_v23   ;;  %v4132_v49 = vadd.f32 %v5882_v7, %v3863_v4  ;;  %v3861_v44 = vadd.f32 %v3808_v48, %v3575_v55  ;;  %v4161_v30 = vmax.f32 %v4129_v33, 0.0 }
 0x3cb   : > { %v5837_v28 = vpop.f32.mrf.mxu1 }
 0x3cc   : > { %v4164_v18 = vmax.f32 %v4132_v49, 0.0  ;;  %v4130_v46 = vadd.f32 %v4077_v8, %v3861_v44  ;;  %v3866_v29 = vadd.f32 %v5837_v28, %v3580_v61 }
 0x3cd   : > { %v3821_v2 = vpop.f32.mrf.mxu1 }
 0x3ce   : > { %v5053_v35 = vpack.c.bf16 %v4164_v18, %v4163_v6  ;;  %v4162_v39 = vmax.f32 %v4130_v46, 0.0  ;;  %v3864_v42 = vadd.f32 %v3821_v2, %v3578_v5 }
 0x3cf   : > { %v5838_v15 = vpop.f32.mrf.mxu1 }
 0x3d0   : > { %5077 = vst [vmem:[%s6114_s23 + $0x68] sm:$0xff] %v5053_v35   ;;  %v5048_v22 = vpack.c.bf16 %v4162_v39, %v4161_v30  ;;  %v3867_v37 = vadd.f32 %v5838_v15, %v3581_v1 }
 0x3d1   : > { %v3824_v3 = vpop.f32.mrf.mxu1 }
 0x3d2   : > { %5076 = vst [vmem:[%s6114_s23 + $0x60] sm:$0xff] %v5048_v22   ;;  %v3865_v52 = vadd.f32 %v3824_v3, %v3579_v41 }
 0x3d3   : > { %v5885_v47 = vpop.f32.mrf.mxu1 }
 0x3d4   : > { %v4135_v21 = vadd.f32 %v5885_v47, %v3866_v29 }
 0x3d5   : > { %v4090_v25 = vpop.f32.mrf.mxu1 }
 0x3d6   : > { %v4133_v53 = vadd.f32 %v4090_v25, %v3864_v42  ;;  %v4167_v17 = vmax.f32 %v4135_v21, 0.0 }
 0x3d7   : > { %v5886_v34 = vpop.f32.mrf.mxu1 }
 0x3d8   : > { %v4136_v24 = vadd.f32 %v5886_v34, %v3867_v37  ;;  %v4165_v31 = vmax.f32 %v4133_v53, 0.0 }
 0x3d9   : > { %v4093_v45 = vpop.f32.mrf.mxu1 }
 0x3da   : > { %v4168_v57 = vmax.f32 %v4136_v24, 0.0  ;;  %v4134_v56 = vadd.f32 %v4093_v45, %v3865_v52 }
 0x3dc   : > { %v5063_v38 = vpack.c.bf16 %v4168_v57, %v4167_v17  ;;  %v4166_v9 = vmax.f32 %v4134_v56, 0.0 }
 0x3de   : > { %5079 = vst [vmem:[%s6114_s23 + $0x78] sm:$0xff] %v5063_v38   ;;  %v5058_v43 = vpack.c.bf16 %v4166_v9, %v4165_v31 }
 0x3e0   : > { %5078 = vst [vmem:[%s6114_s23 + $0x70] sm:$0xff] %v5058_v43  }
 0x3e1 PF: > { %s13_s14 = sadd.s32 1, %s6061_s14   ;;  %s7919_s12 = smov %s6057_s13 }
 0x3e2   : > { %p10_p5 = scmp.ge.s32.totalorder %s13_s14, 4   ;;  %s7920_s13 = smov %s7922_s15 }
 0x3e4   :  { %12 = sbr.rel (!%p10_p5) target bundleno = 2 (0x2), region = 164 }
 0x3e9   :  { %4361 = vsyncmov [#allocation3] }
 0x3ec   :  { %s4362_s25 = vpop.sfrf %4361 }
 0x3ed   :  { %p4895_p6 = scmp.ne.s32.totalorder %s4362_s25, 0 }
 0x3ef   :  { %4366 = shalt.err (%p4895_p6)  }
 0x3f0   :  { %4368 = vsyncmov [#allocation3 + $0x1] }
 0x3f3   :  { %s4369_s26 = vpop.sfrf %4368 }
 0x3f4   :  { %p4896_p7 = scmp.ne.s32.totalorder %s4369_s26, 0 }
 0x3f6   :  { %4373 = shalt.err (%p4896_p7)  }

</bundles_post_ra>
